<compile_context>
chip_gen: v6e
topology: v6e:2x2x1
jax: 0.10.0
libtpu: 0.0.40
codegen_flags: <defaults>
</compile_context>

<pallas_src>
import numpy as np
import jax
import jax.numpy as jnp
from jax import lax
from jax.experimental import pallas as pl
from jax.experimental.pallas import tpu as pltpu


def _lenet_kernel(pat1_ref, w1c_ref, b1c_ref, w2c_ref, b2c_ref,
                  w1f_ref, b1f_ref, w2f_ref, b2f_ref, w3f_ref, b3f_ref,
                  out_ref, p1s_ref):
    bt = pat1_ref.shape[0]
    cdt = w1c_ref.dtype            # matmul operand dtype (f32, or bf16 on v6e/v7x)

    # ---- conv1 + relu: one MXU matmul over wrapper-built im2col patches -------
    pat1 = pat1_ref[...].reshape(bt * 576, 25)             # tile-aligned merge
    h1 = jnp.dot(pat1.astype(cdt), w1c_ref[...],
                 preferred_element_type=jnp.float32)       # (bt*576, 6)
    h1 = jnp.maximum(h1 + b1c_ref[...], 0.0)
    h1 = h1.reshape(bt, 576, 6)                            # tile-aligned split

    # ---- maxpool1 (2x2/2): rows are ordered (pool-parity, pooled-pos), so the
    #      pool is an elementwise max of four contiguous 144-row blocks --------
    p1 = jnp.maximum(jnp.maximum(h1[:, 0:144, :], h1[:, 144:288, :]),
                     jnp.maximum(h1[:, 288:432, :], h1[:, 432:576, :]))  # (bt,144,6)

    # Stage the pooled 12x12x6 map so conv2 windows are plain static slices.
    for y in range(12):
        p1s_ref[:, y, :, :] = p1[:, y * 12:(y + 1) * 12, :]

    # ---- conv2 + relu: in-kernel im2col (25 slices, one lane concat) + matmul -
    cols = [p1s_ref[:, ky:ky + 8, kx:kx + 8, :]            # 25 x (bt,8,8,6)
            for ky in range(5) for kx in range(5)]
    pat2 = jnp.concatenate(cols, axis=-1).reshape(bt * 64, 150)
    h2 = jnp.dot(pat2.astype(cdt), w2c_ref[...],
                 preferred_element_type=jnp.float32)       # (bt*64, 12)
    h2 = jnp.maximum(h2 + b2c_ref[...], 0.0)
    h2 = h2.reshape(bt, 8, 8, 12)                          # tile-aligned split

    # ---- maxpool2 + flatten -> (bt, 192) with (y, x, c) ordering --------------
    feats = []
    for y in range(4):
        row = jnp.maximum(h2[:, 2 * y, :, :], h2[:, 2 * y + 1, :, :])     # (bt,8,12)
        for x in range(4):
            feats.append(jnp.maximum(row[:, 2 * x, :], row[:, 2 * x + 1, :]))  # (bt,12)
    flat = jnp.concatenate(feats, axis=-1)                 # (bt, 192)

    # ---- fc1 -> relu -> fc2 -> relu -> out  (each a single MXU matmul) --------
    h3 = jnp.maximum(jnp.dot(flat.astype(cdt), w1f_ref[...],
                             preferred_element_type=jnp.float32) + b1f_ref[...], 0.0)
    h4 = jnp.maximum(jnp.dot(h3.astype(cdt), w2f_ref[...],
                             preferred_element_type=jnp.float32) + b2f_ref[...], 0.0)
    out_ref[...] = (jnp.dot(h4.astype(cdt), w3f_ref[...],
                            preferred_element_type=jnp.float32) + b3f_ref[...])


def network_forward(x_nchw, params, *, compute_dtype=jnp.float32):
    B = x_nchw.shape[0]
    x2d = x_nchw[:, 0, :, :].astype(jnp.float32)           # (B, 28, 28), C_in = 1

    # conv1 im2col built with XLA (free, fused).  Rows are ordered
    # (pool-parity yp,xp major; pooled position oy,ox minor) so that the
    # in-kernel 2x2 maxpool is a max over four contiguous row blocks.
    cols = jnp.stack([x2d[:, ky:ky + 24, kx:kx + 24]
                      for ky in range(5) for kx in range(5)], axis=-1)   # (B,24,24,25)
    cols = cols.reshape(B, 12, 2, 12, 2, 25).transpose(0, 2, 4, 1, 3, 5)  # (B,yp,xp,oy,ox,25)
    patches1 = cols.reshape(B, 576, 25)      # row = yp*288 + xp*144 + oy*12 + ox

    cdt = compute_dtype
    # conv1 weight (6,1,5,5) -> (25,6) ordered (ky,kx) x out
    w1c = jnp.transpose(params["conv1_w"][:, 0, :, :], (1, 2, 0)).reshape(25, 6).astype(cdt)
    b1c = params["conv1_b"].reshape(1, 6).astype(jnp.float32)
    # conv2 weight (12,6,5,5) -> (150,12) ordered (ky,kx,ci) x out
    w2c = jnp.transpose(params["conv2_w"], (2, 3, 1, 0)).reshape(150, 12).astype(cdt)
    b2c = params["conv2_b"].reshape(1, 12).astype(jnp.float32)
    # fc1 weight (120,192) with 192 indexed (c,y,x) -> (192,120) indexed (y,x,c)
    w1f = jnp.transpose(params["fc1_w"].reshape(120, 12, 4, 4),
                        (2, 3, 1, 0)).reshape(192, 120).astype(cdt)
    b1f = params["fc1_b"].reshape(1, 120).astype(jnp.float32)
    w2f = params["fc2_w"].T.astype(cdt)                                   # (120, 60)
    b2f = params["fc2_b"].reshape(1, 60).astype(jnp.float32)
    # lane-pad the 10-wide head to 128 so the final store is a full vst
    w3f = jnp.zeros((60, 128), cdt).at[:, :10].set(params["out_w"].T.astype(cdt))
    b3f = jnp.zeros((1, 128), jnp.float32).at[:, :10].set(params["out_b"])

    # Batch tile: 8 samples per grid step when divisible (pipelined, megacore /
    # v7x dual-TC parallel); otherwise one tile for the whole (small) batch.
    # Per-tile VMEM at bt=8 is < 1 MiB, far under the 16 MiB v5e scoped default
    # (32 MiB on v6e/v7x) - re-derive before raising bt on v7x (64 MiB total).
    bt = 8 if B % 8 == 0 else B
    grid = (B // bt,)

    def full(shape):
        return pl.BlockSpec(shape, lambda i: tuple(0 for _ in shape))

    out_padded = pl.pallas_call(
        _lenet_kernel,
        out_shape=jax.ShapeDtypeStruct((B, 128), jnp.float32),
        grid=grid,
        in_specs=[
            pl.BlockSpec((bt, 576, 25), lambda i: (i, 0, 0)),   # im2col patches (batch-tiled)
            full((25, 6)),  full((1, 6)),
            full((150, 12)), full((1, 12)),
            full((192, 120)), full((1, 120)),
            full((120, 60)), full((1, 60)),
            full((60, 128)), full((1, 128)),
        ],
        out_specs=pl.BlockSpec((bt, 128), lambda i: (i, 0)),
        scratch_shapes=[pltpu.VMEM((bt, 12, 12, 6), jnp.float32)],   # pool1 staging
        compiler_params=pltpu.CompilerParams(
            dimension_semantics=("parallel",)),   # v7x: both TCs take batch tiles
    )(patches1, w1c, b1c, w2c, b2c, w1f, b1f, w2f, b2f, w3f, b3f)
    return out_padded[:, :10]


def init_params(key):
    ks = jax.random.split(key, 10)

    def u(k, shape, fan_in):
        bound = 1.0 / np.sqrt(fan_in)
        return jax.random.uniform(k, shape, jnp.float32, -bound, bound)

    return {
        "conv1_w": u(ks[0], (6, 1, 5, 5), 1 * 5 * 5),
        "conv1_b": u(ks[1], (6,), 1 * 5 * 5),
        "conv2_w": u(ks[2], (12, 6, 5, 5), 6 * 5 * 5),
        "conv2_b": u(ks[3], (12,), 6 * 5 * 5),
        "fc1_w":   u(ks[4], (120, 192), 192),
        "fc1_b":   u(ks[5], (120,), 192),
        "fc2_w":   u(ks[6], (60, 120), 120),
        "fc2_b":   u(ks[7], (60,), 120),
        "out_w":   u(ks[8], (10, 60), 60),
        "out_b":   u(ks[9], (10,), 60),
    }


def reference_forward(x_nchw, p):
    dn = ("NCHW", "OIHW", "NCHW")
    t = lax.conv_general_dilated(x_nchw, p["conv1_w"], (1, 1), "VALID",
                                 dimension_numbers=dn) + p["conv1_b"][None, :, None, None]
    t = jnp.maximum(t, 0.0)
    t = lax.reduce_window(t, -jnp.inf, lax.max, (1, 1, 2, 2), (1, 1, 2, 2), "VALID")
    t = lax.conv_general_dilated(t, p["conv2_w"], (1, 1), "VALID",
                                 dimension_numbers=dn) + p["conv2_b"][None, :, None, None]
    t = jnp.maximum(t, 0.0)
    t = lax.reduce_window(t, -jnp.inf, lax.max, (1, 1, 2, 2), (1, 1, 2, 2), "VALID")
    t = t.reshape(-1, 12 * 4 * 4)
    t = jnp.maximum(t @ p["fc1_w"].T + p["fc1_b"], 0.0)
    t = jnp.maximum(t @ p["fc2_w"].T + p["fc2_b"], 0.0)
    return t @ p["out_w"].T + p["out_b"]


if __name__ == "__main__":
    key = jax.random.PRNGKey(0)
    k_x, k_p = jax.random.split(key)
    params = init_params(k_p)
    x = jax.random.normal(k_x, (2, 1, 28, 28), jnp.float32)   # MNIST-like NCHW input

    out = jax.jit(network_forward)(x, params)
    out = jax.block_until_ready(out)
    assert out.shape == (2, 10)

    with jax.default_matmul_precision("float32"):
        ref = reference_forward(x, params)
    ref = jax.block_until_ready(ref)

    if not np.allclose(np.asarray(out), np.asarray(ref), rtol=5e-2, atol=5e-2):
        raise AssertionError("Pallas kernel output does not match JAX reference")
    print("KERNEL_OK")
</pallas_src>

<mosaic_0001>
module attributes {stable_mosaic.version = 11 : i64} {
  func.func @_lenet_kernel(%arg0: i32, %arg1: memref<2x576x25xf32, #tpu.memory_space<vmem>>, %arg2: memref<25x6xf32, #tpu.memory_space<vmem>>, %arg3: memref<1x6xf32, #tpu.memory_space<vmem>>, %arg4: memref<150x12xf32, #tpu.memory_space<vmem>>, %arg5: memref<1x12xf32, #tpu.memory_space<vmem>>, %arg6: memref<192x120xf32, #tpu.memory_space<vmem>>, %arg7: memref<1x120xf32, #tpu.memory_space<vmem>>, %arg8: memref<120x60xf32, #tpu.memory_space<vmem>>, %arg9: memref<1x60xf32, #tpu.memory_space<vmem>>, %arg10: memref<60x128xf32, #tpu.memory_space<vmem>>, %arg11: memref<1x128xf32, #tpu.memory_space<vmem>>, %arg12: memref<2x128xf32, #tpu.memory_space<vmem>>, %arg13: memref<2x12x12x6xf32, #tpu.memory_space<vmem>>) attributes {dimension_semantics = [#tpu.dimension_semantics<parallel>], iteration_bounds = array<i64: 1>, scalar_prefetch = 0 : i64, scratch_operands = 1 : i64, tpu.core_type = #tpu.core_type<tc>, window_params = [{transform_indices = @transform_0, window_bounds = array<i64: 2, 576, 25>}, {pipeline_mode = #tpu.pipeline_mode<synchronous>, transform_indices = @transform_1, window_bounds = array<i64: 25, 6>}, {pipeline_mode = #tpu.pipeline_mode<synchronous>, transform_indices = @transform_2, window_bounds = array<i64: 1, 6>}, {pipeline_mode = #tpu.pipeline_mode<synchronous>, transform_indices = @transform_3, window_bounds = array<i64: 150, 12>}, {pipeline_mode = #tpu.pipeline_mode<synchronous>, transform_indices = @transform_4, window_bounds = array<i64: 1, 12>}, {pipeline_mode = #tpu.pipeline_mode<synchronous>, transform_indices = @transform_5, window_bounds = array<i64: 192, 120>}, {pipeline_mode = #tpu.pipeline_mode<synchronous>, transform_indices = @transform_6, window_bounds = array<i64: 1, 120>}, {pipeline_mode = #tpu.pipeline_mode<synchronous>, transform_indices = @transform_7, window_bounds = array<i64: 120, 60>}, {pipeline_mode = #tpu.pipeline_mode<synchronous>, transform_indices = @transform_8, window_bounds = array<i64: 1, 60>}, {pipeline_mode = #tpu.pipeline_mode<synchronous>, transform_indices = @transform_9, window_bounds = array<i64: 60, 128>}, {pipeline_mode = #tpu.pipeline_mode<synchronous>, transform_indices = @transform_10, window_bounds = array<i64: 1, 128>}, {transform_indices = @transform_11, window_bounds = array<i64: 2, 128>}]} {
    %c0 = arith.constant 0 : index
    %c0_0 = arith.constant 0 : index
    %c0_1 = arith.constant 0 : index
    %0 = vector.load %arg1[%c0, %c0_0, %c0_1] : memref<2x576x25xf32, #tpu.memory_space<vmem>>, vector<2x576x25xf32>
    %1 = vector.shape_cast %0 : vector<2x576x25xf32> to vector<1152x25xf32>
    %c0_2 = arith.constant 0 : index
    %c0_3 = arith.constant 0 : index
    %2 = vector.load %arg2[%c0_2, %c0_3] : memref<25x6xf32, #tpu.memory_space<vmem>>, vector<25x6xf32>
    %cst = arith.constant dense<0.000000e+00> : vector<1152x6xf32>
    %3 = tpu.matmul %1, %2, %cst {dimension_numbers = #tpu.dot_dimension_numbers<[1], [0], [0], [1], [0, 0, 1, 1], [], []>} : vector<1152x25xf32>, vector<25x6xf32>, vector<1152x6xf32> -> vector<1152x6xf32>
    %c0_4 = arith.constant 0 : index
    %c0_5 = arith.constant 0 : index
    %4 = vector.load %arg3[%c0_4, %c0_5] : memref<1x6xf32, #tpu.memory_space<vmem>>, vector<1x6xf32>
    %5 = vector.broadcast %4 : vector<1x6xf32> to vector<1152x6xf32>
    %6 = arith.addf %3, %5 : vector<1152x6xf32>
    %cst_6 = arith.constant 0.000000e+00 : f32
    %7 = vector.broadcast %cst_6 : f32 to vector<1152x6xf32>
    %8 = arith.maximumf %6, %7 : vector<1152x6xf32>
    %9 = vector.shape_cast %8 : vector<1152x6xf32> to vector<2x576x6xf32>
    %10 = vector.extract_strided_slice %9 {offsets = [0, 0, 0], sizes = [2, 144, 6], strides = [1, 1, 1]} : vector<2x576x6xf32> to vector<2x144x6xf32>
    %11 = vector.extract_strided_slice %9 {offsets = [0, 144, 0], sizes = [2, 144, 6], strides = [1, 1, 1]} : vector<2x576x6xf32> to vector<2x144x6xf32>
    %12 = arith.maximumf %10, %11 : vector<2x144x6xf32>
    %13 = vector.extract_strided_slice %9 {offsets = [0, 288, 0], sizes = [2, 144, 6], strides = [1, 1, 1]} : vector<2x576x6xf32> to vector<2x144x6xf32>
    %14 = vector.extract_strided_slice %9 {offsets = [0, 432, 0], sizes = [2, 144, 6], strides = [1, 1, 1]} : vector<2x576x6xf32> to vector<2x144x6xf32>
    %15 = arith.maximumf %13, %14 : vector<2x144x6xf32>
    %16 = arith.maximumf %12, %15 : vector<2x144x6xf32>
    %17 = vector.extract_strided_slice %16 {offsets = [0, 0, 0], sizes = [2, 12, 6], strides = [1, 1, 1]} : vector<2x144x6xf32> to vector<2x12x6xf32>
    %c0_7 = arith.constant 0 : index
    %c0_8 = arith.constant 0 : index
    %c0_9 = arith.constant 0 : index
    %c0_10 = arith.constant 0 : index
    %18 = vector.load %arg13[%c0_7, %c0_8, %c0_9, %c0_10] : memref<2x12x12x6xf32, #tpu.memory_space<vmem>>, vector<2x1x12x6xf32>
    %19 = vector.shape_cast %18 : vector<2x1x12x6xf32> to vector<2x12x6xf32>
    %20 = vector.shape_cast %17 : vector<2x12x6xf32> to vector<2x1x12x6xf32>
    tpu.vector_store %arg13[%c0_7, %c0_8, %c0_9, %c0_10], %20 {strides = array<i32>} : memref<2x12x12x6xf32, #tpu.memory_space<vmem>>, vector<2x1x12x6xf32>,
    %21 = vector.extract_strided_slice %16 {offsets = [0, 12, 0], sizes = [2, 12, 6], strides = [1, 1, 1]} : vector<2x144x6xf32> to vector<2x12x6xf32>
    %c0_11 = arith.constant 0 : index
    %c1 = arith.constant 1 : index
    %c0_12 = arith.constant 0 : index
    %c0_13 = arith.constant 0 : index
    %22 = vector.load %arg13[%c0_11, %c1, %c0_12, %c0_13] : memref<2x12x12x6xf32, #tpu.memory_space<vmem>>, vector<2x1x12x6xf32>
    %23 = vector.shape_cast %22 : vector<2x1x12x6xf32> to vector<2x12x6xf32>
    %24 = vector.shape_cast %21 : vector<2x12x6xf32> to vector<2x1x12x6xf32>
    tpu.vector_store %arg13[%c0_11, %c1, %c0_12, %c0_13], %24 {strides = array<i32>} : memref<2x12x12x6xf32, #tpu.memory_space<vmem>>, vector<2x1x12x6xf32>,
    %25 = vector.extract_strided_slice %16 {offsets = [0, 24, 0], sizes = [2, 12, 6], strides = [1, 1, 1]} : vector<2x144x6xf32> to vector<2x12x6xf32>
    %c0_14 = arith.constant 0 : index
    %c2 = arith.constant 2 : index
    %c0_15 = arith.constant 0 : index
    %c0_16 = arith.constant 0 : index
    %26 = vector.load %arg13[%c0_14, %c2, %c0_15, %c0_16] : memref<2x12x12x6xf32, #tpu.memory_space<vmem>>, vector<2x1x12x6xf32>
    %27 = vector.shape_cast %26 : vector<2x1x12x6xf32> to vector<2x12x6xf32>
    %28 = vector.shape_cast %25 : vector<2x12x6xf32> to vector<2x1x12x6xf32>
    tpu.vector_store %arg13[%c0_14, %c2, %c0_15, %c0_16], %28 {strides = array<i32>} : memref<2x12x12x6xf32, #tpu.memory_space<vmem>>, vector<2x1x12x6xf32>,
    %29 = vector.extract_strided_slice %16 {offsets = [0, 36, 0], sizes = [2, 12, 6], strides = [1, 1, 1]} : vector<2x144x6xf32> to vector<2x12x6xf32>
    %c0_17 = arith.constant 0 : index
    %c3 = arith.constant 3 : index
    %c0_18 = arith.constant 0 : index
    %c0_19 = arith.constant 0 : index
    %30 = vector.load %arg13[%c0_17, %c3, %c0_18, %c0_19] : memref<2x12x12x6xf32, #tpu.memory_space<vmem>>, vector<2x1x12x6xf32>
    %31 = vector.shape_cast %30 : vector<2x1x12x6xf32> to vector<2x12x6xf32>
    %32 = vector.shape_cast %29 : vector<2x12x6xf32> to vector<2x1x12x6xf32>
    tpu.vector_store %arg13[%c0_17, %c3, %c0_18, %c0_19], %32 {strides = array<i32>} : memref<2x12x12x6xf32, #tpu.memory_space<vmem>>, vector<2x1x12x6xf32>,
    %33 = vector.extract_strided_slice %16 {offsets = [0, 48, 0], sizes = [2, 12, 6], strides = [1, 1, 1]} : vector<2x144x6xf32> to vector<2x12x6xf32>
    %c0_20 = arith.constant 0 : index
    %c4 = arith.constant 4 : index
    %c0_21 = arith.constant 0 : index
    %c0_22 = arith.constant 0 : index
    %34 = vector.load %arg13[%c0_20, %c4, %c0_21, %c0_22] : memref<2x12x12x6xf32, #tpu.memory_space<vmem>>, vector<2x1x12x6xf32>
    %35 = vector.shape_cast %34 : vector<2x1x12x6xf32> to vector<2x12x6xf32>
    %36 = vector.shape_cast %33 : vector<2x12x6xf32> to vector<2x1x12x6xf32>
    tpu.vector_store %arg13[%c0_20, %c4, %c0_21, %c0_22], %36 {strides = array<i32>} : memref<2x12x12x6xf32, #tpu.memory_space<vmem>>, vector<2x1x12x6xf32>,
    %37 = vector.extract_strided_slice %16 {offsets = [0, 60, 0], sizes = [2, 12, 6], strides = [1, 1, 1]} : vector<2x144x6xf32> to vector<2x12x6xf32>
    %c0_23 = arith.constant 0 : index
    %c5 = arith.constant 5 : index
    %c0_24 = arith.constant 0 : index
    %c0_25 = arith.constant 0 : index
    %38 = vector.load %arg13[%c0_23, %c5, %c0_24, %c0_25] : memref<2x12x12x6xf32, #tpu.memory_space<vmem>>, vector<2x1x12x6xf32>
    %39 = vector.shape_cast %38 : vector<2x1x12x6xf32> to vector<2x12x6xf32>
    %40 = vector.shape_cast %37 : vector<2x12x6xf32> to vector<2x1x12x6xf32>
    tpu.vector_store %arg13[%c0_23, %c5, %c0_24, %c0_25], %40 {strides = array<i32>} : memref<2x12x12x6xf32, #tpu.memory_space<vmem>>, vector<2x1x12x6xf32>,
    %41 = vector.extract_strided_slice %16 {offsets = [0, 72, 0], sizes = [2, 12, 6], strides = [1, 1, 1]} : vector<2x144x6xf32> to vector<2x12x6xf32>
    %c0_26 = arith.constant 0 : index
    %c6 = arith.constant 6 : index
    %c0_27 = arith.constant 0 : index
    %c0_28 = arith.constant 0 : index
    %42 = vector.load %arg13[%c0_26, %c6, %c0_27, %c0_28] : memref<2x12x12x6xf32, #tpu.memory_space<vmem>>, vector<2x1x12x6xf32>
    %43 = vector.shape_cast %42 : vector<2x1x12x6xf32> to vector<2x12x6xf32>
    %44 = vector.shape_cast %41 : vector<2x12x6xf32> to vector<2x1x12x6xf32>
    tpu.vector_store %arg13[%c0_26, %c6, %c0_27, %c0_28], %44 {strides = array<i32>} : memref<2x12x12x6xf32, #tpu.memory_space<vmem>>, vector<2x1x12x6xf32>,
    %45 = vector.extract_strided_slice %16 {offsets = [0, 84, 0], sizes = [2, 12, 6], strides = [1, 1, 1]} : vector<2x144x6xf32> to vector<2x12x6xf32>
    %c0_29 = arith.constant 0 : index
    %c7 = arith.constant 7 : index
    %c0_30 = arith.constant 0 : index
    %c0_31 = arith.constant 0 : index
    %46 = vector.load %arg13[%c0_29, %c7, %c0_30, %c0_31] : memref<2x12x12x6xf32, #tpu.memory_space<vmem>>, vector<2x1x12x6xf32>
    %47 = vector.shape_cast %46 : vector<2x1x12x6xf32> to vector<2x12x6xf32>
    %48 = vector.shape_cast %45 : vector<2x12x6xf32> to vector<2x1x12x6xf32>
    tpu.vector_store %arg13[%c0_29, %c7, %c0_30, %c0_31], %48 {strides = array<i32>} : memref<2x12x12x6xf32, #tpu.memory_space<vmem>>, vector<2x1x12x6xf32>,
    %49 = vector.extract_strided_slice %16 {offsets = [0, 96, 0], sizes = [2, 12, 6], strides = [1, 1, 1]} : vector<2x144x6xf32> to vector<2x12x6xf32>
    %c0_32 = arith.constant 0 : index
    %c8 = arith.constant 8 : index
    %c0_33 = arith.constant 0 : index
    %c0_34 = arith.constant 0 : index
    %50 = vector.load %arg13[%c0_32, %c8, %c0_33, %c0_34] : memref<2x12x12x6xf32, #tpu.memory_space<vmem>>, vector<2x1x12x6xf32>
    %51 = vector.shape_cast %50 : vector<2x1x12x6xf32> to vector<2x12x6xf32>
    %52 = vector.shape_cast %49 : vector<2x12x6xf32> to vector<2x1x12x6xf32>
    tpu.vector_store %arg13[%c0_32, %c8, %c0_33, %c0_34], %52 {strides = array<i32>} : memref<2x12x12x6xf32, #tpu.memory_space<vmem>>, vector<2x1x12x6xf32>,
    %53 = vector.extract_strided_slice %16 {offsets = [0, 108, 0], sizes = [2, 12, 6], strides = [1, 1, 1]} : vector<2x144x6xf32> to vector<2x12x6xf32>
    %c0_35 = arith.constant 0 : index
    %c9 = arith.constant 9 : index
    %c0_36 = arith.constant 0 : index
    %c0_37 = arith.constant 0 : index
    %54 = vector.load %arg13[%c0_35, %c9, %c0_36, %c0_37] : memref<2x12x12x6xf32, #tpu.memory_space<vmem>>, vector<2x1x12x6xf32>
    %55 = vector.shape_cast %54 : vector<2x1x12x6xf32> to vector<2x12x6xf32>
    %56 = vector.shape_cast %53 : vector<2x12x6xf32> to vector<2x1x12x6xf32>
    tpu.vector_store %arg13[%c0_35, %c9, %c0_36, %c0_37], %56 {strides = array<i32>} : memref<2x12x12x6xf32, #tpu.memory_space<vmem>>, vector<2x1x12x6xf32>,
    %57 = vector.extract_strided_slice %16 {offsets = [0, 120, 0], sizes = [2, 12, 6], strides = [1, 1, 1]} : vector<2x144x6xf32> to vector<2x12x6xf32>
    %c0_38 = arith.constant 0 : index
    %c10 = arith.constant 10 : index
    %c0_39 = arith.constant 0 : index
    %c0_40 = arith.constant 0 : index
    %58 = vector.load %arg13[%c0_38, %c10, %c0_39, %c0_40] : memref<2x12x12x6xf32, #tpu.memory_space<vmem>>, vector<2x1x12x6xf32>
    %59 = vector.shape_cast %58 : vector<2x1x12x6xf32> to vector<2x12x6xf32>
    %60 = vector.shape_cast %57 : vector<2x12x6xf32> to vector<2x1x12x6xf32>
    tpu.vector_store %arg13[%c0_38, %c10, %c0_39, %c0_40], %60 {strides = array<i32>} : memref<2x12x12x6xf32, #tpu.memory_space<vmem>>, vector<2x1x12x6xf32>,
    %61 = vector.extract_strided_slice %16 {offsets = [0, 132, 0], sizes = [2, 12, 6], strides = [1, 1, 1]} : vector<2x144x6xf32> to vector<2x12x6xf32>
    %c0_41 = arith.constant 0 : index
    %c11 = arith.constant 11 : index
    %c0_42 = arith.constant 0 : index
    %c0_43 = arith.constant 0 : index
    %62 = vector.load %arg13[%c0_41, %c11, %c0_42, %c0_43] : memref<2x12x12x6xf32, #tpu.memory_space<vmem>>, vector<2x1x12x6xf32>
    %63 = vector.shape_cast %62 : vector<2x1x12x6xf32> to vector<2x12x6xf32>
    %64 = vector.shape_cast %61 : vector<2x12x6xf32> to vector<2x1x12x6xf32>
    tpu.vector_store %arg13[%c0_41, %c11, %c0_42, %c0_43], %64 {strides = array<i32>} : memref<2x12x12x6xf32, #tpu.memory_space<vmem>>, vector<2x1x12x6xf32>,
    %c0_44 = arith.constant 0 : index
    %c0_45 = arith.constant 0 : index
    %c0_46 = arith.constant 0 : index
    %c0_47 = arith.constant 0 : index
    %65 = vector.load %arg13[%c0_44, %c0_45, %c0_46, %c0_47] : memref<2x12x12x6xf32, #tpu.memory_space<vmem>>, vector<2x8x8x6xf32>
    %c0_48 = arith.constant 0 : index
    %c0_49 = arith.constant 0 : index
    %c1_50 = arith.constant 1 : index
    %c0_51 = arith.constant 0 : index
    %66 = vector.load %arg13[%c0_48, %c0_49, %c1_50, %c0_51] : memref<2x12x12x6xf32, #tpu.memory_space<vmem>>, vector<2x8x8x6xf32>
    %c0_52 = arith.constant 0 : index
    %c0_53 = arith.constant 0 : index
    %c2_54 = arith.constant 2 : index
    %c0_55 = arith.constant 0 : index
    %67 = vector.load %arg13[%c0_52, %c0_53, %c2_54, %c0_55] : memref<2x12x12x6xf32, #tpu.memory_space<vmem>>, vector<2x8x8x6xf32>
    %c0_56 = arith.constant 0 : index
    %c0_57 = arith.constant 0 : index
    %c3_58 = arith.constant 3 : index
    %c0_59 = arith.constant 0 : index
    %68 = vector.load %arg13[%c0_56, %c0_57, %c3_58, %c0_59] : memref<2x12x12x6xf32, #tpu.memory_space<vmem>>, vector<2x8x8x6xf32>
    %c0_60 = arith.constant 0 : index
    %c0_61 = arith.constant 0 : index
    %c4_62 = arith.constant 4 : index
    %c0_63 = arith.constant 0 : index
    %69 = vector.load %arg13[%c0_60, %c0_61, %c4_62, %c0_63] : memref<2x12x12x6xf32, #tpu.memory_space<vmem>>, vector<2x8x8x6xf32>
    %c0_64 = arith.constant 0 : index
    %c1_65 = arith.constant 1 : index
    %c0_66 = arith.constant 0 : index
    %c0_67 = arith.constant 0 : index
    %70 = vector.load %arg13[%c0_64, %c1_65, %c0_66, %c0_67] : memref<2x12x12x6xf32, #tpu.memory_space<vmem>>, vector<2x8x8x6xf32>
    %c0_68 = arith.constant 0 : index
    %c1_69 = arith.constant 1 : index
    %c1_70 = arith.constant 1 : index
    %c0_71 = arith.constant 0 : index
    %71 = vector.load %arg13[%c0_68, %c1_69, %c1_70, %c0_71] : memref<2x12x12x6xf32, #tpu.memory_space<vmem>>, vector<2x8x8x6xf32>
    %c0_72 = arith.constant 0 : index
    %c1_73 = arith.constant 1 : index
    %c2_74 = arith.constant 2 : index
    %c0_75 = arith.constant 0 : index
    %72 = vector.load %arg13[%c0_72, %c1_73, %c2_74, %c0_75] : memref<2x12x12x6xf32, #tpu.memory_space<vmem>>, vector<2x8x8x6xf32>
    %c0_76 = arith.constant 0 : index
    %c1_77 = arith.constant 1 : index
    %c3_78 = arith.constant 3 : index
    %c0_79 = arith.constant 0 : index
    %73 = vector.load %arg13[%c0_76, %c1_77, %c3_78, %c0_79] : memref<2x12x12x6xf32, #tpu.memory_space<vmem>>, vector<2x8x8x6xf32>
    %c0_80 = arith.constant 0 : index
    %c1_81 = arith.constant 1 : index
    %c4_82 = arith.constant 4 : index
    %c0_83 = arith.constant 0 : index
    %74 = vector.load %arg13[%c0_80, %c1_81, %c4_82, %c0_83] : memref<2x12x12x6xf32, #tpu.memory_space<vmem>>, vector<2x8x8x6xf32>
    %c0_84 = arith.constant 0 : index
    %c2_85 = arith.constant 2 : index
    %c0_86 = arith.constant 0 : index
    %c0_87 = arith.constant 0 : index
    %75 = vector.load %arg13[%c0_84, %c2_85, %c0_86, %c0_87] : memref<2x12x12x6xf32, #tpu.memory_space<vmem>>, vector<2x8x8x6xf32>
    %c0_88 = arith.constant 0 : index
    %c2_89 = arith.constant 2 : index
    %c1_90 = arith.constant 1 : index
    %c0_91 = arith.constant 0 : index
    %76 = vector.load %arg13[%c0_88, %c2_89, %c1_90, %c0_91] : memref<2x12x12x6xf32, #tpu.memory_space<vmem>>, vector<2x8x8x6xf32>
    %c0_92 = arith.constant 0 : index
    %c2_93 = arith.constant 2 : index
    %c2_94 = arith.constant 2 : index
    %c0_95 = arith.constant 0 : index
    %77 = vector.load %arg13[%c0_92, %c2_93, %c2_94, %c0_95] : memref<2x12x12x6xf32, #tpu.memory_space<vmem>>, vector<2x8x8x6xf32>
    %c0_96 = arith.constant 0 : index
    %c2_97 = arith.constant 2 : index
    %c3_98 = arith.constant 3 : index
    %c0_99 = arith.constant 0 : index
    %78 = vector.load %arg13[%c0_96, %c2_97, %c3_98, %c0_99] : memref<2x12x12x6xf32, #tpu.memory_space<vmem>>, vector<2x8x8x6xf32>
    %c0_100 = arith.constant 0 : index
    %c2_101 = arith.constant 2 : index
    %c4_102 = arith.constant 4 : index
    %c0_103 = arith.constant 0 : index
    %79 = vector.load %arg13[%c0_100, %c2_101, %c4_102, %c0_103] : memref<2x12x12x6xf32, #tpu.memory_space<vmem>>, vector<2x8x8x6xf32>
    %c0_104 = arith.constant 0 : index
    %c3_105 = arith.constant 3 : index
    %c0_106 = arith.constant 0 : index
    %c0_107 = arith.constant 0 : index
    %80 = vector.load %arg13[%c0_104, %c3_105, %c0_106, %c0_107] : memref<2x12x12x6xf32, #tpu.memory_space<vmem>>, vector<2x8x8x6xf32>
    %c0_108 = arith.constant 0 : index
    %c3_109 = arith.constant 3 : index
    %c1_110 = arith.constant 1 : index
    %c0_111 = arith.constant 0 : index
    %81 = vector.load %arg13[%c0_108, %c3_109, %c1_110, %c0_111] : memref<2x12x12x6xf32, #tpu.memory_space<vmem>>, vector<2x8x8x6xf32>
    %c0_112 = arith.constant 0 : index
    %c3_113 = arith.constant 3 : index
    %c2_114 = arith.constant 2 : index
    %c0_115 = arith.constant 0 : index
    %82 = vector.load %arg13[%c0_112, %c3_113, %c2_114, %c0_115] : memref<2x12x12x6xf32, #tpu.memory_space<vmem>>, vector<2x8x8x6xf32>
    %c0_116 = arith.constant 0 : index
    %c3_117 = arith.constant 3 : index
    %c3_118 = arith.constant 3 : index
    %c0_119 = arith.constant 0 : index
    %83 = vector.load %arg13[%c0_116, %c3_117, %c3_118, %c0_119] : memref<2x12x12x6xf32, #tpu.memory_space<vmem>>, vector<2x8x8x6xf32>
    %c0_120 = arith.constant 0 : index
    %c3_121 = arith.constant 3 : index
    %c4_122 = arith.constant 4 : index
    %c0_123 = arith.constant 0 : index
    %84 = vector.load %arg13[%c0_120, %c3_121, %c4_122, %c0_123] : memref<2x12x12x6xf32, #tpu.memory_space<vmem>>, vector<2x8x8x6xf32>
    %c0_124 = arith.constant 0 : index
    %c4_125 = arith.constant 4 : index
    %c0_126 = arith.constant 0 : index
    %c0_127 = arith.constant 0 : index
    %85 = vector.load %arg13[%c0_124, %c4_125, %c0_126, %c0_127] : memref<2x12x12x6xf32, #tpu.memory_space<vmem>>, vector<2x8x8x6xf32>
    %c0_128 = arith.constant 0 : index
    %c4_129 = arith.constant 4 : index
    %c1_130 = arith.constant 1 : index
    %c0_131 = arith.constant 0 : index
    %86 = vector.load %arg13[%c0_128, %c4_129, %c1_130, %c0_131] : memref<2x12x12x6xf32, #tpu.memory_space<vmem>>, vector<2x8x8x6xf32>
    %c0_132 = arith.constant 0 : index
    %c4_133 = arith.constant 4 : index
    %c2_134 = arith.constant 2 : index
    %c0_135 = arith.constant 0 : index
    %87 = vector.load %arg13[%c0_132, %c4_133, %c2_134, %c0_135] : memref<2x12x12x6xf32, #tpu.memory_space<vmem>>, vector<2x8x8x6xf32>
    %c0_136 = arith.constant 0 : index
    %c4_137 = arith.constant 4 : index
    %c3_138 = arith.constant 3 : index
    %c0_139 = arith.constant 0 : index
    %88 = vector.load %arg13[%c0_136, %c4_137, %c3_138, %c0_139] : memref<2x12x12x6xf32, #tpu.memory_space<vmem>>, vector<2x8x8x6xf32>
    %c0_140 = arith.constant 0 : index
    %c4_141 = arith.constant 4 : index
    %c4_142 = arith.constant 4 : index
    %c0_143 = arith.constant 0 : index
    %89 = vector.load %arg13[%c0_140, %c4_141, %c4_142, %c0_143] : memref<2x12x12x6xf32, #tpu.memory_space<vmem>>, vector<2x8x8x6xf32>
    %90 = tpu.concatenate %65, %66, %67, %68, %69, %70, %71, %72, %73, %74, %75, %76, %77, %78, %79, %80 in 3 : vector<2x8x8x6xf32>, vector<2x8x8x6xf32>, vector<2x8x8x6xf32>, vector<2x8x8x6xf32>, vector<2x8x8x6xf32>, vector<2x8x8x6xf32>, vector<2x8x8x6xf32>, vector<2x8x8x6xf32>, vector<2x8x8x6xf32>, vector<2x8x8x6xf32>, vector<2x8x8x6xf32>, vector<2x8x8x6xf32>, vector<2x8x8x6xf32>, vector<2x8x8x6xf32>, vector<2x8x8x6xf32>, vector<2x8x8x6xf32> -> vector<2x8x8x96xf32>
    %91 = tpu.concatenate %81, %82, %83, %84, %85, %86, %87, %88, %89 in 3 : vector<2x8x8x6xf32>, vector<2x8x8x6xf32>, vector<2x8x8x6xf32>, vector<2x8x8x6xf32>, vector<2x8x8x6xf32>, vector<2x8x8x6xf32>, vector<2x8x8x6xf32>, vector<2x8x8x6xf32>, vector<2x8x8x6xf32> -> vector<2x8x8x54xf32>
    %92 = tpu.concatenate %90, %91 in 3 : vector<2x8x8x96xf32>, vector<2x8x8x54xf32> -> vector<2x8x8x150xf32>
    %93 = vector.shape_cast %92 : vector<2x8x8x150xf32> to vector<128x150xf32>
    %c0_144 = arith.constant 0 : index
    %c0_145 = arith.constant 0 : index
    %94 = vector.load %arg4[%c0_144, %c0_145] : memref<150x12xf32, #tpu.memory_space<vmem>>, vector<150x12xf32>
    %cst_146 = arith.constant dense<0.000000e+00> : vector<128x12xf32>
    %95 = tpu.matmul %93, %94, %cst_146 {dimension_numbers = #tpu.dot_dimension_numbers<[1], [0], [0], [1], [0, 0, 1, 1], [], []>} : vector<128x150xf32>, vector<150x12xf32>, vector<128x12xf32> -> vector<128x12xf32>
    %c0_147 = arith.constant 0 : index
    %c0_148 = arith.constant 0 : index
    %96 = vector.load %arg5[%c0_147, %c0_148] : memref<1x12xf32, #tpu.memory_space<vmem>>, vector<1x12xf32>
    %97 = vector.broadcast %96 : vector<1x12xf32> to vector<128x12xf32>
    %98 = arith.addf %95, %97 : vector<128x12xf32>
    %cst_149 = arith.constant 0.000000e+00 : f32
    %99 = vector.broadcast %cst_149 : f32 to vector<128x12xf32>
    %100 = arith.maximumf %98, %99 : vector<128x12xf32>
    %101 = vector.shape_cast %100 : vector<128x12xf32> to vector<2x8x8x12xf32>
    %102 = vector.extract_strided_slice %101 {offsets = [0, 0, 0, 0], sizes = [2, 1, 8, 12], strides = [1, 1, 1, 1]} : vector<2x8x8x12xf32> to vector<2x1x8x12xf32>
    %103 = vector.shape_cast %102 : vector<2x1x8x12xf32> to vector<2x8x12xf32>
    %104 = vector.extract_strided_slice %101 {offsets = [0, 1, 0, 0], sizes = [2, 1, 8, 12], strides = [1, 1, 1, 1]} : vector<2x8x8x12xf32> to vector<2x1x8x12xf32>
    %105 = vector.shape_cast %104 : vector<2x1x8x12xf32> to vector<2x8x12xf32>
    %106 = arith.maximumf %103, %105 : vector<2x8x12xf32>
    %107 = vector.extract_strided_slice %106 {offsets = [0, 0, 0], sizes = [2, 1, 12], strides = [1, 1, 1]} : vector<2x8x12xf32> to vector<2x1x12xf32>
    %108 = vector.shape_cast %107 : vector<2x1x12xf32> to vector<2x12xf32>
    %109 = vector.extract_strided_slice %106 {offsets = [0, 1, 0], sizes = [2, 1, 12], strides = [1, 1, 1]} : vector<2x8x12xf32> to vector<2x1x12xf32>
    %110 = vector.shape_cast %109 : vector<2x1x12xf32> to vector<2x12xf32>
    %111 = arith.maximumf %108, %110 : vector<2x12xf32>
    %112 = vector.extract_strided_slice %106 {offsets = [0, 2, 0], sizes = [2, 1, 12], strides = [1, 1, 1]} : vector<2x8x12xf32> to vector<2x1x12xf32>
    %113 = vector.shape_cast %112 : vector<2x1x12xf32> to vector<2x12xf32>
    %114 = vector.extract_strided_slice %106 {offsets = [0, 3, 0], sizes = [2, 1, 12], strides = [1, 1, 1]} : vector<2x8x12xf32> to vector<2x1x12xf32>
    %115 = vector.shape_cast %114 : vector<2x1x12xf32> to vector<2x12xf32>
    %116 = arith.maximumf %113, %115 : vector<2x12xf32>
    %117 = vector.extract_strided_slice %106 {offsets = [0, 4, 0], sizes = [2, 1, 12], strides = [1, 1, 1]} : vector<2x8x12xf32> to vector<2x1x12xf32>
    %118 = vector.shape_cast %117 : vector<2x1x12xf32> to vector<2x12xf32>
    %119 = vector.extract_strided_slice %106 {offsets = [0, 5, 0], sizes = [2, 1, 12], strides = [1, 1, 1]} : vector<2x8x12xf32> to vector<2x1x12xf32>
    %120 = vector.shape_cast %119 : vector<2x1x12xf32> to vector<2x12xf32>
    %121 = arith.maximumf %118, %120 : vector<2x12xf32>
    %122 = vector.extract_strided_slice %106 {offsets = [0, 6, 0], sizes = [2, 1, 12], strides = [1, 1, 1]} : vector<2x8x12xf32> to vector<2x1x12xf32>
    %123 = vector.shape_cast %122 : vector<2x1x12xf32> to vector<2x12xf32>
    %124 = vector.extract_strided_slice %106 {offsets = [0, 7, 0], sizes = [2, 1, 12], strides = [1, 1, 1]} : vector<2x8x12xf32> to vector<2x1x12xf32>
    %125 = vector.shape_cast %124 : vector<2x1x12xf32> to vector<2x12xf32>
    %126 = arith.maximumf %123, %125 : vector<2x12xf32>
    %127 = vector.extract_strided_slice %101 {offsets = [0, 2, 0, 0], sizes = [2, 1, 8, 12], strides = [1, 1, 1, 1]} : vector<2x8x8x12xf32> to vector<2x1x8x12xf32>
    %128 = vector.shape_cast %127 : vector<2x1x8x12xf32> to vector<2x8x12xf32>
    %129 = vector.extract_strided_slice %101 {offsets = [0, 3, 0, 0], sizes = [2, 1, 8, 12], strides = [1, 1, 1, 1]} : vector<2x8x8x12xf32> to vector<2x1x8x12xf32>
    %130 = vector.shape_cast %129 : vector<2x1x8x12xf32> to vector<2x8x12xf32>
    %131 = arith.maximumf %128, %130 : vector<2x8x12xf32>
    %132 = vector.extract_strided_slice %131 {offsets = [0, 0, 0], sizes = [2, 1, 12], strides = [1, 1, 1]} : vector<2x8x12xf32> to vector<2x1x12xf32>
    %133 = vector.shape_cast %132 : vector<2x1x12xf32> to vector<2x12xf32>
    %134 = vector.extract_strided_slice %131 {offsets = [0, 1, 0], sizes = [2, 1, 12], strides = [1, 1, 1]} : vector<2x8x12xf32> to vector<2x1x12xf32>
    %135 = vector.shape_cast %134 : vector<2x1x12xf32> to vector<2x12xf32>
    %136 = arith.maximumf %133, %135 : vector<2x12xf32>
    %137 = vector.extract_strided_slice %131 {offsets = [0, 2, 0], sizes = [2, 1, 12], strides = [1, 1, 1]} : vector<2x8x12xf32> to vector<2x1x12xf32>
    %138 = vector.shape_cast %137 : vector<2x1x12xf32> to vector<2x12xf32>
    %139 = vector.extract_strided_slice %131 {offsets = [0, 3, 0], sizes = [2, 1, 12], strides = [1, 1, 1]} : vector<2x8x12xf32> to vector<2x1x12xf32>
    %140 = vector.shape_cast %139 : vector<2x1x12xf32> to vector<2x12xf32>
    %141 = arith.maximumf %138, %140 : vector<2x12xf32>
    %142 = vector.extract_strided_slice %131 {offsets = [0, 4, 0], sizes = [2, 1, 12], strides = [1, 1, 1]} : vector<2x8x12xf32> to vector<2x1x12xf32>
    %143 = vector.shape_cast %142 : vector<2x1x12xf32> to vector<2x12xf32>
    %144 = vector.extract_strided_slice %131 {offsets = [0, 5, 0], sizes = [2, 1, 12], strides = [1, 1, 1]} : vector<2x8x12xf32> to vector<2x1x12xf32>
    %145 = vector.shape_cast %144 : vector<2x1x12xf32> to vector<2x12xf32>
    %146 = arith.maximumf %143, %145 : vector<2x12xf32>
    %147 = vector.extract_strided_slice %131 {offsets = [0, 6, 0], sizes = [2, 1, 12], strides = [1, 1, 1]} : vector<2x8x12xf32> to vector<2x1x12xf32>
    %148 = vector.shape_cast %147 : vector<2x1x12xf32> to vector<2x12xf32>
    %149 = vector.extract_strided_slice %131 {offsets = [0, 7, 0], sizes = [2, 1, 12], strides = [1, 1, 1]} : vector<2x8x12xf32> to vector<2x1x12xf32>
    %150 = vector.shape_cast %149 : vector<2x1x12xf32> to vector<2x12xf32>
    %151 = arith.maximumf %148, %150 : vector<2x12xf32>
    %152 = vector.extract_strided_slice %101 {offsets = [0, 4, 0, 0], sizes = [2, 1, 8, 12], strides = [1, 1, 1, 1]} : vector<2x8x8x12xf32> to vector<2x1x8x12xf32>
    %153 = vector.shape_cast %152 : vector<2x1x8x12xf32> to vector<2x8x12xf32>
    %154 = vector.extract_strided_slice %101 {offsets = [0, 5, 0, 0], sizes = [2, 1, 8, 12], strides = [1, 1, 1, 1]} : vector<2x8x8x12xf32> to vector<2x1x8x12xf32>
    %155 = vector.shape_cast %154 : vector<2x1x8x12xf32> to vector<2x8x12xf32>
    %156 = arith.maximumf %153, %155 : vector<2x8x12xf32>
    %157 = vector.extract_strided_slice %156 {offsets = [0, 0, 0], sizes = [2, 1, 12], strides = [1, 1, 1]} : vector<2x8x12xf32> to vector<2x1x12xf32>
    %158 = vector.shape_cast %157 : vector<2x1x12xf32> to vector<2x12xf32>
    %159 = vector.extract_strided_slice %156 {offsets = [0, 1, 0], sizes = [2, 1, 12], strides = [1, 1, 1]} : vector<2x8x12xf32> to vector<2x1x12xf32>
    %160 = vector.shape_cast %159 : vector<2x1x12xf32> to vector<2x12xf32>
    %161 = arith.maximumf %158, %160 : vector<2x12xf32>
    %162 = vector.extract_strided_slice %156 {offsets = [0, 2, 0], sizes = [2, 1, 12], strides = [1, 1, 1]} : vector<2x8x12xf32> to vector<2x1x12xf32>
    %163 = vector.shape_cast %162 : vector<2x1x12xf32> to vector<2x12xf32>
    %164 = vector.extract_strided_slice %156 {offsets = [0, 3, 0], sizes = [2, 1, 12], strides = [1, 1, 1]} : vector<2x8x12xf32> to vector<2x1x12xf32>
    %165 = vector.shape_cast %164 : vector<2x1x12xf32> to vector<2x12xf32>
    %166 = arith.maximumf %163, %165 : vector<2x12xf32>
    %167 = vector.extract_strided_slice %156 {offsets = [0, 4, 0], sizes = [2, 1, 12], strides = [1, 1, 1]} : vector<2x8x12xf32> to vector<2x1x12xf32>
    %168 = vector.shape_cast %167 : vector<2x1x12xf32> to vector<2x12xf32>
    %169 = vector.extract_strided_slice %156 {offsets = [0, 5, 0], sizes = [2, 1, 12], strides = [1, 1, 1]} : vector<2x8x12xf32> to vector<2x1x12xf32>
    %170 = vector.shape_cast %169 : vector<2x1x12xf32> to vector<2x12xf32>
    %171 = arith.maximumf %168, %170 : vector<2x12xf32>
    %172 = vector.extract_strided_slice %156 {offsets = [0, 6, 0], sizes = [2, 1, 12], strides = [1, 1, 1]} : vector<2x8x12xf32> to vector<2x1x12xf32>
    %173 = vector.shape_cast %172 : vector<2x1x12xf32> to vector<2x12xf32>
    %174 = vector.extract_strided_slice %156 {offsets = [0, 7, 0], sizes = [2, 1, 12], strides = [1, 1, 1]} : vector<2x8x12xf32> to vector<2x1x12xf32>
    %175 = vector.shape_cast %174 : vector<2x1x12xf32> to vector<2x12xf32>
    %176 = arith.maximumf %173, %175 : vector<2x12xf32>
    %177 = vector.extract_strided_slice %101 {offsets = [0, 6, 0, 0], sizes = [2, 1, 8, 12], strides = [1, 1, 1, 1]} : vector<2x8x8x12xf32> to vector<2x1x8x12xf32>
    %178 = vector.shape_cast %177 : vector<2x1x8x12xf32> to vector<2x8x12xf32>
    %179 = vector.extract_strided_slice %101 {offsets = [0, 7, 0, 0], sizes = [2, 1, 8, 12], strides = [1, 1, 1, 1]} : vector<2x8x8x12xf32> to vector<2x1x8x12xf32>
    %180 = vector.shape_cast %179 : vector<2x1x8x12xf32> to vector<2x8x12xf32>
    %181 = arith.maximumf %178, %180 : vector<2x8x12xf32>
    %182 = vector.extract_strided_slice %181 {offsets = [0, 0, 0], sizes = [2, 1, 12], strides = [1, 1, 1]} : vector<2x8x12xf32> to vector<2x1x12xf32>
    %183 = vector.shape_cast %182 : vector<2x1x12xf32> to vector<2x12xf32>
    %184 = vector.extract_strided_slice %181 {offsets = [0, 1, 0], sizes = [2, 1, 12], strides = [1, 1, 1]} : vector<2x8x12xf32> to vector<2x1x12xf32>
    %185 = vector.shape_cast %184 : vector<2x1x12xf32> to vector<2x12xf32>
    %186 = arith.maximumf %183, %185 : vector<2x12xf32>
    %187 = vector.extract_strided_slice %181 {offsets = [0, 2, 0], sizes = [2, 1, 12], strides = [1, 1, 1]} : vector<2x8x12xf32> to vector<2x1x12xf32>
    %188 = vector.shape_cast %187 : vector<2x1x12xf32> to vector<2x12xf32>
    %189 = vector.extract_strided_slice %181 {offsets = [0, 3, 0], sizes = [2, 1, 12], strides = [1, 1, 1]} : vector<2x8x12xf32> to vector<2x1x12xf32>
    %190 = vector.shape_cast %189 : vector<2x1x12xf32> to vector<2x12xf32>
    %191 = arith.maximumf %188, %190 : vector<2x12xf32>
    %192 = vector.extract_strided_slice %181 {offsets = [0, 4, 0], sizes = [2, 1, 12], strides = [1, 1, 1]} : vector<2x8x12xf32> to vector<2x1x12xf32>
    %193 = vector.shape_cast %192 : vector<2x1x12xf32> to vector<2x12xf32>
    %194 = vector.extract_strided_slice %181 {offsets = [0, 5, 0], sizes = [2, 1, 12], strides = [1, 1, 1]} : vector<2x8x12xf32> to vector<2x1x12xf32>
    %195 = vector.shape_cast %194 : vector<2x1x12xf32> to vector<2x12xf32>
    %196 = arith.maximumf %193, %195 : vector<2x12xf32>
    %197 = vector.extract_strided_slice %181 {offsets = [0, 6, 0], sizes = [2, 1, 12], strides = [1, 1, 1]} : vector<2x8x12xf32> to vector<2x1x12xf32>
    %198 = vector.shape_cast %197 : vector<2x1x12xf32> to vector<2x12xf32>
    %199 = vector.extract_strided_slice %181 {offsets = [0, 7, 0], sizes = [2, 1, 12], strides = [1, 1, 1]} : vector<2x8x12xf32> to vector<2x1x12xf32>
    %200 = vector.shape_cast %199 : vector<2x1x12xf32> to vector<2x12xf32>
    %201 = arith.maximumf %198, %200 : vector<2x12xf32>
    %202 = tpu.concatenate %111, %116, %121, %126, %136, %141, %146, %151, %161, %166, %171, %176, %186, %191, %196, %201 in 1 : vector<2x12xf32>, vector<2x12xf32>, vector<2x12xf32>, vector<2x12xf32>, vector<2x12xf32>, vector<2x12xf32>, vector<2x12xf32>, vector<2x12xf32>, vector<2x12xf32>, vector<2x12xf32>, vector<2x12xf32>, vector<2x12xf32>, vector<2x12xf32>, vector<2x12xf32>, vector<2x12xf32>, vector<2x12xf32> -> vector<2x192xf32>
    %c0_150 = arith.constant 0 : index
    %c0_151 = arith.constant 0 : index
    %203 = vector.load %arg6[%c0_150, %c0_151] : memref<192x120xf32, #tpu.memory_space<vmem>>, vector<192x120xf32>
    %cst_152 = arith.constant dense<0.000000e+00> : vector<2x120xf32>
    %204 = tpu.matmul %202, %203, %cst_152 {dimension_numbers = #tpu.dot_dimension_numbers<[1], [0], [0], [1], [0, 0, 1, 1], [], []>} : vector<2x192xf32>, vector<192x120xf32>, vector<2x120xf32> -> vector<2x120xf32>
    %c0_153 = arith.constant 0 : index
    %c0_154 = arith.constant 0 : index
    %205 = vector.load %arg7[%c0_153, %c0_154] : memref<1x120xf32, #tpu.memory_space<vmem>>, vector<1x120xf32>
    %206 = vector.broadcast %205 : vector<1x120xf32> to vector<2x120xf32>
    %207 = arith.addf %204, %206 : vector<2x120xf32>
    %cst_155 = arith.constant 0.000000e+00 : f32
    %208 = vector.broadcast %cst_155 : f32 to vector<2x120xf32>
    %209 = arith.maximumf %207, %208 : vector<2x120xf32>
    %c0_156 = arith.constant 0 : index
    %c0_157 = arith.constant 0 : index
    %210 = vector.load %arg8[%c0_156, %c0_157] : memref<120x60xf32, #tpu.memory_space<vmem>>, vector<120x60xf32>
    %cst_158 = arith.constant dense<0.000000e+00> : vector<2x60xf32>
    %211 = tpu.matmul %209, %210, %cst_158 {dimension_numbers = #tpu.dot_dimension_numbers<[1], [0], [0], [1], [0, 0, 1, 1], [], []>} : vector<2x120xf32>, vector<120x60xf32>, vector<2x60xf32> -> vector<2x60xf32>
    %c0_159 = arith.constant 0 : index
    %c0_160 = arith.constant 0 : index
    %212 = vector.load %arg9[%c0_159, %c0_160] : memref<1x60xf32, #tpu.memory_space<vmem>>, vector<1x60xf32>
    %213 = vector.broadcast %212 : vector<1x60xf32> to vector<2x60xf32>
    %214 = arith.addf %211, %213 : vector<2x60xf32>
    %cst_161 = arith.constant 0.000000e+00 : f32
    %215 = vector.broadcast %cst_161 : f32 to vector<2x60xf32>
    %216 = arith.maximumf %214, %215 : vector<2x60xf32>
    %c0_162 = arith.constant 0 : index
    %c0_163 = arith.constant 0 : index
    %217 = vector.load %arg10[%c0_162, %c0_163] : memref<60x128xf32, #tpu.memory_space<vmem>>, vector<60x128xf32>
    %cst_164 = arith.constant dense<0.000000e+00> : vector<2x128xf32>
    %218 = tpu.matmul %216, %217, %cst_164 {dimension_numbers = #tpu.dot_dimension_numbers<[1], [0], [0], [1], [0, 0, 1, 1], [], []>} : vector<2x60xf32>, vector<60x128xf32>, vector<2x128xf32> -> vector<2x128xf32>
    %c0_165 = arith.constant 0 : index
    %c0_166 = arith.constant 0 : index
    %219 = vector.load %arg11[%c0_165, %c0_166] : memref<1x128xf32, #tpu.memory_space<vmem>>, vector<1x128xf32>
    %220 = vector.broadcast %219 : vector<1x128xf32> to vector<2x128xf32>
    %221 = arith.addf %218, %220 : vector<2x128xf32>
    %c0_167 = arith.constant 0 : index
    %c0_168 = arith.constant 0 : index
    %222 = vector.load %arg12[%c0_167, %c0_168] : memref<2x128xf32, #tpu.memory_space<vmem>>, vector<2x128xf32>
    tpu.vector_store %arg12[%c0_167, %c0_168], %221 {strides = array<i32>} : memref<2x128xf32, #tpu.memory_space<vmem>>, vector<2x128xf32>,
    return
  }
  func.func @transform_0(%arg0: i32) -> (i32, i32, i32) {
    %c0_i32 = arith.constant 0 : i32
    %c0_i32_0 = arith.constant 0 : i32
    %c0_i32_1 = arith.constant 0 : i32
    return %arg0, %c0_i32, %c0_i32_0 : i32, i32, i32
  }
  func.func @transform_1(%arg0: i32) -> (i32, i32) {
    %c0_i32 = arith.constant 0 : i32
    %c0_i32_0 = arith.constant 0 : i32
    %c0_i32_1 = arith.constant 0 : i32
    return %c0_i32, %c0_i32_0 : i32, i32
  }
  func.func @transform_2(%arg0: i32) -> (i32, i32) {
    %c0_i32 = arith.constant 0 : i32
    %c0_i32_0 = arith.constant 0 : i32
    %c0_i32_1 = arith.constant 0 : i32
    return %c0_i32, %c0_i32_0 : i32, i32
  }
  func.func @transform_3(%arg0: i32) -> (i32, i32) {
    %c0_i32 = arith.constant 0 : i32
    %c0_i32_0 = arith.constant 0 : i32
    %c0_i32_1 = arith.constant 0 : i32
    return %c0_i32, %c0_i32_0 : i32, i32
  }
  func.func @transform_4(%arg0: i32) -> (i32, i32) {
    %c0_i32 = arith.constant 0 : i32
    %c0_i32_0 = arith.constant 0 : i32
    %c0_i32_1 = arith.constant 0 : i32
    return %c0_i32, %c0_i32_0 : i32, i32
  }
  func.func @transform_5(%arg0: i32) -> (i32, i32) {
    %c0_i32 = arith.constant 0 : i32
    %c0_i32_0 = arith.constant 0 : i32
    %c0_i32_1 = arith.constant 0 : i32
    return %c0_i32, %c0_i32_0 : i32, i32
  }
  func.func @transform_6(%arg0: i32) -> (i32, i32) {
    %c0_i32 = arith.constant 0 : i32
    %c0_i32_0 = arith.constant 0 : i32
    %c0_i32_1 = arith.constant 0 : i32
    return %c0_i32, %c0_i32_0 : i32, i32
  }
  func.func @transform_7(%arg0: i32) -> (i32, i32) {
    %c0_i32 = arith.constant 0 : i32
    %c0_i32_0 = arith.constant 0 : i32
    %c0_i32_1 = arith.constant 0 : i32
    return %c0_i32, %c0_i32_0 : i32, i32
  }
  func.func @transform_8(%arg0: i32) -> (i32, i32) {
    %c0_i32 = arith.constant 0 : i32
    %c0_i32_0 = arith.constant 0 : i32
    %c0_i32_1 = arith.constant 0 : i32
    return %c0_i32, %c0_i32_0 : i32, i32
  }
  func.func @transform_9(%arg0: i32) -> (i32, i32) {
    %c0_i32 = arith.constant 0 : i32
    %c0_i32_0 = arith.constant 0 : i32
    %c0_i32_1 = arith.constant 0 : i32
    return %c0_i32, %c0_i32_0 : i32, i32
  }
  func.func @transform_10(%arg0: i32) -> (i32, i32) {
    %c0_i32 = arith.constant 0 : i32
    %c0_i32_0 = arith.constant 0 : i32
    %c0_i32_1 = arith.constant 0 : i32
    return %c0_i32, %c0_i32_0 : i32, i32
  }
  func.func @transform_11(%arg0: i32) -> (i32, i32) {
    %c0_i32 = arith.constant 0 : i32
    %c0_i32_0 = arith.constant 0 : i32
    return %arg0, %c0_i32 : i32, i32
  }
}

</mosaic_0001>

<bundles_post_ra>
// kernel: network_forward.1
= control target key start
LH: loop header
LB: loop body
LE: loop exit
PB: predicated region body
PF: predicated region fallthrough
CT: control target
= control target key end

     0   :  { %vm627_vm0 = vcmask 1040384   ;;  %vm194_vm1 = vcmask 203776   ;;  %s9457_s0 = inlined_call_operand.vmem [shape: f32[2,576,25], index: 0, kind: input, shape index: {}]   ;;  %s9458_s1 = inlined_call_operand.vmem [shape: f32[25,6], index: 1, kind: input, shape index: {}]   ;;  %s9459_s2 = inlined_call_operand.vmem [shape: f32[1,6], index: 2, kind: input, shape index: {}]   ;;  %s9460_s3 = inlined_call_operand.vmem [shape: f32[150,12], index: 3, kind: input, shape index: {}]   ;;  %s9461_s4 = inlined_call_operand.vmem [shape: f32[1,12], index: 4, kind: input, shape index: {}]   ;;  %s9462_s5 = inlined_call_operand.vmem [shape: f32[192,120], index: 5, kind: input, shape index: {}]   ;;  %s9463_s6 = inlined_call_operand.vmem [shape: f32[1,120], index: 6, kind: input, shape index: {}]   ;;  %s9464_s7 = inlined_call_operand.vmem [shape: f32[120,60], index: 7, kind: input, shape index: {}]   ;;  %s9465_s8 = inlined_call_operand.vmem [shape: f32[1,60], index: 8, kind: input, shape index: {}]   ;;  %s9466_s9 = inlined_call_operand.vmem [shape: f32[60,128], index: 9, kind: input, shape index: {}]   ;;  %s9467_s10 = inlined_call_operand.vmem [shape: f32[1,128], index: 10, kind: input, shape index: {}]   ;;  %s9468_s11 = inlined_call_operand.hbm [shape: f32[2,128], index: 11, kind: output, shape index: {}]  }
   0x1   :  { %v186_v0 = vld [vmem:[%s9458_s1 + $0x18] sm:$0x1]  ;;  %v185_v1 = vld [vmem:[%s9458_s1 + $0x10] sm:$0xff]  ;;  %v39_v2 = vld [vmem:[%s9457_s0] sm:$0xff] }
   0x2   :  { %5103 = vmatprep.subr.msk.mxu0 %vm627_vm0, %v186_v0  ;;  %5379 = vmatprep.subr.msk.mxu1 %vm627_vm0, %v186_v0  ;;  %v184_v3 = vld [vmem:[%s9458_s1 + $0x8] sm:$0xff]  ;;  %v183_v4 = vld [vmem:[%s9458_s1] sm:$0xff]  ;;  %v41_v6 = vld [vmem:[%s9457_s0 + $0x10] sm:$0xff] }
   0x3   :  { %5104 = vmatpush3.msk.msra.mxu0 %vm627_vm0, %v186_v0  ;;  %5111 = vmatprep.mubr.msk.f32.mxu0 %vm194_vm1, %v39_v2  ;;  %v40_v5 = vld [vmem:[%s9457_s0 + $0x8] sm:$0xff]  ;;  %v42_v7 = vld [vmem:[%s9457_s0 + $0x18] sm:$0xff]  ;;  %v43_v8 = vld [vmem:[%s9457_s0 + $0x20] sm:$0xff] }
   0x4   :  { %5105 = vmatprep.subr.mxu0 %v185_v1  ;;  %5383 = vmatpush3.msk.msra.mxu1 %vm627_vm0, %v186_v0  ;;  %v44_v9 = vld [vmem:[%s9457_s0 + $0x28] sm:$0xff]  ;;  %v45_v10 = vld [vmem:[%s9457_s0 + $0x30] sm:$0xff]  ;;  %v46_v11 = vld [vmem:[%s9457_s0 + $0x38] sm:$0xff] }
   0x5   :  { %5106 = vmatpush3.msra.mxu0 %v185_v1  ;;  %5380 = vmatprep.subr.mxu1 %v185_v1  ;;  %v47_v12 = vld [vmem:[%s9457_s0 + $0x40] sm:$0xff]  ;;  %v48_v13 = vld [vmem:[%s9457_s0 + $0x48] sm:$0xff]  ;;  %v49_v14 = vld [vmem:[%s9457_s0 + $0x50] sm:$0xff] }
   0x6   :  { %5107 = vmatprep.subr.mxu0 %v184_v3  ;;  %5384 = vmatpush3.msra.mxu1 %v185_v1 }
   0x7   :  { %5108 = vmatpush3.msra.mxu0 %v184_v3  ;;  %5381 = vmatprep.subr.mxu1 %v184_v3 }
   0x8   :  { %5109 = vmatprep.subr.mxu0 %v183_v4  ;;  %5385 = vmatpush3.msra.mxu1 %v184_v3 }
   0x9   :  { %5110 = vmatpush3.msra.mxu0 %v183_v4  ;;  %5382 = vmatprep.subr.mxu1 %v183_v4 }
   0xa   :  { %5112 = vmatmul.mubr.msk.f32.vlgmr.msra.gmra.mxu0 %vm194_vm1, %v40_v5  ;;  %5386 = vmatpush3.msra.mxu1 %v183_v4 }
   0xb   :  { %5114 = vmatprep.mubr.msk.f32.mxu0 %vm194_vm1, %v41_v6 }
   0xe   :  { %5115 = vmatmul.mubr.msk.f32.gmra.mxu0 %vm194_vm1, %v42_v7 }
   0xf   :  { %5117 = vmatprep.mubr.msk.f32.mxu0 %vm194_vm1, %v43_v8 }
  0x12   :  { %5118 = vmatmul.mubr.msk.f32.gmra.mxu0 %vm194_vm1, %v44_v9 }
  0x13   :  { %5120 = vmatprep.mubr.msk.f32.mxu0 %vm194_vm1, %v45_v10 }
  0x16   :  { %5121 = vmatmul.mubr.msk.f32.gmra.mxu0 %vm194_vm1, %v46_v11 }
  0x17   :  { %5123 = vmatprep.mubr.msk.f32.mxu0 %vm194_vm1, %v47_v12 }
  0x1a   :  { %5124 = vmatmul.mubr.msk.f32.gmra.mxu0 %vm194_vm1, %v48_v13 }
  0x1b   :  { %16 = vsyncpa [#allocation4], 0  ;;  %5126 = vmatprep.mubr.msk.f32.mxu0 %vm194_vm1, %v49_v14  ;;  %v50_v15 = vld [vmem:[%s9457_s0 + $0x58] sm:$0xff]  ;;  %v51_v16 = vld [vmem:[%s9457_s0 + $0x60] sm:$0xff]  ;;  %vm1670_vm2 = vcmask 44032   ;;  %vm1675_vm3 = vcmask 48132  }
  0x1c   :  { %v52_v17 = vld [vmem:[%s9457_s0 + $0x68] sm:$0xff]  ;;  %v53_v18 = vld [vmem:[%s9457_s0 + $0x70] sm:$0xff]  ;;  %v54_v19 = vld [vmem:[%s9457_s0 + $0x78] sm:$0xff]  ;;  %vm1668_vm4 = vcmask 48128   ;;  %s6040_s14 = smov 12   ;;  %s6041_s15 = smov 6  }
  0x1d   :  { %v55_v20 = vld [vmem:[%s9457_s0 + $0x80] sm:$0xff]  ;;  %v56_v21 = vld [vmem:[%s9457_s0 + $0x88] sm:$0xff]  ;;  %v57_v22 = vld [vmem:[%s9457_s0 + $0x90] sm:$0xff]  ;;  %s6042_s16 = smov 24   ;;  %s6043_s17 = smov 18   ;;  %vm3106_vm5 = vcmask 97280  }
  0x1e   :  { %5127 = vmatmul.mubr.msk.f32.gmra.mxu0 %vm194_vm1, %v50_v15  ;;  %v58_v23 = vld [vmem:[%s9457_s0 + $0x98] sm:$0xff]  ;;  %v59_v24 = vld [vmem:[%s9457_s0 + $0xa0] sm:$0xff]  ;;  %v60_v25 = vld [vmem:[%s9457_s0 + $0xa8] sm:$0xff]  ;;  %s6044_s18 = smov 30   ;;  %s6045_s19 = smov 36   ;;  %vm3123_vm6 = vcmask 146432  }
  0x1f   :  { %5129 = vmatprep.mubr.msk.f32.mxu0 %vm194_vm1, %v51_v16  ;;  %v61_v26 = vld [vmem:[%s9457_s0 + $0xb0] sm:$0xff]  ;;  %v62_v27 = vld [vmem:[%s9457_s0 + $0xb8] sm:$0xff]  ;;  %v63_v28 = vld [vmem:[%s9457_s0 + $0xc0] sm:$0xff]  ;;  %s6046_s20 = smov 48   ;;  %s6047_s21 = smov 54   ;;  %vm3140_vm7 = vcmask 195584  }
  0x20   :  { %v64_v29 = vld [vmem:[%s9457_s0 + $0xc8] sm:$0xff]  ;;  %v65_v30 = vld [vmem:[%s9457_s0 + $0xd0] sm:$0xff]  ;;  %v66_v31 = vld [vmem:[%s9457_s0 + $0xd8] sm:$0xff]  ;;  %s6048_s22 = smov 42   ;;  %s6049_s23 = smov 60   ;;  %vm4124_vm8 = vcmask 1045504  }
  0x21   :  { %v67_v32 = vld [vmem:[%s9457_s0 + $0xe0] sm:$0xff]  ;;  %v68_v33 = vld [vmem:[%s9457_s0 + $0xe8] sm:$0xff]  ;;  %v69_v34 = vld [vmem:[%s9457_s0 + $0xf0] sm:$0xff]  ;;  %s6050_s24 = smov 66   ;;  %s6051_s25 = smov 72   ;;  %vm3157_vm9 = vcmask 244736  }
  0x22   :  { %5130 = vmatmul.mubr.msk.f32.gmra.mxu0 %vm194_vm1, %v52_v17  ;;  %v70_v35 = vld [vmem:[%s9457_s0 + $0xf8] sm:$0xff]  ;;  %v71_v36 = vld [vmem:[%s9457_s0 + $0x100] sm:$0xff]  ;;  %v72_v37 = vld [vmem:[%s9457_s0 + $0x108] sm:$0xff]  ;;  %s6052_s26 = smov 78   ;;  %s6053_s27 = smov 84   ;;  %vm3174_vm10 = vcmask 293888  }
  0x23   :  { %5132 = vmatprep.mubr.msk.f32.mxu0 %vm194_vm1, %v53_v18  ;;  %v73_v38 = vld [vmem:[%s9457_s0 + $0x110] sm:$0xff]  ;;  %v74_v39 = vld [vmem:[%s9457_s0 + $0x118] sm:$0xff]  ;;  %v75_v40 = vld [vmem:[%s9457_s0 + $0x120] sm:$0xff]  ;;  %vm9554_vm11 = vcmask 343040   ;;  %vm3208_vm12 = vcmask 392192   ;;  %vm3225_vm13 = vcmask 441344  }
  0x24   :  { %v76_v41 = vld [vmem:[%s9457_s0 + $0x128] sm:$0xff]  ;;  %v77_v42 = vld [vmem:[%s9457_s0 + $0x130] sm:$0xff]  ;;  %v78_v43 = vld [vmem:[%s9457_s0 + $0x138] sm:$0xff]  ;;  %vm3242_vm14 = vcmask 490496   ;;  %vm3259_vm15 = vcmask 539648   ;;  %vm3276_vm0 = vcmask 588800  }
  0x25   :  { %v79_v44 = vld [vmem:[%s9457_s0 + $0x140] sm:$0xff]  ;;  %v141_v45 = vld [vmem:[%s9457_s0 + $0x330] sm:$0xff]  ;;  %v142_v46 = vld [vmem:[%s9457_s0 + $0x338] sm:$0xff]  ;;  %s6059_s13 = smov 16   ;;  %s6060_s28 = smov 108  }
  0x26   :  { %5133 = vmatmul.mubr.msk.f32.gmra.mxu0 %vm194_vm1, %v54_v19  ;;  %5264 = vmatprep.mubr.msk.f32.mxu1 %vm194_vm1, %v141_v45  ;;  %v80_v47 = vld [vmem:[%s9457_s0 + $0x148] sm:$0xff]  ;;  %v81_v48 = vld [vmem:[%s9457_s0 + $0x150] sm:$0xff]  ;;  %v143_v49 = vld [vmem:[%s9457_s0 + $0x340] sm:$0xff]  ;;  %s6063_s29 = smov 52   ;;  %s6065_s30 = smov [#allocation3]  }
  0x27   :  { %5135 = vmatprep.mubr.msk.f32.mxu0 %vm194_vm1, %v55_v20  ;;  %5265 = vmatmul.mubr.msk.f32.vlgmr.msra.gmra.mxu1 %vm194_vm1, %v142_v46  ;;  %v144_v50 = vld [vmem:[%s9457_s0 + $0x348] sm:$0xff]  ;;  %v82_v51 = vld [vmem:[%s9457_s0 + $0x158] sm:$0xff]  ;;  %v83_v52 = vld [vmem:[%s9457_s0 + $0x160] sm:$0xff] }
  0x28   :  { %5267 = vmatprep.mubr.msk.f32.mxu1 %vm194_vm1, %v143_v49  ;;  %v145_v53 = vld [vmem:[%s9457_s0 + $0x350] sm:$0xff]  ;;  %v146_v54 = vld [vmem:[%s9457_s0 + $0x358] sm:$0xff]  ;;  %v84_v55 = vld [vmem:[%s9457_s0 + $0x168] sm:$0xff] }
  0x29   :  { %v85_v56 = vld [vmem:[%s9457_s0 + $0x170] sm:$0xff]  ;;  %v147_v57 = vld [vmem:[%s9457_s0 + $0x360] sm:$0xff]  ;;  %v148_v58 = vld [vmem:[%s9457_s0 + $0x368] sm:$0xff] }
  0x2a   :  { %5136 = vmatmul.mubr.msk.f32.gmra.mxu0 %vm194_vm1, %v56_v21  ;;  %v86_v59 = vld [vmem:[%s9457_s0 + $0x178] sm:$0xff]  ;;  %v87_v60 = vld [vmem:[%s9457_s0 + $0x180] sm:$0xff]  ;;  %v149_v61 = vld [vmem:[%s9457_s0 + $0x370] sm:$0xff] }
  0x2b   :  { %5138 = vmatprep.mubr.msk.f32.mxu0 %vm194_vm1, %v57_v22  ;;  %5268 = vmatmul.mubr.msk.f32.gmra.mxu1 %vm194_vm1, %v144_v50  ;;  %v150_v62 = vld [vmem:[%s9457_s0 + $0x378] sm:$0xff]  ;;  %v88_v63 = vld [vmem:[%s9457_s0 + $0x188] sm:$0xff]  ;;  %v89_v0 = vld [vmem:[%s9457_s0 + $0x190] sm:$0xff] }
  0x2c   :  { %5270 = vmatprep.mubr.msk.f32.mxu1 %vm194_vm1, %v145_v53  ;;  %v151_v1 = vld [vmem:[%s9457_s0 + $0x380] sm:$0xff]  ;;  %v152_v2 = vld [vmem:[%s9457_s0 + $0x388] sm:$0xff]  ;;  %v90_v3 = vld [vmem:[%s9457_s0 + $0x198] sm:$0xff] }
  0x2d   :  { %v91_v4 = vld [vmem:[%s9457_s0 + $0x1a0] sm:$0xff]  ;;  %v153_v5 = vld [vmem:[%s9457_s0 + $0x390] sm:$0xff]  ;;  %v154_v6 = vld [vmem:[%s9457_s0 + $0x398] sm:$0xff] }
  0x2e   :  { %5139 = vmatmul.mubr.msk.f32.gmra.mxu0 %vm194_vm1, %v58_v23  ;;  %v92_v7 = vld [vmem:[%s9457_s0 + $0x1a8] sm:$0xff]  ;;  %v93_v8 = vld [vmem:[%s9457_s0 + $0x1b0] sm:$0xff]  ;;  %v155_v9 = vld [vmem:[%s9457_s0 + $0x3a0] sm:$0xff] }
  0x2f   :  { %5141 = vmatprep.mubr.msk.f32.mxu0 %vm194_vm1, %v59_v24  ;;  %5271 = vmatmul.mubr.msk.f32.gmra.mxu1 %vm194_vm1, %v146_v54  ;;  %v156_v10 = vld [vmem:[%s9457_s0 + $0x3a8] sm:$0xff]  ;;  %v94_v11 = vld [vmem:[%s9457_s0 + $0x1b8] sm:$0xff]  ;;  %v95_v12 = vld [vmem:[%s9457_s0 + $0x1c0] sm:$0xff] }
  0x30   :  { %5273 = vmatprep.mubr.msk.f32.mxu1 %vm194_vm1, %v147_v57  ;;  %v157_v13 = vld [vmem:[%s9457_s0 + $0x3b0] sm:$0xff]  ;;  %v158_v14 = vld [vmem:[%s9457_s0 + $0x3b8] sm:$0xff]  ;;  %v96_v15 = vld [vmem:[%s9457_s0 + $0x1c8] sm:$0xff] }
  0x31   :  { %v97_v16 = vld [vmem:[%s9457_s0 + $0x1d0] sm:$0xff]  ;;  %v159_v17 = vld [vmem:[%s9457_s0 + $0x3c0] sm:$0xff]  ;;  %v160_v18 = vld [vmem:[%s9457_s0 + $0x3c8] sm:$0xff] }
  0x32   :  { %5142 = vmatmul.mubr.msk.f32.gmra.mxu0 %vm194_vm1, %v60_v25  ;;  %v98_v19 = vld [vmem:[%s9457_s0 + $0x1d8] sm:$0xff]  ;;  %v99_v20 = vld [vmem:[%s9457_s0 + $0x1e0] sm:$0xff]  ;;  %v161_v21 = vld [vmem:[%s9457_s0 + $0x3d0] sm:$0xff] }
  0x33   :  { %5144 = vmatprep.mubr.msk.f32.mxu0 %vm194_vm1, %v61_v26  ;;  %5274 = vmatmul.mubr.msk.f32.gmra.mxu1 %vm194_vm1, %v148_v58  ;;  %v162_v22 = vld [vmem:[%s9457_s0 + $0x3d8] sm:$0xff]  ;;  %v100_v23 = vld [vmem:[%s9457_s0 + $0x1e8] sm:$0xff]  ;;  %v101_v24 = vld [vmem:[%s9457_s0 + $0x1f0] sm:$0xff] }
  0x34   :  { %5276 = vmatprep.mubr.msk.f32.mxu1 %vm194_vm1, %v149_v61  ;;  %v163_v25 = vld [vmem:[%s9457_s0 + $0x3e0] sm:$0xff]  ;;  %v164_v26 = vld [vmem:[%s9457_s0 + $0x3e8] sm:$0xff]  ;;  %v173_v45 = vld [vmem:[%s9457_s0 + $0x430] sm:$0xff] }
  0x35   :  { %v174_v46 = vld [vmem:[%s9457_s0 + $0x438] sm:$0xff]  ;;  %v175_v49 = vld [vmem:[%s9457_s0 + $0x440] sm:$0xff]  ;;  %v176_v50 = vld [vmem:[%s9457_s0 + $0x448] sm:$0xff] }
  0x36   :  { %5145 = vmatmul.mubr.msk.f32.gmra.mxu0 %vm194_vm1, %v62_v27  ;;  %v102_v27 = vld [vmem:[%s9457_s0 + $0x1f8] sm:$0xff]  ;;  %v177_v53 = vld [vmem:[%s9457_s0 + $0x450] sm:$0xff]  ;;  %v179_v57 = vld [vmem:[%s9457_s0 + $0x460] sm:$0xff] }
  0x37   :  { %5147 = vmatprep.mubr.msk.f32.mxu0 %vm194_vm1, %v63_v28  ;;  %5277 = vmatmul.mubr.msk.f32.gmra.mxu1 %vm194_vm1, %v150_v62  ;;  %v103_v28 = vld [vmem:[%s9457_s0 + $0x200] sm:$0xff]  ;;  %v178_v54 = vld [vmem:[%s9457_s0 + $0x458] sm:$0xff]  ;;  %v180_v58 = vld [vmem:[%s9457_s0 + $0x468] sm:$0xff] }
  0x38   :  { %5279 = vmatprep.mubr.msk.f32.mxu1 %vm194_vm1, %v151_v1  ;;  %v181_v61 = vld [vmem:[%s9457_s0 + $0x470] sm:$0xff]  ;;  %v182_v62 = vld [vmem:[%s9457_s0 + $0x478] sm:$0xff] }
  0x39   :  { %v122_v1 = vld [vmem:[%s9457_s0 + $0x298] sm:$0xff] }
  0x3a   :  { %5148 = vmatmul.mubr.msk.f32.gmra.mxu0 %vm194_vm1, %v64_v29  ;;  %v165_v29 = vld [vmem:[%s9457_s0 + $0x3f0] sm:$0xff] }
  0x3b   :  { %5150 = vmatprep.mubr.msk.f32.mxu0 %vm194_vm1, %v65_v30  ;;  %5280 = vmatmul.mubr.msk.f32.gmra.mxu1 %vm194_vm1, %v152_v2  ;;  %v166_v30 = vld [vmem:[%s9457_s0 + $0x3f8] sm:$0xff]  ;;  %v123_v2 = vld [vmem:[%s9457_s0 + $0x2a0] sm:$0xff] }
  0x3c   :  { %5282 = vmatprep.mubr.msk.f32.mxu1 %vm194_vm1, %v153_v5  ;;  %v126_v5 = vld [vmem:[%s9457_s0 + $0x2b8] sm:$0xff] }
  0x3e   :  { %5151 = vmatmul.mubr.msk.f32.gmra.mxu0 %vm194_vm1, %v66_v31  ;;  %v104_v31 = vld [vmem:[%s9457_s0 + $0x208] sm:$0xff] }
  0x3f   :  { %5153 = vmatprep.mubr.msk.f32.mxu0 %vm194_vm1, %v67_v32  ;;  %5283 = vmatmul.mubr.msk.f32.gmra.mxu1 %vm194_vm1, %v154_v6  ;;  %v105_v32 = vld [vmem:[%s9457_s0 + $0x210] sm:$0xff]  ;;  %v127_v6 = vld [vmem:[%s9457_s0 + $0x2c0] sm:$0xff] }
  0x40   :  { %5285 = vmatprep.mubr.msk.f32.mxu1 %vm194_vm1, %v155_v9  ;;  %v130_v9 = vld [vmem:[%s9457_s0 + $0x2d8] sm:$0xff] }
  0x42   :  { %5154 = vmatmul.mubr.msk.f32.gmra.mxu0 %vm194_vm1, %v68_v33  ;;  %v167_v33 = vld [vmem:[%s9457_s0 + $0x400] sm:$0xff] }
  0x43   :  { %5156 = vmatprep.mubr.msk.f32.mxu0 %vm194_vm1, %v69_v34  ;;  %5286 = vmatmul.mubr.msk.f32.gmra.mxu1 %vm194_vm1, %v156_v10  ;;  %v168_v34 = vld [vmem:[%s9457_s0 + $0x408] sm:$0xff]  ;;  %v131_v10 = vld [vmem:[%s9457_s0 + $0x2e0] sm:$0xff] }
  0x44   :  { %5288 = vmatprep.mubr.msk.f32.mxu1 %vm194_vm1, %v157_v13  ;;  %v134_v13 = vld [vmem:[%s9457_s0 + $0x2f8] sm:$0xff] }
  0x46   :  { %5157 = vmatmul.mubr.msk.f32.gmra.mxu0 %vm194_vm1, %v70_v35  ;;  %v106_v35 = vld [vmem:[%s9457_s0 + $0x218] sm:$0xff] }
  0x47   :  { %5159 = vmatprep.mubr.msk.f32.mxu0 %vm194_vm1, %v71_v36  ;;  %5289 = vmatmul.mubr.msk.f32.gmra.mxu1 %vm194_vm1, %v158_v14  ;;  %v107_v36 = vld [vmem:[%s9457_s0 + $0x220] sm:$0xff] }
  0x48   :  { %5291 = vmatprep.mubr.msk.f32.mxu1 %vm194_vm1, %v159_v17  ;;  %v135_v14 = vld [vmem:[%s9457_s0 + $0x300] sm:$0xff] }
  0x4a   :  { %5160 = vmatmul.mubr.msk.f32.gmra.mxu0 %vm194_vm1, %v72_v37  ;;  %v169_v37 = vld [vmem:[%s9457_s0 + $0x410] sm:$0xff] }
  0x4b   :  { %5162 = vmatprep.mubr.msk.f32.mxu0 %vm194_vm1, %v73_v38  ;;  %5292 = vmatmul.mubr.msk.f32.gmra.mxu1 %vm194_vm1, %v160_v18  ;;  %v170_v38 = vld [vmem:[%s9457_s0 + $0x418] sm:$0xff] }
  0x4c   :  { %5294 = vmatprep.mubr.msk.f32.mxu1 %vm194_vm1, %v161_v21  ;;  %v138_v18 = vld [vmem:[%s9457_s0 + $0x318] sm:$0xff] }
  0x4e   :  { %5163 = vmatmul.mubr.msk.f32.gmra.mxu0 %vm194_vm1, %v74_v39  ;;  %v108_v39 = vld [vmem:[%s9457_s0 + $0x228] sm:$0xff] }
  0x4f   :  { %5165 = vmatprep.mubr.msk.f32.mxu0 %vm194_vm1, %v75_v40  ;;  %5295 = vmatmul.mubr.msk.f32.gmra.mxu1 %vm194_vm1, %v162_v22  ;;  %v109_v40 = vld [vmem:[%s9457_s0 + $0x230] sm:$0xff]  ;;  %v140_v22 = vld [vmem:[%s9457_s0 + $0x328] sm:$0xff] }
  0x50   :  { %5297 = vmatprep.mubr.msk.f32.mxu1 %vm194_vm1, %v163_v25 }
  0x52   :  { %5166 = vmatmul.mubr.msk.f32.gmra.mxu0 %vm194_vm1, %v76_v41  ;;  %v171_v41 = vld [vmem:[%s9457_s0 + $0x420] sm:$0xff] }
  0x53   :  { %5168 = vmatprep.mubr.msk.f32.mxu0 %vm194_vm1, %v77_v42  ;;  %5298 = vmatmul.mubr.msk.f32.gmra.mxu1 %vm194_vm1, %v164_v26  ;;  %v172_v42 = vld [vmem:[%s9457_s0 + $0x428] sm:$0xff] }
  0x54   :  { %5300 = vmatprep.mubr.msk.f32.mxu1 %vm194_vm1, %v165_v29 }
  0x56   :  { %5169 = vmatmul.mubr.msk.f32.gmra.mxu0 %vm194_vm1, %v78_v43  ;;  %v110_v43 = vld [vmem:[%s9457_s0 + $0x238] sm:$0xff] }
  0x57   :  { %5171 = vmatprep.mubr.msk.f32.mxu0 %vm194_vm1, %v79_v44  ;;  %5301 = vmatmul.mubr.msk.f32.gmra.mxu1 %vm194_vm1, %v166_v30  ;;  %v111_v44 = vld [vmem:[%s9457_s0 + $0x240] sm:$0xff] }
  0x58   :  { %5303 = vmatprep.mubr.msk.f32.mxu1 %vm194_vm1, %v167_v33 }
  0x5a   :  { %5172 = vmatmul.mubr.msk.f32.gmra.mxu0 %vm194_vm1, %v80_v47  ;;  %v112_v47 = vld [vmem:[%s9457_s0 + $0x248] sm:$0xff] }
  0x5b   :  { %5174 = vmatprep.mubr.msk.f32.mxu0 %vm194_vm1, %v81_v48  ;;  %5304 = vmatmul.mubr.msk.f32.gmra.mxu1 %vm194_vm1, %v168_v34  ;;  %v113_v48 = vld [vmem:[%s9457_s0 + $0x250] sm:$0xff] }
  0x5c   :  { %5306 = vmatprep.mubr.msk.f32.mxu1 %vm194_vm1, %v169_v37 }
  0x5e   :  { %5175 = vmatmul.mubr.msk.f32.gmra.mxu0 %vm194_vm1, %v82_v51  ;;  %v114_v51 = vld [vmem:[%s9457_s0 + $0x258] sm:$0xff] }
  0x5f   :  { %5177 = vmatprep.mubr.msk.f32.mxu0 %vm194_vm1, %v83_v52  ;;  %5307 = vmatmul.mubr.msk.f32.gmra.mxu1 %vm194_vm1, %v170_v38  ;;  %v115_v52 = vld [vmem:[%s9457_s0 + $0x260] sm:$0xff] }
  0x60   :  { %5309 = vmatprep.mubr.msk.f32.mxu1 %vm194_vm1, %v171_v41 }
  0x62   :  { %5178 = vmatmul.mubr.msk.f32.gmra.mxu0 %vm194_vm1, %v84_v55  ;;  %v116_v55 = vld [vmem:[%s9457_s0 + $0x268] sm:$0xff] }
  0x63   :  { %5180 = vmatprep.mubr.msk.f32.mxu0 %vm194_vm1, %v85_v56  ;;  %5310 = vmatmul.mubr.msk.f32.gmra.mxu1 %vm194_vm1, %v172_v42  ;;  %v117_v56 = vld [vmem:[%s9457_s0 + $0x270] sm:$0xff] }
  0x64   :  { %5312 = vmatprep.mubr.msk.f32.mxu1 %vm194_vm1, %v173_v45 }
  0x66   :  { %5181 = vmatmul.mubr.msk.f32.gmra.mxu0 %vm194_vm1, %v86_v59  ;;  %v118_v59 = vld [vmem:[%s9457_s0 + $0x278] sm:$0xff] }
  0x67   :  { %5183 = vmatprep.mubr.msk.f32.mxu0 %vm194_vm1, %v87_v60  ;;  %5313 = vmatmul.mubr.msk.f32.gmra.mxu1 %vm194_vm1, %v174_v46  ;;  %v119_v60 = vld [vmem:[%s9457_s0 + $0x280] sm:$0xff] }
  0x68   :  { %5315 = vmatprep.mubr.msk.f32.mxu1 %vm194_vm1, %v175_v49 }
  0x6a   :  { %5184 = vmatmul.mubr.msk.f32.gmra.mxu0 %vm194_vm1, %v88_v63  ;;  %v120_v63 = vld [vmem:[%s9457_s0 + $0x288] sm:$0xff] }
  0x6b   :  { %5186 = vmatprep.mubr.msk.f32.mxu0 %vm194_vm1, %v89_v0  ;;  %5316 = vmatmul.mubr.msk.f32.gmra.mxu1 %vm194_vm1, %v176_v50  ;;  %v121_v0 = vld [vmem:[%s9457_s0 + $0x290] sm:$0xff] }
  0x6c   :  { %5318 = vmatprep.mubr.msk.f32.mxu1 %vm194_vm1, %v177_v53 }
  0x6e   :  { %5187 = vmatmul.mubr.msk.f32.gmra.mxu0 %vm194_vm1, %v90_v3  ;;  %v124_v3 = vld [vmem:[%s9457_s0 + $0x2a8] sm:$0xff] }
  0x6f   :  { %5189 = vmatprep.mubr.msk.f32.mxu0 %vm194_vm1, %v91_v4  ;;  %5319 = vmatmul.mubr.msk.f32.gmra.mxu1 %vm194_vm1, %v178_v54  ;;  %v125_v4 = vld [vmem:[%s9457_s0 + $0x2b0] sm:$0xff] }
  0x70   :  { %5321 = vmatprep.mubr.msk.f32.mxu1 %vm194_vm1, %v179_v57 }
  0x72   :  { %5190 = vmatmul.mubr.msk.f32.gmra.mxu0 %vm194_vm1, %v92_v7  ;;  %v128_v7 = vld [vmem:[%s9457_s0 + $0x2c8] sm:$0xff] }
  0x73   :  { %5192 = vmatprep.mubr.msk.f32.mxu0 %vm194_vm1, %v93_v8  ;;  %5322 = vmatmul.mubr.msk.f32.gmra.mxu1 %vm194_vm1, %v180_v58  ;;  %v129_v8 = vld [vmem:[%s9457_s0 + $0x2d0] sm:$0xff] }
  0x74   :  { %5324 = vmatprep.mubr.msk.f32.mxu1 %vm194_vm1, %v181_v61 }
  0x76   :  { %5193 = vmatmul.mubr.msk.f32.gmra.mxu0 %vm194_vm1, %v94_v11  ;;  %v132_v11 = vld [vmem:[%s9457_s0 + $0x2e8] sm:$0xff] }
  0x77   :  { %5195 = vmatprep.mubr.msk.f32.mxu0 %vm194_vm1, %v95_v12  ;;  %5325 = vmatmul.mubr.msk.f32.gmra.mxu1 %vm194_vm1, %v182_v62  ;;  %v133_v12 = vld [vmem:[%s9457_s0 + $0x2f0] sm:$0xff] }
  0x7a   :  { %5196 = vmatmul.mubr.msk.f32.gmra.mxu0 %vm194_vm1, %v96_v15  ;;  %v136_v15 = vld [vmem:[%s9457_s0 + $0x308] sm:$0xff] }
  0x7b   :  { %5198 = vmatprep.mubr.msk.f32.mxu0 %vm194_vm1, %v97_v16  ;;  %v137_v16 = vld [vmem:[%s9457_s0 + $0x310] sm:$0xff] }
  0x7e   :  { %5199 = vmatmul.mubr.msk.f32.gmra.mxu0 %vm194_vm1, %v98_v19 }
  0x7f   :  { %5201 = vmatprep.mubr.msk.f32.mxu0 %vm194_vm1, %v99_v20  ;;  %v139_v20 = vld [vmem:[%s9457_s0 + $0x320] sm:$0xff] }
  0x82   :  { %5202 = vmatmul.mubr.msk.f32.gmra.mxu0 %vm194_vm1, %v100_v23 }
  0x83   :  { %5204 = vmatprep.mubr.msk.f32.mxu0 %vm194_vm1, %v101_v24 }
  0x86   :  { %5205 = vmatmul.mubr.msk.f32.gmra.mxu0 %vm194_vm1, %v102_v27 }
  0x87   :  { %5207 = vmatprep.mubr.msk.f32.mxu0 %vm194_vm1, %v103_v28 }
  0x8a   :  { %5208 = vmatmul.mubr.msk.f32.gmra.mxu0 %vm194_vm1, %v104_v31 }
  0x8b   :  { %5210 = vmatprep.mubr.msk.f32.mxu0 %vm194_vm1, %v105_v32 }
  0x8e   :  { %5211 = vmatmul.mubr.msk.f32.gmra.mxu0 %vm194_vm1, %v106_v35 }
  0x8f   :  { %5213 = vmatprep.mubr.msk.f32.mxu0 %vm194_vm1, %v107_v36  ;;  %v6727_v36 = vld [vmem:[%s9459_s2] ss:$0 sm:$0xff] }
  0x92   :  { %5214 = vmatmul.mubr.msk.f32.gmra.mxu0 %vm194_vm1, %v108_v39 }
  0x93   :  { %5216 = vmatprep.mubr.msk.f32.mxu0 %vm194_vm1, %v109_v40 }
  0x96   :  { %5217 = vmatmul.mubr.msk.f32.gmra.mxu0 %vm194_vm1, %v110_v43 }
  0x97   :  { %5219 = vmatprep.mubr.msk.f32.mxu0 %vm194_vm1, %v111_v44 }
  0x9a   :  { %5220 = vmatmul.mubr.msk.f32.gmra.mxu0 %vm194_vm1, %v112_v47 }
  0x9b   :  { %5222 = vmatprep.mubr.msk.f32.mxu0 %vm194_vm1, %v113_v48 }
  0x9e   :  { %5223 = vmatmul.mubr.msk.f32.gmra.mxu0 %vm194_vm1, %v114_v51 }
  0x9f   :  { %5225 = vmatprep.mubr.msk.f32.mxu0 %vm194_vm1, %v115_v52 }
  0xa2   :  { %5226 = vmatmul.mubr.msk.f32.gmra.mxu0 %vm194_vm1, %v116_v55 }
  0xa3   :  { %5228 = vmatprep.mubr.msk.f32.mxu0 %vm194_vm1, %v117_v56 }
  0xa6   :  { %5229 = vmatmul.mubr.msk.f32.gmra.mxu0 %vm194_vm1, %v118_v59 }
  0xa7   :  { %5231 = vmatprep.mubr.msk.f32.mxu0 %vm194_vm1, %v119_v60 }
  0xaa   :  { %5232 = vmatmul.mubr.msk.f32.gmra.mxu0 %vm194_vm1, %v120_v63 }
  0xab   :  { %5234 = vmatprep.mubr.msk.f32.mxu0 %vm194_vm1, %v121_v0 }
  0xae   :  { %5235 = vmatmul.mubr.msk.f32.gmra.mxu0 %vm194_vm1, %v122_v1 }
  0xaf   :  { %5237 = vmatprep.mubr.msk.f32.mxu0 %vm194_vm1, %v123_v2 }
  0xb2   :  { %5238 = vmatmul.mubr.msk.f32.gmra.mxu0 %vm194_vm1, %v124_v3 }
  0xb3   :  { %5240 = vmatprep.mubr.msk.f32.mxu0 %vm194_vm1, %v125_v4 }
  0xb6   :  { %5241 = vmatmul.mubr.msk.f32.gmra.mxu0 %vm194_vm1, %v126_v5 }
  0xb7   :  { %5243 = vmatprep.mubr.msk.f32.mxu0 %vm194_vm1, %v127_v6 }
  0xba   :  { %5244 = vmatmul.mubr.msk.f32.gmra.mxu0 %vm194_vm1, %v128_v7 }
  0xbb   :  { %5246 = vmatprep.mubr.msk.f32.mxu0 %vm194_vm1, %v129_v8 }
  0xbe   :  { %5247 = vmatmul.mubr.msk.f32.gmra.mxu0 %vm194_vm1, %v130_v9 }
  0xbf   :  { %5249 = vmatprep.mubr.msk.f32.mxu0 %vm194_vm1, %v131_v10 }
  0xc2   :  { %5250 = vmatmul.mubr.msk.f32.gmra.mxu0 %vm194_vm1, %v132_v11 }
  0xc3   :  { %5252 = vmatprep.mubr.msk.f32.mxu0 %vm194_vm1, %v133_v12 }
  0xc6   :  { %5253 = vmatmul.mubr.msk.f32.gmra.mxu0 %vm194_vm1, %v134_v13 }
  0xc7   :  { %5255 = vmatprep.mubr.msk.f32.mxu0 %vm194_vm1, %v135_v14 }
  0xca   :  { %v5113_v17 = vpop.f32.mrf.mxu0  ;;  %5256 = vmatmul.mubr.msk.f32.gmra.mxu0 %vm194_vm1, %v136_v15 }
  0xcb   :  { %5258 = vmatprep.mubr.msk.f32.mxu0 %vm194_vm1, %v137_v16  ;;  %v703_v39 = vadd.f32 %v5113_v17, %v6727_v36 }
  0xcc   :  { %v697_v19 = vpop.f32.mrf.mxu0 }
  0xcd   :  { %v698_v41 = vadd.f32 %v6727_v36, %v697_v19  ;;  %v1417_v45 = vmax.f32 %v703_v39, 0.0 }
  0xce   :  { %v5116_v21 = vpop.f32.mrf.mxu0  ;;  %5259 = vmatmul.mubr.msk.f32.gmra.mxu0 %vm194_vm1, %v138_v18 }
  0xcf   :  { %5261 = vmatprep.mubr.msk.f32.mxu0 %vm194_vm1, %v139_v20  ;;  %v713_v43 = vadd.f32 %v5116_v21, %v6727_v36  ;;  %v1416_v50 = vmax.f32 %v698_v41, 0.0 }
  0xd0   :  { %v707_v23 = vpop.f32.mrf.mxu0 }
  0xd1   :  { %v708_v48 = vadd.f32 %v6727_v36, %v707_v23  ;;  %v1419_v54 = vmax.f32 %v713_v43, 0.0 }
  0xd2   :  { %v5119_v24 = vpop.f32.mrf.mxu0  ;;  %5262 = vmatmul.mubr.msk.f32.gmra.mxu0 %vm194_vm1, %v140_v22  ;;  %vm9555_vm1 = vcmask 637952  }
  0xd3   :  { %v723_v56 = vadd.f32 %v5119_v24, %v6727_v36  ;;  %v1418_v60 = vmax.f32 %v708_v48, 0.0 }
  0xd4   :  { %v717_v25 = vpop.f32.mrf.mxu0 }
  0xd5   :  { %v718_v62 = vadd.f32 %v6727_v36, %v717_v25  ;;  %v1421_v4 = vmax.f32 %v723_v56, 0.0 }
  0xd6   :  { %v5122_v26 = vpop.f32.mrf.mxu0 }
  0xd7   :  { %v733_v2 = vadd.f32 %v5122_v26, %v6727_v36  ;;  %v1420_v10 = vmax.f32 %v718_v62, 0.0 }
  0xd8   :  { %v727_v27 = vpop.f32.mrf.mxu0 }
  0xd9   :  { %v728_v8 = vadd.f32 %v6727_v36, %v727_v27  ;;  %v1423_v14 = vmax.f32 %v733_v2, 0.0 }
  0xda   :  { %v5125_v28 = vpop.f32.mrf.mxu0 }
  0xdb   :  { %v743_v16 = vadd.f32 %v5125_v28, %v6727_v36  ;;  %v1422_v20 = vmax.f32 %v728_v8, 0.0 }
  0xdc   :  { %v737_v29 = vpop.f32.mrf.mxu0 }
  0xdd   :  { %v738_v22 = vadd.f32 %v6727_v36, %v737_v29  ;;  %v1425_v39 = vmax.f32 %v743_v16, 0.0 }
  0xde   :  { %v5128_v30 = vpop.f32.mrf.mxu0 }
  0xdf   :  { %v753_v26 = vadd.f32 %v5128_v30, %v6727_v36 }
  0xe0   :  { %v6714_v31 = vpop.f32.mrf.mxu0 }
  0xe2   :  { %v6716_v32 = vpop.f32.mrf.mxu0 }
  0xe3   :  { %v763_v30 = vadd.f32 %v6716_v32, %v6727_v36 }
  0xe4   :  { %v6718_v33 = vpop.f32.mrf.mxu0 }
  0xe5   :  { %v1429_v32 = vmax.f32 %v763_v30, 0.0 }
  0xe6   :  { %v6720_v34 = vpop.f32.mrf.mxu0 }
  0xe8   :  { %v6722_v35 = vpop.f32.mrf.mxu0 }
  0xea   :  { %v6729_v37 = vpop.f32.mrf.mxu0 }
  0xec   :  { %v6731_v38 = vpop.f32.mrf.mxu0 }
  0xee   :  { %v5140_v40 = vpop.f32.mrf.mxu0 }
  0xef   :  { %v793_v42 = vadd.f32 %v5140_v40, %v6727_v36 }
  0xf0   :  { %v787_v44 = vpop.f32.mrf.mxu0 }
  0xf1   :  { %v1435_v46 = vmax.f32 %v793_v42, 0.0  ;;  %v788_v47 = vadd.f32 %v6727_v36, %v787_v44  ;;  %v748_v42 = vadd.f32 %v6727_v36, %v6714_v31  ;;  %v1424_v44 = vmax.f32 %v738_v22, 0.0 }
  0xf2   :  { %v5143_v49 = vpop.f32.mrf.mxu0  ;;  %v758_v31 = vadd.f32 %v6727_v36, %v6718_v33 }
  0xf3   :  { %v6739_v51 = vmax.f32 %v1417_v45, %v1435_v46  ;;  %v1434_v52 = vmax.f32 %v788_v47, 0.0  ;;  %v803_v53 = vadd.f32 %v5143_v49, %v6727_v36  ;;  %v1427_v47 = vmax.f32 %v753_v26, 0.0 }
  0xf4   :  { %v797_v55 = vpop.f32.mrf.mxu0  ;;  %v1428_v33 = vmax.f32 %v758_v31, 0.0 }
  0xf5   :  { %v6743_v57 = vmax.f32 %v1416_v50, %v1434_v52  ;;  %v1437_v58 = vmax.f32 %v803_v53, 0.0  ;;  %v798_v59 = vadd.f32 %v6727_v36, %v797_v55  ;;  %v1426_v53 = vmax.f32 %v748_v42, 0.0 }
  0xf6   :  { %v5146_v61 = vpop.f32.mrf.mxu0 }
  0xf7   :  { %v6747_v63 = vmax.f32 %v1419_v54, %v1437_v58  ;;  %v1436_v0 = vmax.f32 %v798_v59, 0.0  ;;  %v813_v1 = vadd.f32 %v5146_v61, %v6727_v36  ;;  %v773_v59 = vadd.f32 %v6720_v34, %v6727_v36 }
  0xf8   :  { %v807_v3 = vpop.f32.mrf.mxu0  ;;  %v783_v34 = vadd.f32 %v6729_v37, %v6727_v36 }
  0xf9   :  { %v6751_v5 = vmax.f32 %v1418_v60, %v1436_v0  ;;  %v1439_v6 = vmax.f32 %v813_v1, 0.0  ;;  %v808_v7 = vadd.f32 %v6727_v36, %v807_v3  ;;  %v768_v1 = vadd.f32 %v6727_v36, %v6722_v35 }
  0xfa   :  { %v5149_v9 = vpop.f32.mrf.mxu0  ;;  %v778_v35 = vadd.f32 %v6727_v36, %v6731_v38 }
  0xfb   :  { %v6755_v11 = vmax.f32 %v1421_v4, %v1439_v6  ;;  %v1438_v12 = vmax.f32 %v808_v7, 0.0  ;;  %v823_v13 = vadd.f32 %v5149_v9, %v6727_v36  ;;  %v1431_v7 = vmax.f32 %v773_v59, 0.0 }
  0xfc   :  { %v817_v15 = vpop.f32.mrf.mxu0 }
  0xfd   :  { %v6759_v17 = vmax.f32 %v1420_v10, %v1438_v12  ;;  %v1441_v18 = vmax.f32 %v823_v13, 0.0  ;;  %v818_v19 = vadd.f32 %v6727_v36, %v817_v15  ;;  %v1430_v13 = vmax.f32 %v768_v1, 0.0 }
  0xfe   :  { %v5152_v21 = vpop.f32.mrf.mxu0 }
  0xff   :  { %v6763_v23 = vmax.f32 %v1423_v14, %v1441_v18  ;;  %v1440_v24 = vmax.f32 %v818_v19, 0.0  ;;  %v833_v25 = vadd.f32 %v5152_v21, %v6727_v36 }
 0x100   :  { %v827_v27 = vpop.f32.mrf.mxu0 }
 0x101   :  { %v6767_v40 = vmax.f32 %v1422_v20, %v1440_v24  ;;  %v1443_v28 = vmax.f32 %v833_v25, 0.0  ;;  %v828_v41 = vadd.f32 %v6727_v36, %v827_v27  ;;  %v1433_v20 = vmax.f32 %v783_v34, 0.0 }
 0x102   :  { %v5155_v43 = vpop.f32.mrf.mxu0  ;;  %v1432_v25 = vmax.f32 %v778_v35, 0.0 }
 0x103   :  { %v6772_v29 = vmax.f32 %v1425_v39, %v1443_v28  ;;  %v1442_v45 = vmax.f32 %v828_v41, 0.0  ;;  %v843_v46 = vadd.f32 %v5155_v43, %v6727_v36  ;;  %v6812_v41 = vpop.f32.mrf.mxu1 }
 0x104   :  { %v837_v48 = vpop.f32.mrf.mxu0 }
 0x105   :  { %v6777_v49 = vmax.f32 %v1424_v44, %v1442_v45  ;;  %v1445_v50 = vmax.f32 %v843_v46, 0.0  ;;  %v838_v52 = vadd.f32 %v6727_v36, %v837_v48  ;;  %v6814_v43 = vpop.f32.mrf.mxu1 }
 0x106   :  { %v5158_v54 = vpop.f32.mrf.mxu0 }
 0x107   :  { %v6782_v55 = vmax.f32 %v1427_v47, %v1445_v50  ;;  %v1444_v56 = vmax.f32 %v838_v52, 0.0  ;;  %v853_v58 = vadd.f32 %v5158_v54, %v6727_v36  ;;  %v6816_v45 = vpop.f32.mrf.mxu1 }
 0x108   :  { %v847_v60 = vpop.f32.mrf.mxu0 }
 0x109   :  { %v6787_v61 = vmax.f32 %v1426_v53, %v1444_v56  ;;  %v1447_v62 = vmax.f32 %v853_v58, 0.0  ;;  %v848_v0 = vadd.f32 %v6727_v36, %v847_v60  ;;  %v6818_v47 = vpop.f32.mrf.mxu1 }
 0x10a   :  { %v5161_v2 = vpop.f32.mrf.mxu0 }
 0x10b   :  { %v6792_v3 = vmax.f32 %v1429_v32, %v1447_v62  ;;  %v1446_v4 = vmax.f32 %v848_v0, 0.0  ;;  %v863_v6 = vadd.f32 %v5161_v2, %v6727_v36  ;;  %v6822_v30 = vpop.f32.mrf.mxu1 }
 0x10c   :  { %v857_v8 = vpop.f32.mrf.mxu0 }
 0x10d   :  { %v6797_v9 = vmax.f32 %v1428_v33, %v1446_v4  ;;  %v1449_v10 = vmax.f32 %v863_v6, 0.0  ;;  %v858_v12 = vadd.f32 %v6727_v36, %v857_v8  ;;  %v6826_v52 = vpop.f32.mrf.mxu1 }
 0x10e   :  { %v5164_v14 = vpop.f32.mrf.mxu0 }
 0x10f   :  { %v6802_v15 = vmax.f32 %v1431_v7, %v1449_v10  ;;  %v1448_v16 = vmax.f32 %v858_v12, 0.0  ;;  %v873_v18 = vadd.f32 %v5164_v14, %v6727_v36  ;;  %v6830_v54 = vpop.f32.mrf.mxu1 }
 0x110   :  { %v867_v19 = vpop.f32.mrf.mxu0 }
 0x111   :  { %v6805_v21 = vmax.f32 %v1430_v13, %v1448_v16  ;;  %v1451_v37 = vmax.f32 %v873_v18, 0.0  ;;  %v868_v22 = vadd.f32 %v6727_v36, %v867_v19  ;;  %v6834_v56 = vpop.f32.mrf.mxu1 }
 0x112   :  { %v5167_v24 = vpop.f32.mrf.mxu0 }
 0x113   :  { %v6808_v26 = vmax.f32 %v1433_v20, %v1451_v37  ;;  %v1450_v27 = vmax.f32 %v868_v22, 0.0  ;;  %v6838_v59 = vpop.f32.mrf.mxu1  ;;  %v883_v13 = vadd.f32 %v5167_v24, %v6727_v36 }
 0x114   :  { %v877_v39 = vpop.f32.mrf.mxu0 }
 0x115   :  { %v6810_v28 = vmax.f32 %v1432_v25, %v1450_v27  ;;  %v6842_v32 = vpop.f32.mrf.mxu1  ;;  %v878_v16 = vadd.f32 %v6727_v36, %v877_v39  ;;  %v1453_v22 = vmax.f32 %v883_v13, 0.0 }
 0x116   :  { %v5170_v38 = vpop.f32.mrf.mxu0 }
 0x117   :  { %v6846_v0 = vpop.f32.mrf.mxu1  ;;  %v893_v19 = vadd.f32 %v5170_v38, %v6727_v36 }
 0x118   :  { %v887_v42 = vpop.f32.mrf.mxu0 }
 0x119   :  { %v6850_v2 = vpop.f32.mrf.mxu1 }
 0x11a   :  { %v5173_v44 = vpop.f32.mrf.mxu0  ;;  %9556 = vst [vmem:[#allocation6_spill] sm:$0xff] %v6850_v2 }
 0x11b   :  { %v6854_v4 = vpop.f32.mrf.mxu1  ;;  %v903_v38 = vadd.f32 %v5173_v44, %v6727_v36 }
 0x11c   :  { %v897_v46 = vpop.f32.mrf.mxu0  ;;  %9557 = vst [vmem:[#allocation7_spill] sm:$0xff] %v6854_v4 }
 0x11d   :  { %v6858_v7 = vpop.f32.mrf.mxu1 }
 0x11e   :  { %v6820_v48 = vpop.f32.mrf.mxu0  ;;  %9558 = vst [vmem:[#allocation8_spill] sm:$0xff] %v6858_v7  ;;  %v1452_v7 = vmax.f32 %v878_v16, 0.0  ;;  %v898_v16 = vadd.f32 %v6727_v36, %v897_v46 }
 0x11f   :  { %v6862_v34 = vpop.f32.mrf.mxu1 }
 0x120   :  { %v6824_v50 = vpop.f32.mrf.mxu0  ;;  %9559 = vst [vmem:[#allocation9_spill] sm:$0xff] %v6862_v34 }
 0x121   :  { %v6866_v12 = vpop.f32.mrf.mxu1 }
 0x122   :  { %v6828_v53 = vpop.f32.mrf.mxu0  ;;  %9560 = vst [vmem:[#allocation10_spill] sm:$0xff] %v6866_v12  ;;  %v888_v12 = vadd.f32 %v6727_v36, %v887_v42 }
 0x123   :  { %v6869_v35 = vpop.f32.mrf.mxu1 }
 0x124   :  { %v6832_v31 = vpop.f32.mrf.mxu0  ;;  %9561 = vst [vmem:[#allocation11_spill] sm:$0xff] %v6869_v35 }
 0x125   :  { %v6874_v37 = vpop.f32.mrf.mxu1 }
 0x126   :  { %v6836_v58 = vpop.f32.mrf.mxu0  ;;  %9562 = vst [vmem:[#allocation12_spill] sm:$0xff] %v6874_v37 }
 0x127   :  { %v6878_v24 = vpop.f32.mrf.mxu1 }
 0x128   :  { %v6840_v60 = vpop.f32.mrf.mxu0  ;;  %9563 = vst [vmem:[#allocation13_spill] sm:$0xff] %v6878_v24  ;;  %v1454_v24 = vmax.f32 %v888_v12, 0.0 }
 0x129   :  { %v6882_v13 = vpop.f32.mrf.mxu1 }
 0x12a   :  { %v6844_v62 = vpop.f32.mrf.mxu0 }
 0x12c   :  { %v6848_v1 = vpop.f32.mrf.mxu0 }
 0x12e   :  { %v6852_v33 = vpop.f32.mrf.mxu0 }
 0x130   :  { %v6856_v6 = vpop.f32.mrf.mxu0 }
 0x132   :  { %v6860_v8 = vpop.f32.mrf.mxu0 }
 0x134   :  { %v6864_v10 = vpop.f32.mrf.mxu0 }
 0x136   :  { %v5194_v14 = vpop.f32.mrf.mxu0 }
 0x137   :  { %v973_v18 = vadd.f32 %v5194_v14, %v6727_v36  ;;  %v1455_v14 = vmax.f32 %v893_v19, 0.0 }
 0x138   :  { %v967_v20 = vpop.f32.mrf.mxu0 }
 0x139   :  { %v1471_v25 = vmax.f32 %v973_v18, 0.0  ;;  %v968_v27 = vadd.f32 %v6727_v36, %v967_v20 }
 0x13a   :  { %v5197_v34 = vpop.f32.mrf.mxu0 }
 0x13b   :  { %v1597_v35 = vmax.f32 %v1453_v22, %v1471_v25  ;;  %v1470_v4 = vmax.f32 %v968_v27, 0.0  ;;  %v983_v39 = vadd.f32 %v5197_v34, %v6727_v36  ;;  %v6887_v34 = vpop.f32.mrf.mxu1 }
 0x13c   :  { %v977_v37 = vpop.f32.mrf.mxu0 }
 0x13d   :  { %v1633_v18 = vmax.f32 %v6739_v51, %v1597_v35  ;;  %v1596_v20 = vmax.f32 %v1452_v7, %v1470_v4  ;;  %v1473_v42 = vmax.f32 %v983_v39, 0.0  ;;  %v978_v2 = vadd.f32 %v6727_v36, %v977_v37  ;;  %v6898_v39 = vpop.f32.mrf.mxu1 }
 0x13e   :  { %v5200_v22 = vpop.f32.mrf.mxu0  ;;  %v1457_v4 = vmax.f32 %v903_v38, 0.0  ;;  %v913_v7 = vadd.f32 %v6820_v48, %v6727_v36 }
 0x13f   :  { %1671 = vst.msk [vmem:[#allocation2 + $0x8] sm:$0xf] %vm1670_vm2, %v1633_v18  ;;  %v1632_v44 = vmax.f32 %v6743_v57, %v1596_v20  ;;  %v1599_v19 = vmax.f32 %v1455_v14, %v1473_v42  ;;  %v1472_v25 = vmax.f32 %v978_v2, 0.0  ;;  %v993_v51 = vadd.f32 %v5200_v22, %v6727_v36 }
 0x140   :  { %1676 = vst.msk [vmem:[#allocation2 + $0xc] sm:$0xf0] %vm1675_vm3, %v1633_v18  ;;  %v987_v12 = vpop.f32.mrf.mxu0  ;;  %v1456_v57 = vmax.f32 %v898_v16, 0.0  ;;  %v908_v2 = vadd.f32 %v6727_v36, %v6824_v50 }
 0x141   :  { %1669 = vst.msk [vmem:[#allocation2] sm:$0xff] %vm1668_vm4, %v1632_v44  ;;  %v1635_v46 = vmax.f32 %v6747_v63, %v1599_v19  ;;  %v1598_v35 = vmax.f32 %v1454_v24, %v1472_v25  ;;  %v1475_v37 = vmax.f32 %v993_v51, 0.0  ;;  %v988_v27 = vadd.f32 %v6727_v36, %v987_v12  ;;  %v6910_v19 = vpop.f32.mrf.mxu1 }
 0x142   :  { %v5203_v14 = vpop.f32.mrf.mxu0  ;;  %v1459_v63 = vmax.f32 %v913_v7, 0.0  ;;  %v923_v24 = vadd.f32 %v6828_v53, %v6727_v36  ;;  %v918_v25 = vadd.f32 %v6727_v36, %v6832_v31 }
 0x143   :  { %1681 = vst.msk [vmem:[#allocation2 + $0x20] sm:$0xff] %vm1668_vm4, %v1635_v46  ;;  %v1634_v48 = vmax.f32 %v6751_v5, %v1598_v35  ;;  %v1601_v38 = vmax.f32 %v1457_v4, %v1475_v37  ;;  %v1474_v18 = vmax.f32 %v988_v27, 0.0  ;;  %v1003_v20 = vadd.f32 %v5203_v14, %v6727_v36 }
 0x144   :  { %v997_v42 = vpop.f32.mrf.mxu0  ;;  %v1458_v5 = vmax.f32 %v908_v2, 0.0  ;;  %v1461_v46 = vmax.f32 %v923_v24, 0.0  ;;  %v933_v35 = vadd.f32 %v6836_v58, %v6727_v36  ;;  %v1460_v14 = vmax.f32 %v918_v25, 0.0 }
 0x145   :  { %1677 = vst.msk [vmem:[#allocation2 + $0x14] sm:$0xff] %vm1668_vm4, %v1634_v48  ;;  %v1637_v16 = vmax.f32 %v6755_v11, %v1601_v38  ;;  %v1600_v22 = vmax.f32 %v1456_v57, %v1474_v18  ;;  %v1477_v50 = vmax.f32 %v1003_v20, 0.0  ;;  %v998_v44 = vadd.f32 %v6727_v36, %v997_v42  ;;  %v6917_v11 = vpop.f32.mrf.mxu1 }
 0x146   :  { %v5206_v51 = vpop.f32.mrf.mxu0  ;;  %v928_v48 = vadd.f32 %v6727_v36, %v6840_v60  ;;  %v1463_v24 = vmax.f32 %v933_v35, 0.0  ;;  %v943_v42 = vadd.f32 %v6844_v62, %v6727_v36  ;;  %v938_v62 = vadd.f32 %v6727_v36, %v6848_v1 }
 0x147   :  { %1687 = vst.msk [vmem:[#allocation2 + $0x34] sm:$0xff] %vm1668_vm4, %v1637_v16  ;;  %v1636_v53 = vmax.f32 %v6759_v17, %v1600_v22  ;;  %v1603_v4 = vmax.f32 %v1459_v63, %v1477_v50  ;;  %v1476_v7 = vmax.f32 %v998_v44, 0.0  ;;  %v1013_v12 = vadd.f32 %v5206_v51, %v6727_v36  ;;  %v6925_v2 = vpop.f32.mrf.mxu1 }
 0x148   :  { %v1007_v37 = vpop.f32.mrf.mxu0  ;;  %v1762_v25 = vld [vmem:[#allocation2 + $0x2] sm:$0xff]  ;;  %v1465_v1 = vmax.f32 %v943_v42, 0.0  ;;  %v948_v42 = vadd.f32 %v6727_v36, %v6856_v6  ;;  %v963_v6 = vadd.f32 %v6860_v8, %v6727_v36 }
 0x149   :  { %1682 = vst.msk [vmem:[#allocation2 + $0x28] sm:$0xf] %vm1670_vm2, %v1636_v53  ;;  %v1639_v31 = vmax.f32 %v6763_v23, %v1603_v4  ;;  %v1602_v27 = vmax.f32 %v1458_v5, %v1476_v7  ;;  %v1479_v57 = vmax.f32 %v1013_v12, 0.0  ;;  %v1008_v17 = vadd.f32 %v6727_v36, %v1007_v37  ;;  %v6933_v63 = vpop.f32.mrf.mxu1  ;;  %v1746_v51 = vld [vmem:[#allocation2 + $0x1] sm:$0xff] }
 0x14a   :  { %1686 = vst.msk [vmem:[#allocation2 + $0x2c] sm:$0xf0] %vm1675_vm3, %v1636_v53  ;;  %v5209_v38 = vpop.f32.mrf.mxu0  ;;  %v1462_v4 = vmax.f32 %v928_v48, 0.0 }
 0x14b   :  { %1692 = vst.msk [vmem:[#allocation2 + $0x48] sm:$0xf] %vm1670_vm2, %v1639_v31  ;;  %v1638_v58 = vmax.f32 %v6767_v40, %v1602_v27  ;;  %v1605_v18 = vmax.f32 %v1461_v46, %v1479_v57  ;;  %v1478_v20 = vmax.f32 %v1008_v17, 0.0  ;;  %v1023_v23 = vadd.f32 %v5209_v38, %v6727_v36  ;;  %v6944_v53 = vpop.f32.mrf.mxu1 }
 0x14c   :  { %1696 = vst.msk [vmem:[#allocation2 + $0x4c] sm:$0xf0] %vm1675_vm3, %v1639_v31  ;;  %v1017_v16 = vpop.f32.mrf.mxu0  ;;  %v6937_v22 = vld [vmem:[#allocation2 + $0x12] sm:$0xff] }
 0x14d   :  { %v6939_v60 = vld [vmem:[#allocation2 + $0x11] sm:$0xff]  ;;  %1691 = vst.msk [vmem:[#allocation2 + $0x40] sm:$0xff] %vm1668_vm4, %v1638_v58  ;;  %v1641_v50 = vmax.f32 %v6772_v29, %v1605_v18  ;;  %v1604_v40 = vmax.f32 %v1460_v14, %v1478_v20  ;;  %v1481_v44 = vmax.f32 %v1023_v23, 0.0  ;;  %v1018_v5 = vadd.f32 %v6727_v36, %v1017_v16  ;;  %v6957_v17 = vpop.f32.mrf.mxu1  ;;  %v1794_v20 = vld [vmem:[#allocation2 + $0x4] sm:$0xff] }
 0x14e   :  { %v5212_v7 = vpop.f32.mrf.mxu0  ;;  %v5418_v12 = vpack.i.bf16 %v6937_v22, %v1762_v25  ;;  %v5413_v46 = vpack.i.bf16 %v6939_v60, %v1746_v51  ;;  %v6953_v27 = vld [vmem:[#allocation2 + $0x14] sm:$0xff]  ;;  %v953_v14 = vadd.f32 %v6852_v33, %v6727_v36  ;;  %v1778_v23 = vld [vmem:[#allocation2 + $0x3] sm:$0xff]  ;;  %v1464_v33 = vmax.f32 %v938_v62, 0.0 }
 0x14f   :  { %1701 = vst.msk [vmem:[#allocation2 + $0x60] sm:$0xff] %vm1668_vm4, %v1641_v50  ;;  %v1640_v29 = vmax.f32 %v6777_v49, %v1604_v40  ;;  %v1607_v35 = vmax.f32 %v1463_v24, %v1481_v44  ;;  %v1480_v37 = vmax.f32 %v1018_v5, 0.0  ;;  %v1033_v31 = vadd.f32 %v5212_v7, %v6727_v36  ;;  %v6955_v57 = vld [vmem:[#allocation2 + $0x13] sm:$0xff]  ;;  %v6966_v24 = vpop.f32.mrf.mxu1 }
 0x150   :  { %5419 = vrot.lane.b32.xlu1 %v5418_v12, %s6040_s14  ;;  %5414 = vrot.lane.b32.xlu0 %v5413_v46, %s6041_s15  ;;  %v1027_v49 = vpop.f32.mrf.mxu0  ;;  %v5428_v50 = vpack.i.bf16 %v6953_v27, %v1794_v20  ;;  %v5423_v40 = vpack.i.bf16 %v6955_v57, %v1778_v23  ;;  %v1810_v51 = vld [vmem:[#allocation2 + $0x10] sm:$0xff]  ;;  %v1467_v62 = vmax.f32 %v953_v14, 0.0 }
 0x151   :  { %1697 = vst.msk [vmem:[#allocation2 + $0x54] sm:$0xff] %vm1668_vm4, %v1640_v29  ;;  %v1643_v48 = vmax.f32 %v6782_v55, %v1607_v35  ;;  %v1606_v38 = vmax.f32 %v1462_v4, %v1480_v37  ;;  %v1483_v58 = vmax.f32 %v1033_v31, 0.0  ;;  %v1028_v18 = vadd.f32 %v6727_v36, %v1027_v49  ;;  %v6975_v4 = vpop.f32.mrf.mxu1  ;;  %v6985_v35 = vld [vmem:[#allocation2 + $0x20] sm:$0xff] }
 0x152   :  { %v5215_v16 = vpop.f32.mrf.mxu0  ;;  %v1466_v37 = vmax.f32 %v948_v42, 0.0  ;;  %v958_v31 = vadd.f32 %v6727_v36, %v6864_v10  ;;  %v5433_v14 = vpack.i.bf16 %v6985_v35, %v1810_v51  ;;  %v1469_v10 = vmax.f32 %v963_v6, 0.0 }
 0x153   :  { %1707 = vst.msk [vmem:[#allocation2 + $0x74] sm:$0xff] %vm1668_vm4, %v1643_v48  ;;  %v1642_v55 = vmax.f32 %v6787_v61, %v1606_v38  ;;  %v1609_v44 = vmax.f32 %v1465_v1, %v1483_v58  ;;  %v1482_v5 = vmax.f32 %v1028_v18, 0.0  ;;  %v1043_v25 = vadd.f32 %v5215_v16, %v6727_v36  ;;  %v6987_v8 = vpop.f32.mrf.mxu1  ;;  %v6996_v58 = vld [vmem:[#allocation2 + $0x34] sm:$0xff]  ;;  %v6998_v18 = vld [vmem:[#allocation2 + $0x21] sm:$0xff] }
 0x154   :  { %5429 = vrot.lane.b32.xlu1 %v5428_v50, %s6042_s16  ;;  %5424 = vrot.lane.b32.xlu0 %v5423_v40, %s6043_s17  ;;  %v1037_v7 = vpop.f32.mrf.mxu0  ;;  %9564 = vst [vmem:[#allocation14_spill] sm:$0xff] %v6996_v58  ;;  %v5438_v50 = vpack.i.bf16 %v6998_v18, %v6939_v60 }
 0x155   :  { %1702 = vst.msk [vmem:[#allocation2 + $0x68] sm:$0xf] %vm1670_vm2, %v1642_v55  ;;  %v1645_v61 = vmax.f32 %v6792_v3, %v1609_v44  ;;  %v1608_v12 = vmax.f32 %v1464_v33, %v1482_v5  ;;  %v1485_v46 = vmax.f32 %v1043_v25, 0.0  ;;  %v1038_v29 = vadd.f32 %v6727_v36, %v1037_v7  ;;  %v7000_v20 = vpop.f32.mrf.mxu1 }
 0x156   :  { %1706 = vst.msk [vmem:[#allocation2 + $0x6c] sm:$0xf0] %vm1675_vm3, %v1642_v55  ;;  %v5218_v1 = vpop.f32.mrf.mxu0  ;;  %v1468_v44 = vmax.f32 %v958_v31, 0.0  ;;  %v7039_v31 = vld [vmem:[#allocation2 + $0x24] sm:$0xff] }
 0x157   :  { %1712 = vst.msk [vmem:[#allocation2 + $0x88] sm:$0xf] %vm1670_vm2, %v1645_v61  ;;  %v1644_v3 = vmax.f32 %v6797_v9, %v1608_v12  ;;  %v1611_v49 = vmax.f32 %v1467_v62, %v1485_v46  ;;  %v1484_v48 = vmax.f32 %v1038_v29, 0.0  ;;  %v1053_v38 = vadd.f32 %v5218_v1, %v6727_v36  ;;  %v7012_v55 = vpop.f32.mrf.mxu1  ;;  %v7016_v62 = vld [vmem:[#allocation2 + $0x32] sm:$0xff]  ;;  %v1843_v1 = vld [vmem:[#allocation2 + $0x22] sm:$0xff] }
 0x158   :  { %1716 = vst.msk [vmem:[#allocation2 + $0x8c] sm:$0xf0] %vm1675_vm3, %v1645_v61  ;;  %3488 = vrot.lane.b32.xlu1 %v6996_v58, %s6043_s17  ;;  %5434 = vrot.lane.b32.xlu0 %v5433_v14, %s6044_s18  ;;  %v1047_v23 = vpop.f32.mrf.mxu0  ;;  %9565 = vst [vmem:[#allocation15_spill] sm:$0xff] %v7012_v55 }
 0x159   :  { %1711 = vst.msk [vmem:[#allocation2 + $0x80] sm:$0xff] %vm1668_vm4, %v1644_v3  ;;  %v1647_v9 = vmax.f32 %v6802_v15, %v1611_v49  ;;  %v1610_v33 = vmax.f32 %v1466_v37, %v1484_v48  ;;  %v1487_v42 = vmax.f32 %v1053_v38, 0.0  ;;  %v1048_v16 = vadd.f32 %v6727_v36, %v1047_v23  ;;  %v7018_v15 = vld [vmem:[#allocation2 + $0x23] sm:$0xff]  ;;  %v7025_v6 = vpop.f32.mrf.mxu1  ;;  %v7037_v37 = vld [vmem:[#allocation2 + $0x33] sm:$0xff] }
 0x15a   :  { %v7010_v40 = vpop.f32.mrf.mxu0  ;;  %9566 = vst [vmem:[#allocation16_spill] sm:$0xff] %v7025_v6  ;;  %v5448_v61 = vpack.i.bf16 %v7018_v15, %v6955_v57  ;;  %v5443_v3 = vpack.i.bf16 %v1843_v1, %v6937_v22  ;;  %v7059_v49 = vadd.f32 %v6727_v36, %v6814_v43  ;;  %v7063_v38 = vld [vmem:[#allocation2 + $0x30] sm:$0xff]  ;;  %v7069_v23 = vadd.f32 %v6816_v45, %v6727_v36  ;;  %v7224_v6 = vld [vmem:[#allocation2 + $0x43] sm:$0xff] }
 0x15b   :  { %1721 = vst.msk [vmem:[#allocation2 + $0xa0] sm:$0xff] %vm1668_vm4, %v1647_v9  ;;  %v1646_v5 = vmax.f32 %v6805_v21, %v1610_v33  ;;  %v1613_v25 = vmax.f32 %v1469_v10, %v1487_v42  ;;  %v1486_v51 = vmax.f32 %v1048_v16, 0.0  ;;  %v7033_v46 = vpop.f32.mrf.mxu1  ;;  %v7065_v10 = vld [vmem:[#allocation2 + $0x31] sm:$0xff]  ;;  %v7076_v22 = vadd.f32 %v6727_v36, %v6818_v47 }
 0x15c   :  { %5439 = vrot.lane.b32.xlu1 %v5438_v50, %s6045_s19  ;;  %3360 = vrot.lane.b32.xlu0 %v7016_v62, %s6041_s15  ;;  %v7023_v60 = vpop.f32.mrf.mxu0  ;;  %9567 = vst [vmem:[#allocation17_spill] sm:$0xff] %v7033_v46  ;;  %v7084_v45 = vadd.f32 %v6727_v36, %v6826_v52  ;;  %v7090_v42 = vadd.f32 %v6830_v54, %v6727_v36  ;;  %v9580_v43 = vld [vmem:[#allocation12_spill] sm:$0xff] }
 0x15d   :  { %1717 = vst.msk [vmem:[#allocation2 + $0x94] sm:$0xff] %vm1668_vm4, %v1646_v5  ;;  %v1649_v21 = vmax.f32 %v6808_v26, %v1613_v25  ;;  %v1612_v7 = vmax.f32 %v1468_v44, %v1486_v51  ;;  %v7046_v26 = vadd.f32 %v6812_v41, %v6727_v36  ;;  %v7050_v14 = vpop.f32.mrf.mxu1  ;;  %v7094_v16 = vadd.f32 %v6727_v36, %v6834_v56  ;;  %v9569_v5 = vld [vmem:[#allocation6_spill] sm:$0xff]  ;;  %v9570_v25 = vld [vmem:[#allocation7_spill] sm:$0xff]  ;;  %v9571_v51 = vld [vmem:[#allocation8_spill] sm:$0xff] }
 0x15e   :  { %v7031_v12 = vpop.f32.mrf.mxu0  ;;  %9568 = vst [vmem:[#allocation18_spill] sm:$0xff] %v7050_v14  ;;  %v7098_v47 = vadd.f32 %v6838_v59, %v6727_v36  ;;  %v5468_v52 = vpack.i.bf16 %v7063_v38, %v6985_v35  ;;  %v5453_v50 = vpack.i.bf16 %v7065_v10, %v6998_v18  ;;  %v7111_v56 = vadd.f32 %v6846_v0, %v6727_v36  ;;  %v9575_v59 = vld [vmem:[#allocation10_spill] sm:$0xff] }
 0x15f   :  { %1727 = vst.msk [vmem:[#allocation2 + $0xb4] sm:$0xff] %vm1668_vm4, %v1649_v21  ;;  %v1648_v29 = vmax.f32 %v6810_v28, %v1612_v7  ;;  %v5458_v28 = vpack.i.bf16 %v7039_v31, %v6953_v27  ;;  %v5320_v41 = vpop.f32.mrf.mxu1  ;;  %v7080_v27 = vadd.f32 %v6822_v30, %v6727_v36  ;;  %v7102_v30 = vadd.f32 %v6727_v36, %v6842_v32 }
 0x160   :  { %5449 = vrot.lane.b32.xlu1 %v5448_v61, %s6046_s20  ;;  %3424 = vrot.lane.b32.xlu0 %v7037_v37, %s6040_s14  ;;  %v7048_v57 = vpop.f32.mrf.mxu0  ;;  %v7118_v32 = vadd.f32 %v6727_v36, %v9569_v5  ;;  %v7122_v35 = vadd.f32 %v9570_v25, %v6727_v36  ;;  %v7126_v18 = vadd.f32 %v6727_v36, %v9571_v51  ;;  %v1525_v5 = vmax.f32 %v7090_v42, 0.0  ;;  %v9578_v51 = vld [vmem:[#allocation11_spill] sm:$0xff]  ;;  %v9582_v25 = vld [vmem:[#allocation13_spill] sm:$0xff] }
 0x161   :  { %1722 = vst.msk [vmem:[#allocation2 + $0xa8] sm:$0xf] %vm1670_vm2, %v1648_v29  ;;  %v1387_v33 = vpop.f32.mrf.mxu1  ;;  %v5463_v0 = vpack.i.bf16 %v7016_v62, %v1843_v1  ;;  %v7147_v61 = vadd.f32 %v6727_v36, %v9575_v59  ;;  %v1333_v54 = vadd.f32 %v6925_v2, %v6727_v36  ;;  %v7158_v1 = vadd.f32 %v9578_v51, %v6727_v36 }
 0x162   :  { %1726 = vst.msk [vmem:[#allocation2 + $0xac] sm:$0xf0] %vm1675_vm3, %v1648_v29  ;;  %v7061_v48 = vpop.f32.mrf.mxu0  ;;  %9572 = vst [vmem:[#allocation6_spill] sm:$0xff] %v7126_v18  ;;  %v9573_v29 = vld [vmem:[#allocation9_spill] sm:$0xff]  ;;  %v7165_v2 = vadd.f32 %v6727_v36, %v9580_v43  ;;  %v1303_v42 = vadd.f32 %v9582_v25, %v6727_v36  ;;  %v1298_v51 = vadd.f32 %v6727_v36, %v6882_v13 }
 0x163   :  { %v5323_v21 = vpop.f32.mrf.mxu1  ;;  %9576 = vst [vmem:[#allocation8_spill] sm:$0xff] %v7147_v61  ;;  %9579 = vst [vmem:[#allocation10_spill] sm:$0xff] %v7158_v1  ;;  %v7175_v14 = vadd.f32 %v6887_v34, %v6727_v36  ;;  %v7183_v43 = vadd.f32 %v6910_v19, %v6727_v36  ;;  %v1393_v59 = vadd.f32 %v5320_v41, %v6727_v36  ;;  %v1543_v46 = vmax.f32 %v1333_v54, 0.0  ;;  %v7209_v1 = vld [vmem:[#allocation2 + $0x40] sm:$0xff] }
 0x164   :  { %5459 = vrot.lane.b32.xlu1 %v5458_v28, %s6047_s21  ;;  %5444 = vrot.lane.b32.xlu0 %v5443_v3, %s6048_s22  ;;  %v7086_v9 = vpop.f32.mrf.mxu0  ;;  %v7135_v28 = vadd.f32 %v9573_v29, %v6727_v36  ;;  %9581 = vst [vmem:[#allocation11_spill] sm:$0xff] %v7165_v2  ;;  %v5473_v25 = vpack.i.bf16 %v7037_v37, %v7018_v15  ;;  %v1537_v54 = vmax.f32 %v1303_v42, 0.0  ;;  %v7218_v42 = vld [vmem:[#allocation2 + $0x42] sm:$0xff] }
 0x165   :  { %v1397_v7 = vpop.f32.mrf.mxu1  ;;  %v7193_v34 = vadd.f32 %v6727_v36, %v6917_v11  ;;  %v1328_v19 = vadd.f32 %v6727_v36, %v6933_v63  ;;  %v7200_v41 = vadd.f32 %v6944_v53, %v6727_v36  ;;  %v1388_v15 = vadd.f32 %v6727_v36, %v1387_v33  ;;  %v7211_v53 = vld [vmem:[#allocation2 + $0x41] sm:$0xff] }
 0x166   :  { %v7113_v44 = vpop.f32.mrf.mxu0  ;;  %9574 = vst [vmem:[#allocation7_spill] sm:$0xff] %v7135_v28  ;;  %v1536_v28 = vmax.f32 %v1298_v51, 0.0  ;;  %v1403_v63 = vadd.f32 %v5323_v21, %v6727_v36  ;;  %v1539_v33 = vmax.f32 %v7175_v14, 0.0  ;;  %v5483_v11 = vpack.i.bf16 %v6996_v58, %v7039_v31 }
 0x167   :  { %v7221_v21 = vmax.f32 %v1525_v5, %v1543_v46  ;;  %v7232_v46 = vpack.i.bf16 %v7209_v1, %v7063_v38  ;;  %v5523_v2 = vpack.i.bf16 %v7224_v6, %v7037_v37  ;;  %v7244_v38 = vadd.f32 %v7010_v40, %v6727_v36  ;;  %v9614_v37 = vld [vmem:[#allocation14_spill] sm:$0xff] }
 0x168   :  { %5469 = vrot.lane.b32.xlu1 %v5468_v52, %s6049_s23  ;;  %5454 = vrot.lane.b32.xlu0 %v5453_v50, %s6041_s15  ;;  %v7137_v3 = vpop.f32.mrf.mxu0  ;;  %v1557_v5 = vmax.f32 %v1403_v63, 0.0  ;;  %v7255_v40 = vadd.f32 %v6727_v36, %v7023_v60  ;;  %v1338_v60 = vadd.f32 %v6727_v36, %v6957_v17 }
 0x169   :  { %v1489_v17 = vmax.f32 %v7244_v38, 0.0 }
 0x16a   :  { %v7149_v29 = vpop.f32.mrf.mxu0 }
 0x16b   :  { %9577 = vst [vmem:[#allocation9_spill] sm:$0xff] %v7149_v29 }
 0x16c   :  { %5479 = vrot.lane.b32.xlu1 %v5453_v50, %s6050_s24  ;;  %5464 = vrot.lane.b32.xlu0 %v5463_v0, %s6040_s14  ;;  %v7169_v52 = vpop.f32.mrf.mxu0  ;;  %v7179_v50 = vadd.f32 %v6727_v36, %v6898_v39 }
 0x16d   :  { %9583 = vst [vmem:[#allocation12_spill] sm:$0xff] %v7169_v52  ;;  %v5326_v52 = vpop.f32.mrf.mxu1 }
 0x16e   :  { %v7189_v13 = vpop.f32.mrf.mxu0  ;;  %v1538_v61 = vmax.f32 %v7179_v50, 0.0  ;;  %v1542_v50 = vmax.f32 %v1328_v19, 0.0  ;;  %v1413_v19 = vadd.f32 %v5326_v52, %v6727_v36  ;;  %v9586_v52 = vmax.f32 %v7046_v26, 0.0 }
 0x16f   :  { %9584 = vst [vmem:[#allocation13_spill] sm:$0xff] %v7189_v13  ;;  %v1555_v13 = vmax.f32 %v1393_v59, 0.0  ;;  %v1554_v59 = vmax.f32 %v1388_v15, 0.0  ;;  %v1407_v18 = vpop.f32.mrf.mxu1  ;;  %v1629_v26 = vmax.f32 %v1539_v33, %v1557_v5  ;;  %v9590_v33 = vmax.f32 %v7069_v23, 0.0  ;;  %v7283_v23 = vld [vmem:[%s9459_s2] ss:$0 sm:$0xff] }
 0x170   :  { %5489 = vrot.lane.b32.xlu1 %v5463_v0, %s6051_s25  ;;  %5474 = vrot.lane.b32.xlu0 %v5473_v25, %s6043_s17  ;;  %v7206_v39 = vpop.f32.mrf.mxu0  ;;  %v1545_v0 = vmax.f32 %v7200_v41, 0.0  ;;  %v1408_v63 = vadd.f32 %v6727_v36, %v1407_v18  ;;  %v9587_v18 = vmax.f32 %v7094_v16, 0.0  ;;  %s6054_s2 = smov 90  }
 0x171   :  { %9585 = vst [vmem:[#allocation19_spill] sm:$0xff] %v7206_v39  ;;  %v1398_v39 = vadd.f32 %v6727_v36, %v1397_v7  ;;  %v1626_v41 = vmax.f32 %v1536_v28, %v1554_v59 }
 0x172   :  { %v5239_v51 = vpop.f32.mrf.mxu0 }
 0x173   :  { %v1123_v14 = vadd.f32 %v5239_v51, %v6727_v36  ;;  %v1556_v31 = vmax.f32 %v1398_v39, 0.0  ;;  %v7259_v39 = vmax.f32 %v9587_v18, %v1542_v50  ;;  %v1558_v50 = vmax.f32 %v1408_v63, 0.0 }
 0x174   :  { %5494 = vrot.lane.b32.xlu1 %v5473_v25, %s6052_s26  ;;  %5484 = vrot.lane.b32.xlu0 %v5483_v11, %s6042_s16  ;;  %v1117_v7 = vpop.f32.mrf.mxu0  ;;  %v1627_v25 = vmax.f32 %v1537_v54, %v1555_v13  ;;  %v1559_v54 = vmax.f32 %v1413_v19, 0.0 }
 0x175   :  { %v1501_v15 = vmax.f32 %v1123_v14, 0.0  ;;  %v1118_v51 = vadd.f32 %v6727_v36, %v1117_v7  ;;  %v1628_v16 = vmax.f32 %v1538_v61, %v1556_v31  ;;  %v1348_v61 = vadd.f32 %v7283_v23, %v6975_v4 }
 0x176   :  { %v5242_v58 = vpop.f32.mrf.mxu0  ;;  %v9592_v31 = vmax.f32 %v7076_v22, 0.0  ;;  %v1363_v4 = vadd.f32 %v7283_v23, %v6987_v8  ;;  %v7302_v22 = vld [vmem:[#allocation2 + $0x44] sm:$0xff]  ;;  %v1068_v8 = vadd.f32 %v7283_v23, %v7048_v57  ;;  %v1358_v57 = vadd.f32 %v7283_v23, %v7000_v20 }
 0x177   :  { %v1591_v29 = vmax.f32 %v1501_v15, %v9586_v52  ;;  %v1500_v55 = vmax.f32 %v1118_v51, 0.0  ;;  %v1133_v14 = vadd.f32 %v5242_v58, %v6727_v36  ;;  %v9588_v58 = vmax.f32 %v7059_v49, 0.0 }
 0x178   :  { %5499 = vrot.lane.b32.xlu1 %v5483_v11, %s6053_s27  ;;  %3362 = vrot.lane.b32.xlu0 %v7218_v42, %s6041_s15  ;;  %v1127_v13 = vpop.f32.mrf.mxu0  ;;  %v9589_v51 = vmax.f32 %v7098_v47, 0.0 }
 0x179   :  { %v1590_v28 = vmax.f32 %v1500_v55, %v9588_v58  ;;  %v1503_v59 = vmax.f32 %v1133_v14, 0.0  ;;  %v1128_v11 = vadd.f32 %v6727_v36, %v1127_v13  ;;  %v1663_v7 = vmax.f32 %v1591_v29, %v1627_v25 }
 0x17a   :  { %v5245_v15 = vpop.f32.mrf.mxu0  ;;  %v7266_v52 = vmax.f32 %v9589_v51, %v1545_v0  ;;  %v9591_v29 = vmax.f32 %v7183_v43, 0.0  ;;  %v1488_v14 = vmax.f32 %v7255_v40, 0.0  ;;  %v9593_v43 = vmax.f32 %v7193_v34, 0.0 }
 0x17b   :  { %v1593_v5 = vmax.f32 %v1503_v59, %v9590_v33  ;;  %v1502_v19 = vmax.f32 %v1128_v11, 0.0  ;;  %v1143_v55 = vadd.f32 %v5245_v15, %v6727_v36  ;;  %1714 = vst.msk [vmem:[#allocation2 + $0x148] sm:$0xf] %vm1670_vm2, %v1663_v7  ;;  %v1662_v49 = vmax.f32 %v1590_v28, %v1626_v41 }
 0x17c   :  { %1718 = vst.msk [vmem:[#allocation2 + $0x14c] sm:$0xf0] %vm1675_vm3, %v1663_v7  ;;  %3552 = vrot.lane.b32.xlu1 %v7209_v1, %s6042_s16  ;;  %3426 = vrot.lane.b32.xlu0 %v7224_v6, %s6040_s14  ;;  %v1137_v47 = vpop.f32.mrf.mxu0  ;;  %v1353_v36 = vadd.f32 %v7283_v23, %v6966_v24  ;;  %v1631_v0 = vmax.f32 %v9591_v29, %v1559_v54  ;;  %v9594_v54 = vmax.f32 %v7080_v27, 0.0  ;;  %v1546_v27 = vmax.f32 %v1348_v61, 0.0 }
 0x17d   :  { %v1592_v41 = vmax.f32 %v1502_v19, %v9592_v31  ;;  %v1505_v25 = vmax.f32 %v1143_v55, 0.0  ;;  %v1138_v38 = vadd.f32 %v7283_v23, %v1137_v47  ;;  %1713 = vst.msk [vmem:[#allocation2 + $0x140] sm:$0xff] %vm1668_vm4, %v1662_v49  ;;  %v1665_v63 = vmax.f32 %v1593_v5, %v1629_v26 }
 0x17e   :  { %v1073_v24 = vadd.f32 %v7283_v23, %v7031_v12  ;;  %v5248_v13 = vpop.f32.mrf.mxu0  ;;  %v1630_v18 = vmax.f32 %v9593_v43, %v1558_v50  ;;  %v1544_v12 = vmax.f32 %v1338_v60, 0.0  ;;  %v1547_v34 = vmax.f32 %v1353_v36, 0.0 }
 0x17f   :  { %v1595_v58 = vmax.f32 %v1505_v25, %v9594_v54  ;;  %v1504_v28 = vmax.f32 %v1138_v38, 0.0  ;;  %v1153_v26 = vadd.f32 %v7283_v23, %v5248_v13  ;;  %1723 = vst.msk [vmem:[#allocation2 + $0x160] sm:$0xff] %vm1668_vm4, %v1665_v63  ;;  %v1664_v40 = vmax.f32 %v1592_v41, %v1628_v16 }
 0x180   :  { %3616 = vrot.lane.b32.xlu1 %v7211_v53, %s6044_s18  ;;  %3490 = vrot.lane.b32.xlu0 %v7302_v22, %s6043_s17  ;;  %v1147_v59 = vpop.f32.mrf.mxu0  ;;  %v9595_v11 = vmax.f32 %v7084_v45, 0.0  ;;  %v1491_v50 = vmax.f32 %v1073_v24, 0.0  ;;  %v1083_v33 = vadd.f32 %v7283_v23, %v7061_v48  ;;  %v1549_v19 = vmax.f32 %v1363_v4, 0.0 }
 0x181   :  { %v1507_v15 = vmax.f32 %v1153_v26, 0.0  ;;  %v1148_v51 = vadd.f32 %v7283_v23, %v1147_v59  ;;  %1719 = vst.msk [vmem:[#allocation2 + $0x154] sm:$0xff] %vm1668_vm4, %v1664_v40  ;;  %v1667_v16 = vmax.f32 %v1595_v58, %v1631_v0  ;;  %v1490_v47 = vmax.f32 %v1068_v8, 0.0 }
 0x182   :  { %v1594_v7 = vmax.f32 %v1504_v28, %v9595_v11  ;;  %v5251_v5 = vpop.f32.mrf.mxu0  ;;  %v1078_v48 = vadd.f32 %v7283_v23, %v7086_v9  ;;  %v9596_v36 = vmax.f32 %v7102_v30, 0.0  ;;  %v1493_v38 = vmax.f32 %v1083_v33, 0.0  ;;  %v9605_v11 = vld [vmem:[#allocation16_spill] sm:$0xff] }
 0x183   :  { %v1579_v60 = vmax.f32 %v1489_v17, %v1507_v15  ;;  %v1506_v55 = vmax.f32 %v1148_v51, 0.0  ;;  %v1163_v45 = vadd.f32 %v7283_v23, %v5251_v5  ;;  %1729 = vst.msk [vmem:[#allocation2 + $0x174] sm:$0xff] %vm1668_vm4, %v1667_v16  ;;  %v9597_v17 = vmax.f32 %v7111_v56, 0.0  ;;  %v9606_v5 = vld [vmem:[#allocation12_spill] sm:$0xff] }
 0x184   :  { %v1666_v49 = vmax.f32 %v1594_v7, %v1630_v18  ;;  %3680 = vrot.lane.b32.xlu1 %v7218_v42, %s6045_s19  ;;  %5504 = vrot.lane.b32.xlu0 %v7232_v46, %s6044_s18  ;;  %v1616_v20 = vmax.f32 %v9596_v36, %v1544_v12  ;;  %v1157_v29 = vpop.f32.mrf.mxu0  ;;  %v1093_v9 = vadd.f32 %v7283_v23, %v7113_v44  ;;  %v9598_v30 = vmax.f32 %v7118_v32, 0.0 }
 0x185   :  { %v1619_v61 = vmax.f32 %v9597_v17, %v1547_v34  ;;  %v1651_v0 = vmax.f32 %v1579_v60, %v7221_v21  ;;  %v1578_v31 = vmax.f32 %v1488_v14, %v1506_v55  ;;  %v1509_v41 = vmax.f32 %v1163_v45, 0.0  ;;  %v9602_v34 = vld [vmem:[#allocation9_spill] sm:$0xff] }
 0x186   :  { %v1158_v25 = vadd.f32 %v7283_v23, %v1157_v29  ;;  %1724 = vst.msk [vmem:[#allocation2 + $0x168] sm:$0xf] %vm1670_vm2, %v1666_v49  ;;  %v1618_v63 = vmax.f32 %v9598_v30, %v1546_v27  ;;  %v1548_v56 = vmax.f32 %v1358_v57, 0.0  ;;  %v5254_v24 = vpop.f32.mrf.mxu0  ;;  %v9599_v44 = vpack.i.bf16 %v7211_v53, %v7065_v10  ;;  %v9607_v60 = vld [vmem:[#allocation17_spill] sm:$0xff] }
 0x187   :  { %1728 = vst.msk [vmem:[#allocation2 + $0x16c] sm:$0xf0] %vm1675_vm3, %v1666_v49  ;;  %1678 = vst.msk [vmem:[#allocation2 + $0xcc] sm:$0xf0] %vm1675_vm3, %v1651_v0  ;;  %v1650_v21 = vmax.f32 %v1578_v31, %v7259_v39  ;;  %v1581_v14 = vmax.f32 %v1491_v50, %v1509_v41  ;;  %v1173_v4 = vadd.f32 %v7283_v23, %v5254_v24  ;;  %v1492_v32 = vmax.f32 %v1078_v48, 0.0  ;;  %v9601_v39 = vld [vmem:[#allocation15_spill] sm:$0xff] }
 0x188   :  { %1673 = vst.msk [vmem:[#allocation2 + $0xc8] sm:$0xf] %vm1670_vm2, %v1651_v0  ;;  %v1508_v13 = vmax.f32 %v1158_v25, 0.0  ;;  %3744 = vrot.lane.b32.xlu1 %v7224_v6, %s6048_s22  ;;  %5509 = vrot.lane.b32.xlu0 %v9599_v44, %s6045_s19  ;;  %v1088_v43 = vadd.f32 %v7283_v23, %v7137_v3  ;;  %v9600_v18 = vmax.f32 %v7122_v35, 0.0  ;;  %v1373_v58 = vadd.f32 %v7283_v23, %v9601_v39  ;;  %v1167_v28 = vpop.f32.mrf.mxu0  ;;  %v9603_v3 = vld [vmem:[#allocation6_spill] sm:$0xff]  ;;  %v9608_v17 = vld [vmem:[#allocation13_spill] sm:$0xff] }
 0x189   :  { %1672 = vst.msk [vmem:[#allocation2 + $0xc0] sm:$0xff] %vm1668_vm4, %v1650_v21  ;;  %v1653_v26 = vmax.f32 %v1581_v14, %v7266_v52  ;;  %v1511_v8 = vmax.f32 %v1173_v4, 0.0  ;;  %v1168_v10 = vadd.f32 %v7283_v23, %v1167_v28  ;;  %v1495_v12 = vmax.f32 %v1093_v9, 0.0  ;;  %v9609_v0 = vld [vmem:[#allocation18_spill] sm:$0xff]  ;;  %v9611_v24 = vld [vmem:[#allocation19_spill] sm:$0xff] }
 0x18a   :  { %v1621_v54 = vmax.f32 %v9600_v18, %v1549_v19  ;;  %v1580_v40 = vmax.f32 %v1490_v47, %v1508_v13  ;;  %v1103_v59 = vadd.f32 %v7283_v23, %v9602_v34  ;;  %v9604_v27 = vmax.f32 %v9603_v3, 0.0  ;;  %v5257_v15 = vpop.f32.mrf.mxu0  ;;  %v9612_v14 = vld [vmem:[#allocation7_spill] sm:$0xff] }
 0x18b   :  { %v1368_v7 = vadd.f32 %v7283_v23, %v9605_v11  ;;  %1683 = vst.msk [vmem:[#allocation2 + $0xe0] sm:$0xff] %vm1668_vm4, %v1653_v26  ;;  %v1583_v16 = vmax.f32 %v1493_v38, %v1511_v8  ;;  %v1510_v52 = vmax.f32 %v1168_v10, 0.0  ;;  %v1183_v50 = vadd.f32 %v7283_v23, %v5257_v15  ;;  %v7404_v10 = vld [vmem:[#allocation2 + $0x51] sm:$0xff] }
 0x18c   :  { %v1620_v35 = vmax.f32 %v9604_v27, %v1548_v56  ;;  %v1652_v51 = vmax.f32 %v1580_v40, %v1616_v20  ;;  %3808 = vrot.lane.b32.xlu1 %v7302_v22, %s6046_s20  ;;  %5519 = vrot.lane.b32.xlu0 %v7232_v46, %s6054_s2  ;;  %v1494_v33 = vmax.f32 %v1088_v43, 0.0  ;;  %v1098_v19 = vadd.f32 %v7283_v23, %v9606_v5  ;;  %v1177_v45 = vpop.f32.mrf.mxu0  ;;  %v9617_v27 = vld [vmem:[#allocation10_spill] sm:$0xff]  ;;  %v9619_v5 = vld [vmem:[#allocation11_spill] sm:$0xff] }
 0x18d   :  { %v1551_v57 = vmax.f32 %v1373_v58, 0.0  ;;  %v1383_v55 = vadd.f32 %v7283_v23, %v9607_v60  ;;  %v1655_v49 = vmax.f32 %v1583_v16, %v1619_v61  ;;  %v1582_v47 = vmax.f32 %v1492_v32, %v1510_v52  ;;  %v9615_v58 = vld [vmem:[#allocation8_spill] sm:$0xff] }
 0x18e   :  { %1679 = vst.msk [vmem:[#allocation2 + $0xd4] sm:$0xff] %vm1668_vm4, %v1652_v51  ;;  %v1513_v48 = vmax.f32 %v1183_v50, 0.0  ;;  %v1178_v36 = vadd.f32 %v7283_v23, %v1177_v45  ;;  %v1497_v20 = vmax.f32 %v1103_v59, 0.0  ;;  %v1113_v46 = vadd.f32 %v7283_v23, %v9608_v17  ;;  %v5260_v41 = vpop.f32.mrf.mxu0  ;;  %v7416_v50 = vld [vmem:[#allocation2 + $0x52] sm:$0xff] }
 0x18f   :  { %v1550_v29 = vmax.f32 %v1368_v7, 0.0  ;;  %v1378_v31 = vadd.f32 %v7283_v23, %v9609_v0  ;;  %1689 = vst.msk [vmem:[#allocation2 + $0xf4] sm:$0xff] %vm1668_vm4, %v1655_v49  ;;  %v1654_v25 = vmax.f32 %v1582_v47, %v1618_v63  ;;  %v1193_v61 = vadd.f32 %v7283_v23, %v5260_v41  ;;  %v7428_v47 = vld [vmem:[#allocation2 + $0x53] sm:$0xff] }
 0x190   :  { %v1585_v38 = vmax.f32 %v1495_v12, %v1513_v48  ;;  %v1512_v9 = vmax.f32 %v1178_v36, 0.0  ;;  %v9610_v30 = vpack.i.bf16 %v7218_v42, %v7016_v62  ;;  %5524 = vrot.lane.b32.xlu0 %v5523_v2, %s6046_s20  ;;  %v1496_v56 = vmax.f32 %v1098_v19, 0.0  ;;  %v1187_v44 = vpop.f32.mrf.mxu0  ;;  %v2051_v48 = vld [vmem:[#allocation2 + $0x50] sm:$0xff] }
 0x191   :  { %v1108_v21 = vadd.f32 %v7283_v23, %v9611_v24  ;;  %v9613_v63 = vmax.f32 %v9612_v14, 0.0  ;;  %v1553_v4 = vmax.f32 %v1383_v55, 0.0  ;;  %1684 = vst.msk [vmem:[#allocation2 + $0xe8] sm:$0xf] %vm1670_vm2, %v1654_v25  ;;  %v1515_v43 = vmax.f32 %v1193_v61, 0.0  ;;  %v2116_v61 = vld [vmem:[#allocation2 + $0x64] sm:$0xff] }
 0x192   :  { %5514 = vrot.lane.b32.xlu1 %v9610_v30, %s6048_s22  ;;  %1688 = vst.msk [vmem:[#allocation2 + $0xec] sm:$0xf0] %vm1675_vm3, %v1654_v25  ;;  %v1657_v62 = vmax.f32 %v1585_v38, %v1621_v54  ;;  %v1584_v32 = vmax.f32 %v1494_v33, %v1512_v9  ;;  %v1188_v18 = vadd.f32 %v7283_v23, %v1187_v44  ;;  %v1499_v39 = vmax.f32 %v1113_v46, 0.0  ;;  %v5263_v8 = vpop.f32.mrf.mxu0  ;;  %v7418_v33 = vld [vmem:[#allocation2 + $0x60] sm:$0xff]  ;;  %v7490_v24 = vld [vmem:[#allocation2 + $0x71] sm:$0xff] }
 0x193   :  { %v1623_v13 = vmax.f32 %v9613_v63, %v1551_v57  ;;  %v5528_v2 = vpack.i.bf16 %v7302_v22, %v9614_v37  ;;  %v9616_v28 = vmax.f32 %v9615_v58, 0.0  ;;  %v1552_v40 = vmax.f32 %v1378_v31, 0.0  ;;  %v2084_v31 = vld [vmem:[#allocation2 + $0x62] sm:$0xff]  ;;  %v7499_v63 = vld [vmem:[#allocation2 + $0x72] sm:$0xff] }
 0x194   :  { %1694 = vst.msk [vmem:[#allocation2 + $0x108] sm:$0xf] %vm1670_vm2, %v1657_v62  ;;  %v1656_v54 = vmax.f32 %v1584_v32, %v1620_v35  ;;  %v1587_v12 = vmax.f32 %v1497_v20, %v1515_v43  ;;  %v1514_v34 = vmax.f32 %v1188_v18, 0.0  ;;  %v1203_v59 = vadd.f32 %v7283_v23, %v5263_v8  ;;  %v1197_v15 = vpop.f32.mrf.mxu0  ;;  %v7436_v20 = vld [vmem:[#allocation2 + $0x54] sm:$0xff]  ;;  %v2100_v25 = vld [vmem:[#allocation2 + $0x63] sm:$0xff] }
 0x195   :  { %v1622_v26 = vmax.f32 %v9616_v28, %v1550_v29  ;;  %1698 = vst.msk [vmem:[#allocation2 + $0x10c] sm:$0xf0] %vm1675_vm3, %v1657_v62  ;;  %5529 = vrot.lane.b32.xlu0 %v5528_v2, %s6047_s21  ;;  %v1498_v3 = vmax.f32 %v1108_v21, 0.0  ;;  %v9618_v11 = vmax.f32 %v9617_v27, 0.0  ;;  %v1198_v35 = vadd.f32 %v7283_v23, %v1197_v15  ;;  %v7508_v44 = vld [vmem:[#allocation2 + $0x73] sm:$0xff] }
 0x196   :  { %3618 = vrot.lane.b32.xlu1 %v7404_v10, %s6044_s18  ;;  %1693 = vst.msk [vmem:[#allocation2 + $0x100] sm:$0xff] %vm1668_vm4, %v1656_v54  ;;  %v1659_v51 = vmax.f32 %v1587_v12, %v1623_v13  ;;  %v1586_v16 = vmax.f32 %v1496_v56, %v1514_v34  ;;  %v1517_v52 = vmax.f32 %v1203_v59, 0.0  ;;  %v9620_v19 = vmax.f32 %v9619_v5, 0.0  ;;  %v2053_v62 = vld [vmem:[#allocation2 + $0x70] sm:$0xff] }
 0x197   :  { %v1625_v7 = vmax.f32 %v9618_v11, %v1553_v4  ;;  %v1516_v45 = vmax.f32 %v1198_v35, 0.0  ;;  %v5533_v17 = vpack.i.bf16 %v7404_v10, %v7211_v53  ;;  %v5543_v46 = vpack.i.bf16 %v2051_v48, %v7209_v1 }
 0x198   :  { %v1624_v57 = vmax.f32 %v9620_v19, %v1552_v40  ;;  %1703 = vst.msk [vmem:[#allocation2 + $0x120] sm:$0xff] %vm1668_vm4, %v1659_v51  ;;  %v1658_v60 = vmax.f32 %v1586_v16, %v1622_v26  ;;  %v1589_v55 = vmax.f32 %v1499_v39, %v1517_v52  ;;  %v5538_v29 = vpack.i.bf16 %v7416_v50, %v7218_v42  ;;  %v7464_v42 = vld [vmem:[#allocation2 + $0x74] sm:$0xff]  ;;  %v7564_v52 = vld [vmem:[#allocation2 + $0x80] sm:$0xff] }
 0x199   :  { %3556 = vrot.lane.b32.xlu0 %v7418_v33, %s6042_s16  ;;  %v1588_v49 = vmax.f32 %v1498_v3, %v1516_v45  ;;  %v5548_v53 = vpack.i.bf16 %v7428_v47, %v7224_v6  ;;  %v5568_v1 = vpack.i.bf16 %v7418_v33, %v2051_v48  ;;  %v5558_v0 = vpack.i.bf16 %v7436_v20, %v7302_v22  ;;  %v2068_v6 = vld [vmem:[#allocation2 + $0x61] sm:$0xff] }
 0x19a   :  { %3682 = vrot.lane.b32.xlu1 %v7416_v50, %s6045_s19  ;;  %1699 = vst.msk [vmem:[#allocation2 + $0x114] sm:$0xff] %vm1668_vm4, %v1658_v60  ;;  %v1661_v23 = vmax.f32 %v1589_v55, %v1625_v7  ;;  %v5588_v18 = vpack.i.bf16 %v2068_v6, %v7404_v10  ;;  %v5593_v39 = vpack.i.bf16 %v2084_v31, %v7416_v50  ;;  %v2070_v45 = vld [vmem:[#allocation2 + $0x81] sm:$0xff] }
 0x19b   :  { %v1660_v36 = vmax.f32 %v1588_v49, %v1624_v57  ;;  %v5598_v26 = vpack.i.bf16 %v2100_v25, %v7428_v47  ;;  %v5608_v40 = vpack.i.bf16 %v2116_v61, %v7436_v20  ;;  %v5603_v54 = vpack.i.bf16 %v7490_v24, %v2068_v6  ;;  %v2023_v57 = vld [vmem:[#allocation2 + $0x83] sm:$0xff] }
 0x19c   :  { %1709 = vst.msk [vmem:[#allocation2 + $0x134] sm:$0xff] %vm1668_vm4, %v1661_v23  ;;  %v5618_v12 = vpack.i.bf16 %v2053_v62, %v7418_v33  ;;  %v5613_v3 = vpack.i.bf16 %v7499_v63, %v2084_v31  ;;  %v5623_v7 = vpack.i.bf16 %v7508_v44, %v2100_v25  ;;  %v5633_v16 = vpack.i.bf16 %v7464_v42, %v2116_v61  ;;  %v7573_v33 = vld [vmem:[#allocation2 + $0x82] sm:$0xff] }
 0x19d   :  { %3554 = vrot.lane.b32.xlu0 %v2051_v48, %s6042_s16  ;;  %1704 = vst.msk [vmem:[#allocation2 + $0x128] sm:$0xf] %vm1670_vm2, %v1660_v36  ;;  %v2039_v23 = vld [vmem:[#allocation2 + $0x84] sm:$0xff]  ;;  %v5653_v48 = vpack.i.bf16 %v7564_v52, %v2053_v62  ;;  %vm3310_vm2 = vcmask 687104  }
 0x19e   :  { %3746 = vrot.lane.b32.xlu1 %v7428_v47, %s6048_s22  ;;  %1708 = vst.msk [vmem:[#allocation2 + $0x12c] sm:$0xf0] %vm1675_vm3, %v1660_v36  ;;  %vm9553_vm3 = vcmask 736256  }
 0x1a1   :  { %3364 = vrot.lane.b32.xlu0 %v7416_v50, %s6041_s15 }
 0x1a2   :  { %3810 = vrot.lane.b32.xlu1 %v7436_v20, %s6046_s20 }
 0x1a5   :  { %3428 = vrot.lane.b32.xlu0 %v7428_v47, %s6040_s14 }
 0x1a6   :  { %5534 = vrot.lane.b32.xlu1 %v5533_v17, %s6041_s15 }
 0x1a9   :  { %3492 = vrot.lane.b32.xlu0 %v7436_v20, %s6043_s17 }
 0x1aa   :  { %5544 = vrot.lane.b32.xlu1 %v5543_v46, %s6049_s23 }
 0x1ad   :  { %5539 = vrot.lane.b32.xlu0 %v5538_v29, %s6040_s14 }
 0x1ae   :  { %5554 = vrot.lane.b32.xlu1 %v5533_v17, %s6050_s24  ;;  %v5658_v17 = vpack.i.bf16 %v2070_v45, %v7490_v24 }
 0x1b1   :  { %5549 = vrot.lane.b32.xlu0 %v5548_v53, %s6043_s17 }
 0x1b2   :  { %5564 = vrot.lane.b32.xlu1 %v5538_v29, %s6051_s25 }
 0x1b5   :  { %5559 = vrot.lane.b32.xlu0 %v5558_v0, %s6042_s16 }
 0x1b6   :  { %5569 = vrot.lane.b32.xlu1 %v5568_v1, %s6044_s18 }
 0x1b9   :  { %5574 = vrot.lane.b32.xlu0 %v5548_v53, %s6052_s26  ;;  %v5663_v53 = vpack.i.bf16 %v7573_v33, %v7499_v63 }
 0x1ba   :  { %3814 = vrot.lane.b32.xlu1 %v7464_v42, %s6046_s20 }
 0x1bd   :  { %5579 = vrot.lane.b32.xlu0 %v5558_v0, %s6053_s27 }
 0x1be   :  { %3620 = vrot.lane.b32.xlu1 %v2068_v6, %s6044_s18  ;;  %v1880_v6 = vld [vmem:[#allocation2 + $0x74] sm:$0xff] }
 0x1c1   :  { %5584 = vrot.lane.b32.xlu0 %v5568_v1, %s6054_s2 }
 0x1c2   :  { %3684 = vrot.lane.b32.xlu1 %v2084_v31, %s6045_s19  ;;  %v7473_v22 = vpop.permute.xlu1 %5419  ;;  %v7475_v41 = vpop.permute.xlu0 %5414 }
 0x1c3   :  { %9621 = vst [vmem:[#allocation15_spill] sm:$0xff] %v7473_v22  ;;  %9622 = vst [vmem:[#allocation9_spill] sm:$0xff] %v7475_v41 }
 0x1c5   :  { %3496 = vrot.lane.b32.xlu0 %v7464_v42, %s6043_s17  ;;  %v5673_v42 = vpack.i.bf16 %v2023_v57, %v7508_v44 }
 0x1c6   :  { %3748 = vrot.lane.b32.xlu1 %v2100_v25, %s6048_s22  ;;  %v7480_v38 = vpop.permute.xlu1 %5429  ;;  %v7482_v9 = vpop.permute.xlu0 %5424 }
 0x1c7   :  { %9623 = vst [vmem:[#allocation6_spill] sm:$0xff] %v7480_v38  ;;  %9624 = vst [vmem:[#allocation16_spill] sm:$0xff] %v7482_v9  ;;  %v1883_v9 = vld [vmem:[#allocation2 + $0xe4] sm:$0xff] }
 0x1c9   :  { %3366 = vrot.lane.b32.xlu0 %v2084_v31, %s6041_s15 }
 0x1ca   :  { %3812 = vrot.lane.b32.xlu1 %v2116_v61, %s6046_s20  ;;  %v7486_v30 = vpop.permute.xlu1 %3488  ;;  %v7488_v56 = vpop.permute.xlu0 %5434 }
 0x1cb   :  { %9625 = vst [vmem:[#allocation12_spill] sm:$0xff] %v7488_v56  ;;  %v1802_v56 = vld [vmem:[#allocation2 + $0xc4] sm:$0xff] }
 0x1cd   :  { %3430 = vrot.lane.b32.xlu0 %v2100_v25, %s6040_s14 }
 0x1ce   :  { %3622 = vrot.lane.b32.xlu1 %v7490_v24, %s6044_s18  ;;  %v7495_v21 = vpop.permute.xlu1 %5439  ;;  %v7497_v14 = vpop.permute.xlu0 %3360  ;;  %v2056_v24 = vld [vmem:[#allocation2 + $0xa0] sm:$0xff] }
 0x1cf   :  { %9626 = vst [vmem:[#allocation17_spill] sm:$0xff] %v7495_v21  ;;  %v1787_v21 = vld [vmem:[#allocation2 + $0xd3] sm:$0xff] }
 0x1d1   :  { %3494 = vrot.lane.b32.xlu0 %v2116_v61, %s6043_s17  ;;  %v5678_v61 = vpack.i.bf16 %v2039_v23, %v1880_v6 }
 0x1d2   :  { %3686 = vrot.lane.b32.xlu1 %v7499_v63, %s6045_s19  ;;  %v7504_v13 = vpop.permute.xlu1 %5449  ;;  %v7506_v4 = vpop.permute.xlu0 %3424 }
 0x1d3   :  { %9627 = vst [vmem:[#allocation13_spill] sm:$0xff] %v7504_v13 }
 0x1d5   :  { %3558 = vrot.lane.b32.xlu0 %v2053_v62, %s6042_s16 }
 0x1d6   :  { %3750 = vrot.lane.b32.xlu1 %v7508_v44, %s6048_s22  ;;  %v7513_v32 = vpop.permute.xlu1 %5459  ;;  %v7515_v43 = vpop.permute.xlu0 %5444 }
 0x1d7   :  { %9628 = vst [vmem:[#allocation18_spill] sm:$0xff] %v7513_v32  ;;  %9629 = vst [vmem:[#allocation19_spill] sm:$0xff] %v7515_v43  ;;  %v1786_v43 = vld [vmem:[#allocation2 + $0xc3] sm:$0xff] }
 0x1d9   :  { %3368 = vrot.lane.b32.xlu0 %v7499_v63, %s6041_s15 }
 0x1da   :  { %5589 = vrot.lane.b32.xlu1 %v5588_v18, %s6045_s19  ;;  %v7521_v37 = vpop.permute.xlu1 %5469  ;;  %v7523_v2 = vpop.permute.xlu0 %5454  ;;  %v2055_v18 = vld [vmem:[#allocation2 + $0x90] sm:$0xff] }
 0x1db   :  { %9630 = vst [vmem:[#allocation7_spill] sm:$0xff] %v7521_v37  ;;  %9631 = vst [vmem:[#allocation14_spill] sm:$0xff] %v7523_v2  ;;  %v2129_v2 = vld [vmem:[#allocation2 + $0x174] sm:$0xff] }
 0x1dc   :  { %v7786_v37 = vld [vmem:[#allocation2 + $0xd2] sm:$0xff] }
 0x1dd   :  { %3432 = vrot.lane.b32.xlu0 %v7508_v44, %s6040_s14  ;;  %v7630_v44 = vld [vmem:[#allocation2 + $0x91] sm:$0xff] }
 0x1de   :  { %5594 = vrot.lane.b32.xlu1 %v5593_v39, %s6048_s22  ;;  %v7529_v58 = vpop.permute.xlu1 %5479  ;;  %v7531_v28 = vpop.permute.xlu0 %5464  ;;  %9645 = vst [vmem:[#allocation30_spill] sm:$0xff] %v7630_v44 }
 0x1df   :  { %9632 = vst [vmem:[#allocation8_spill] sm:$0xff] %v7529_v58  ;;  %9633 = vst [vmem:[#allocation10_spill] sm:$0xff] %v7531_v28  ;;  %v7777_v28 = vld [vmem:[#allocation2 + $0xd1] sm:$0xff] }
 0x1e1   :  { %5609 = vrot.lane.b32.xlu0 %v5608_v40, %s6047_s21  ;;  %v2087_v40 = vld [vmem:[#allocation2 + $0x92] sm:$0xff] }
 0x1e2   :  { %5599 = vrot.lane.b32.xlu1 %v5598_v26, %s6046_s20  ;;  %v7537_v8 = vpop.permute.xlu1 %5489  ;;  %v7539_v10 = vpop.permute.xlu0 %5474 }
 0x1e3   :  { %9634 = vst [vmem:[#allocation11_spill] sm:$0xff] %v7537_v8  ;;  %9635 = vst [vmem:[#allocation20_spill] sm:$0xff] %v7539_v10  ;;  %v2081_v10 = vld [vmem:[#allocation2 + $0x171] sm:$0xff]  ;;  %v1754_v8 = vld [vmem:[#allocation2 + $0xc1] sm:$0xff] }
 0x1e5   :  { %5619 = vrot.lane.b32.xlu0 %v5618_v12, %s6049_s23 }
 0x1e6   :  { %5604 = vrot.lane.b32.xlu1 %v5603_v54, %s6041_s15  ;;  %v7545_v34 = vpop.permute.xlu1 %5494  ;;  %v7547_v59 = vpop.permute.xlu0 %5484 }
 0x1e7   :  { %9636 = vst [vmem:[#allocation21_spill] sm:$0xff] %v7545_v34  ;;  %9637 = vst [vmem:[#allocation22_spill] sm:$0xff] %v7547_v59  ;;  %v2016_v34 = vld [vmem:[#allocation2 + $0x152] sm:$0xff] }
 0x1e8   :  { %v2065_v59 = vld [vmem:[#allocation2 + $0x170] sm:$0xff] }
 0x1e9   :  { %5629 = vrot.lane.b32.xlu0 %v5603_v54, %s6050_s24 }
 0x1ea   :  { %5614 = vrot.lane.b32.xlu1 %v5613_v3, %s6040_s14  ;;  %v7552_v27 = vpop.permute.xlu1 %5499  ;;  %v7554_v11 = vpop.permute.xlu0 %3362 }
 0x1eb   :  { %9638 = vst [vmem:[#allocation23_spill] sm:$0xff] %v7552_v27  ;;  %v2064_v27 = vld [vmem:[#allocation2 + $0x160] sm:$0xff] }
 0x1ed   :  { %5639 = vrot.lane.b32.xlu0 %v5613_v3, %s6051_s25  ;;  %v2103_v3 = vld [vmem:[#allocation2 + $0x93] sm:$0xff] }
 0x1ee   :  { %5624 = vrot.lane.b32.xlu1 %v5623_v7, %s6043_s17  ;;  %v7559_v15 = vpop.permute.xlu1 %3552  ;;  %v7561_v51 = vpop.permute.xlu0 %3426  ;;  %v5698_v6 = vpack.i.bf16 %v2103_v3, %v2023_v57 }
 0x1f1   :  { %3560 = vrot.lane.b32.xlu0 %v7564_v52, %s6042_s16 }
 0x1f2   :  { %5634 = vrot.lane.b32.xlu1 %v5633_v16, %s6042_s16  ;;  %v7569_v35 = vpop.permute.xlu1 %3616  ;;  %v7571_v50 = vpop.permute.xlu0 %3490 }
 0x1f5   :  { %3370 = vrot.lane.b32.xlu0 %v7573_v33, %s6041_s15 }
 0x1f6   :  { %5644 = vrot.lane.b32.xlu1 %v5623_v7, %s6052_s26  ;;  %v7578_v5 = vpop.permute.xlu1 %3680  ;;  %v7580_v19 = vpop.permute.xlu0 %5504 }
 0x1f7   :  { %9639 = vst [vmem:[#allocation24_spill] sm:$0xff] %v7580_v19  ;;  %v2049_v19 = vld [vmem:[#allocation2 + $0x164] sm:$0xff] }
 0x1f9   :  { %3434 = vrot.lane.b32.xlu0 %v2023_v57, %s6040_s14 }
 0x1fa   :  { %5649 = vrot.lane.b32.xlu1 %v5633_v16, %s6053_s27  ;;  %v7584_v60 = vpop.permute.xlu1 %3744  ;;  %v7586_v55 = vpop.permute.xlu0 %5509 }
 0x1fb   :  { %9640 = vst [vmem:[#allocation25_spill] sm:$0xff] %v7586_v55  ;;  %v2033_v55 = vld [vmem:[#allocation2 + $0x163] sm:$0xff] }
 0x1fd   :  { %3498 = vrot.lane.b32.xlu0 %v2039_v23, %s6043_s17 }
 0x1fe   :  { %3624 = vrot.lane.b32.xlu1 %v2070_v45, %s6044_s18  ;;  %v7590_v49 = vpop.permute.xlu1 %3808  ;;  %v7592_v47 = vpop.permute.xlu0 %5519 }
 0x1ff   :  { %9641 = vst [vmem:[#allocation26_spill] sm:$0xff] %v7592_v47  ;;  %v2105_v47 = vld [vmem:[#allocation2 + $0xb3] sm:$0xff] }
 0x201   :  { %5654 = vrot.lane.b32.xlu0 %v5653_v48, %s6044_s18 }
 0x202   :  { %3688 = vrot.lane.b32.xlu1 %v7573_v33, %s6045_s19  ;;  %v7600_v20 = vpop.permute.xlu0 %5524 }
 0x203   :  { %9643 = vst [vmem:[#allocation28_spill] sm:$0xff] %v7600_v20  ;;  %v2062_v20 = vld [vmem:[#allocation2 + $0x140] sm:$0xff] }
 0x204   :  { %v7598_v36 = vpop.permute.xlu1 %5514 }
 0x205   :  { %9642 = vst [vmem:[#allocation27_spill] sm:$0xff] %v7598_v36  ;;  %5659 = vrot.lane.b32.xlu0 %v5658_v17, %s6045_s19  ;;  %v2078_v36 = vld [vmem:[#allocation2 + $0x141] sm:$0xff] }
 0x206   :  { %3752 = vrot.lane.b32.xlu1 %v2023_v57, %s6048_s22  ;;  %v5708_v57 = vpack.i.bf16 %v2056_v24, %v2055_v18 }
 0x207   :  { %v7607_v29 = vpop.permute.xlu0 %5529 }
 0x208   :  { %v7605_v46 = vpop.permute.xlu1 %3618  ;;  %9644 = vst [vmem:[#allocation29_spill] sm:$0xff] %v7607_v29 }
 0x209   :  { %5664 = vrot.lane.b32.xlu0 %v5663_v53, %s6048_s22 }
 0x20a   :  { %3816 = vrot.lane.b32.xlu1 %v2039_v23, %s6046_s20 }
 0x20b   :  { %v7615_v0 = vpop.permute.xlu0 %3556 }
 0x20c   :  { %v7613_v1 = vpop.permute.xlu1 %3682 }
 0x20d   :  { %5674 = vrot.lane.b32.xlu0 %v5673_v42, %s6046_s20  ;;  %v5683_v42 = vpack.i.bf16 %v2055_v18, %v7564_v52  ;;  %v5693_v52 = vpack.i.bf16 %v2087_v40, %v7573_v33  ;;  %v7684_v33 = vld [vmem:[#allocation2 + $0xa1] sm:$0xff] }
 0x20e   :  { %5669 = vrot.lane.b32.xlu1 %v5653_v48, %s6054_s2  ;;  %v2119_v48 = vld [vmem:[#allocation2 + $0x94] sm:$0xff]  ;;  %9658 = vst [vmem:[#allocation43_spill] sm:$0xff] %v7684_v33 }
 0x20f   :  { %v7622_v25 = vpop.permute.xlu0 %3554 }
 0x210   :  { %v7620_v31 = vpop.permute.xlu1 %3746 }
 0x211   :  { %3564 = vrot.lane.b32.xlu0 %v2056_v24, %s6042_s16  ;;  %v2025_v24 = vld [vmem:[#allocation2 + $0xa3] sm:$0xff] }
 0x212   :  { %5679 = vrot.lane.b32.xlu1 %v5678_v61, %s6047_s21 }
 0x213   :  { %v7628_v62 = vpop.permute.xlu0 %3364 }
 0x214   :  { %v7626_v63 = vpop.permute.xlu1 %3810 }
 0x215   :  { %3562 = vrot.lane.b32.xlu0 %v2055_v18, %s6042_s16 }
 0x216   :  { %3626 = vrot.lane.b32.xlu1 %v7630_v44, %s6044_s18 }
 0x217   :  { %v7637_v26 = vpop.permute.xlu0 %3428 }
 0x218   :  { %v7635_v39 = vpop.permute.xlu1 %5534 }
 0x219   :  { %9646 = vst [vmem:[#allocation31_spill] sm:$0xff] %v7635_v39  ;;  %3372 = vrot.lane.b32.xlu0 %v2087_v40, %s6041_s15  ;;  %v2047_v39 = vld [vmem:[#allocation2 + $0x144] sm:$0xff] }
 0x21a   :  { %3690 = vrot.lane.b32.xlu1 %v2087_v40, %s6045_s19 }
 0x21b   :  { %v7643_v12 = vpop.permute.xlu0 %3492 }
 0x21c   :  { %v7641_v54 = vpop.permute.xlu1 %5544 }
 0x21d   :  { %9647 = vst [vmem:[#allocation32_spill] sm:$0xff] %v7641_v54  ;;  %3436 = vrot.lane.b32.xlu0 %v2103_v3, %s6040_s14  ;;  %v5703_v54 = vpack.i.bf16 %v2119_v48, %v2039_v23  ;;  %v2009_v23 = vld [vmem:[#allocation2 + $0xa2] sm:$0xff] }
 0x21e   :  { %3754 = vrot.lane.b32.xlu1 %v2103_v3, %s6048_s22 }
 0x21f   :  { %v7649_v16 = vpop.permute.xlu0 %5539 }
 0x220   :  { %v7647_v7 = vpop.permute.xlu1 %5554  ;;  %9649 = vst [vmem:[#allocation34_spill] sm:$0xff] %v7649_v16  ;;  %v5688_v16 = vpack.i.bf16 %v7630_v44, %v2070_v45  ;;  %v2121_v45 = vld [vmem:[#allocation2 + $0xb4] sm:$0xff] }
 0x221   :  { %9648 = vst [vmem:[#allocation33_spill] sm:$0xff] %v7647_v7  ;;  %3500 = vrot.lane.b32.xlu0 %v2119_v48, %s6043_s17 }
 0x222   :  { %3818 = vrot.lane.b32.xlu1 %v2119_v48, %s6046_s20  ;;  %v2041_v48 = vld [vmem:[#allocation2 + $0xa4] sm:$0xff] }
 0x223   :  { %v7655_v53 = vpop.permute.xlu0 %5549 }
 0x224   :  { %v7653_v17 = vpop.permute.xlu1 %5564  ;;  %9651 = vst [vmem:[#allocation36_spill] sm:$0xff] %v7655_v53 }
 0x225   :  { %9650 = vst [vmem:[#allocation35_spill] sm:$0xff] %v7653_v17  ;;  %5699 = vrot.lane.b32.xlu0 %v5698_v6, %s6052_s26 }
 0x226   :  { %5684 = vrot.lane.b32.xlu1 %v5683_v42, %s6049_s23 }
 0x227   :  { %v7662_v7 = vpop.permute.xlu0 %5559 }
 0x228   :  { %v7660_v61 = vpop.permute.xlu1 %5569  ;;  %9653 = vst [vmem:[#allocation38_spill] sm:$0xff] %v7662_v7  ;;  %v2089_v7 = vld [vmem:[#allocation2 + $0xb2] sm:$0xff] }
 0x229   :  { %9652 = vst [vmem:[#allocation37_spill] sm:$0xff] %v7660_v61  ;;  %5704 = vrot.lane.b32.xlu0 %v5703_v54, %s6053_s27  ;;  %v2073_v61 = vld [vmem:[#allocation2 + $0xb1] sm:$0xff] }
 0x22a   :  { %5689 = vrot.lane.b32.xlu1 %v5688_v16, %s6050_s24 }
 0x22b   :  { %v7669_v53 = vpop.permute.xlu0 %5574 }
 0x22c   :  { %v7667_v17 = vpop.permute.xlu1 %3814  ;;  %9655 = vst [vmem:[#allocation40_spill] sm:$0xff] %v7669_v53 }
 0x22d   :  { %9654 = vst [vmem:[#allocation39_spill] sm:$0xff] %v7667_v17  ;;  %5709 = vrot.lane.b32.xlu0 %v5708_v57, %s6054_s2  ;;  %v2057_v57 = vld [vmem:[#allocation2 + $0xb0] sm:$0xff] }
 0x22e   :  { %5694 = vrot.lane.b32.xlu1 %v5693_v52, %s6051_s25 }
 0x22f   :  { %v7676_v42 = vpop.permute.xlu0 %5579 }
 0x230   :  { %v7674_v3 = vpop.permute.xlu1 %3620  ;;  %9656 = vst [vmem:[#allocation41_spill] sm:$0xff] %v7676_v42  ;;  %v2015_v42 = vld [vmem:[#allocation2 + $0x142] sm:$0xff] }
 0x231   :  { %3374 = vrot.lane.b32.xlu0 %v2009_v23, %s6041_s15 }
 0x232   :  { %3822 = vrot.lane.b32.xlu1 %v2121_v45, %s6046_s20 }
 0x233   :  { %v7682_v16 = vpop.permute.xlu0 %5584 }
 0x234   :  { %v7680_v54 = vpop.permute.xlu1 %3684  ;;  %9657 = vst [vmem:[#allocation42_spill] sm:$0xff] %v7682_v16 }
 0x235   :  { %3438 = vrot.lane.b32.xlu0 %v2025_v24, %s6040_s14 }
 0x236   :  { %3628 = vrot.lane.b32.xlu1 %v7684_v33, %s6044_s18  ;;  %v1899_v33 = vld [vmem:[#allocation2 + $0xf0] sm:$0xff] }
 0x237   :  { %v7691_v40 = vpop.permute.xlu0 %3496 }
 0x238   :  { %v7689_v18 = vpop.permute.xlu1 %3748  ;;  %9659 = vst [vmem:[#allocation44_spill] sm:$0xff] %v7691_v40  ;;  %v4074_v40 = vld [vmem:[%s9460_s3 + $0x48] sm:$0xff] }
 0x239   :  { %3502 = vrot.lane.b32.xlu0 %v2041_v48, %s6043_s17 }
 0x23a   :  { %3692 = vrot.lane.b32.xlu1 %v2009_v23, %s6045_s19 }
 0x23b   :  { %v7697_v52 = vpop.permute.xlu0 %3366 }
 0x23c   :  { %v7695_v6 = vpop.permute.xlu1 %3812 }
 0x23d   :  { %3566 = vrot.lane.b32.xlu0 %v2057_v57, %s6042_s16 }
 0x23e   :  { %3756 = vrot.lane.b32.xlu1 %v2025_v24, %s6048_s22 }
 0x23f   :  { %v7703_v16 = vpop.permute.xlu0 %3430 }
 0x240   :  { %v7701_v45 = vpop.permute.xlu1 %3622 }
 0x241   :  { %3386 = vrot.lane.b32.xlu0 %v2015_v42, %s6041_s15 }
 0x242   :  { %3820 = vrot.lane.b32.xlu1 %v2041_v48, %s6046_s20 }
 0x243   :  { %v7709_v53 = vpop.permute.xlu0 %3494 }
 0x244   :  { %v7707_v23 = vpop.permute.xlu1 %3686 }
 0x245   :  { %3704 = vrot.lane.b32.xlu0 %v2015_v42, %s6045_s19 }
 0x246   :  { %3630 = vrot.lane.b32.xlu1 %v2073_v61, %s6044_s18 }
 0x247   :  { %v7715_v57 = vpop.permute.xlu0 %3558 }
 0x248   :  { %v7713_v24 = vpop.permute.xlu1 %3750 }
 0x249   :  { %3514 = vrot.lane.b32.xlu0 %v2047_v39, %s6043_s17 }
 0x24a   :  { %3694 = vrot.lane.b32.xlu1 %v2089_v7, %s6045_s19 }
 0x24b   :  { %v7721_v29 = vpop.permute.xlu0 %3368 }
 0x24c   :  { %v7719_v48 = vpop.permute.xlu1 %5589 }
 0x24d   :  { %9660 = vst [vmem:[#allocation45_spill] sm:$0xff] %v7719_v48  ;;  %3832 = vrot.lane.b32.xlu0 %v2047_v39, %s6046_s20 }
 0x24e   :  { %3758 = vrot.lane.b32.xlu1 %v2105_v47, %s6048_s22 }
 0x24f   :  { %v7727_v42 = vpop.permute.xlu0 %3432 }
 0x250   :  { %v7725_v61 = vpop.permute.xlu1 %5594 }
 0x251   :  { %9661 = vst [vmem:[#allocation46_spill] sm:$0xff] %v7725_v61  ;;  %3580 = vrot.lane.b32.xlu0 %v2064_v27, %s6042_s16  ;;  %v2031_v61 = vld [vmem:[#allocation2 + $0x143] sm:$0xff] }
 0x252   :  { %3576 = vrot.lane.b32.xlu1 %v2062_v20, %s6042_s16 }
 0x253   :  { %v7733_v48 = vpop.permute.xlu0 %5609 }
 0x254   :  { %v7731_v7 = vpop.permute.xlu1 %5599  ;;  %9663 = vst [vmem:[#allocation48_spill] sm:$0xff] %v7733_v48  ;;  %v2048_v48 = vld [vmem:[#allocation2 + $0x154] sm:$0xff] }
 0x255   :  { %9662 = vst [vmem:[#allocation47_spill] sm:$0xff] %v7731_v7  ;;  %3388 = vrot.lane.b32.xlu0 %v2016_v34, %s6041_s15 }
 0x256   :  { %3640 = vrot.lane.b32.xlu1 %v2078_v36, %s6044_s18 }
 0x257   :  { %v7739_v39 = vpop.permute.xlu0 %5619 }
 0x258   :  { %v7737_v47 = vpop.permute.xlu1 %5604  ;;  %9665 = vst [vmem:[#allocation50_spill] sm:$0xff] %v7739_v39  ;;  %v2017_v39 = vld [vmem:[#allocation2 + $0x162] sm:$0xff] }
 0x259   :  { %9664 = vst [vmem:[#allocation49_spill] sm:$0xff] %v7737_v47  ;;  %3706 = vrot.lane.b32.xlu0 %v2016_v34, %s6045_s19  ;;  %v2063_v47 = vld [vmem:[#allocation2 + $0x150] sm:$0xff] }
 0x25a   :  { %3450 = vrot.lane.b32.xlu1 %v2031_v61, %s6040_s14 }
 0x25b   :  { %v7745_v20 = vpop.permute.xlu0 %5629 }
 0x25c   :  { %v7743_v27 = vpop.permute.xlu1 %5614  ;;  %9667 = vst [vmem:[#allocation52_spill] sm:$0xff] %v7745_v20  ;;  %v2079_v20 = vld [vmem:[#allocation2 + $0x151] sm:$0xff] }
 0x25d   :  { %9666 = vst [vmem:[#allocation51_spill] sm:$0xff] %v7743_v27  ;;  %3516 = vrot.lane.b32.xlu0 %v2048_v48, %s6043_s17 }
 0x25e   :  { %3768 = vrot.lane.b32.xlu1 %v2031_v61, %s6048_s22 }
 0x25f   :  { %v7751_v7 = vpop.permute.xlu0 %5639 }
 0x260   :  { %v7749_v36 = vpop.permute.xlu1 %5624  ;;  %9669 = vst [vmem:[#allocation54_spill] sm:$0xff] %v7751_v7  ;;  %v2032_v7 = vld [vmem:[#allocation2 + $0x153] sm:$0xff] }
 0x261   :  { %9668 = vst [vmem:[#allocation53_spill] sm:$0xff] %v7749_v36  ;;  %3390 = vrot.lane.b32.xlu0 %v2017_v39, %s6041_s15 }
 0x262   :  { %3578 = vrot.lane.b32.xlu1 %v2063_v47, %s6042_s16 }
 0x263   :  { %v7757_v27 = vpop.permute.xlu0 %3560 }
 0x264   :  { %v7755_v34 = vpop.permute.xlu1 %5634  ;;  %9671 = vst [vmem:[#allocation56_spill] sm:$0xff] %v7757_v27  ;;  %v8084_v27 = vld [vmem:[#allocation2 + $0x132] sm:$0xff] }
 0x265   :  { %9670 = vst [vmem:[#allocation55_spill] sm:$0xff] %v7755_v34  ;;  %3454 = vrot.lane.b32.xlu0 %v2033_v55, %s6040_s14 }
 0x266   :  { %3642 = vrot.lane.b32.xlu1 %v2079_v20, %s6044_s18 }
 0x267   :  { %v7763_v36 = vpop.permute.xlu0 %3370 }
 0x268   :  { %v7761_v61 = vpop.permute.xlu1 %5644 }
 0x269   :  { %9672 = vst [vmem:[#allocation57_spill] sm:$0xff] %v7761_v61  ;;  %3518 = vrot.lane.b32.xlu0 %v2049_v19, %s6043_s17 }
 0x26a   :  { %3452 = vrot.lane.b32.xlu1 %v2032_v7, %s6040_s14 }
 0x26b   :  { %v7769_v34 = vpop.permute.xlu0 %3434 }
 0x26c   :  { %v7767_v47 = vpop.permute.xlu1 %5649 }
 0x26d   :  { %9673 = vst [vmem:[#allocation58_spill] sm:$0xff] %v7767_v47  ;;  %3582 = vrot.lane.b32.xlu0 %v2065_v59, %s6042_s16  ;;  %v1770_v59 = vld [vmem:[#allocation2 + $0xc2] sm:$0xff] }
 0x26e   :  { %3770 = vrot.lane.b32.xlu1 %v2032_v7, %s6048_s22  ;;  %v5713_v7 = vpack.i.bf16 %v7777_v28, %v1754_v8 }
 0x26f   :  { %v7775_v61 = vpop.permute.xlu0 %3498 }
 0x270   :  { %v7773_v20 = vpop.permute.xlu1 %3624 }
 0x271   :  { %9674 = vst [vmem:[#allocation59_spill] sm:$0xff] %v7773_v20  ;;  %3646 = vrot.lane.b32.xlu0 %v2081_v10, %s6044_s18  ;;  %v5718_v10 = vpack.i.bf16 %v7786_v37, %v1770_v59  ;;  %v7847_v20 = vld [vmem:[#allocation2 + $0xf1] sm:$0xff] }
 0x272   :  { %3834 = vrot.lane.b32.xlu1 %v2048_v48, %s6046_s20  ;;  %v2080_v48 = vld [vmem:[#allocation2 + $0x161] sm:$0xff]  ;;  %9692 = vst [vmem:[#allocation77_spill] sm:$0xff] %v7847_v20 }
 0x273   :  { %v7783_v58 = vpop.permute.xlu0 %5654 }
 0x274   :  { %v7781_v47 = vpop.permute.xlu1 %3688  ;;  %9676 = vst [vmem:[#allocation61_spill] sm:$0xff] %v7783_v58 }
 0x275   :  { %9675 = vst [vmem:[#allocation60_spill] sm:$0xff] %v7781_v47  ;;  %5714 = vrot.lane.b32.xlu0 %v5713_v7, %s6041_s15  ;;  %v1803_v7 = vld [vmem:[#allocation2 + $0xd4] sm:$0xff] }
 0x276   :  { %3838 = vrot.lane.b32.xlu1 %v2129_v2, %s6046_s20  ;;  %v5723_v2 = vpack.i.bf16 %v1787_v21, %v1786_v43  ;;  %v5728_v38 = vpack.i.bf16 %v1803_v7, %v1802_v56  ;;  %v7813_v43 = vld [vmem:[#allocation2 + $0xf4] sm:$0xff] }
 0x277   :  { %v7792_v13 = vpop.permute.xlu0 %5659  ;;  %v2097_v56 = vld [vmem:[#allocation2 + $0x172] sm:$0xff] }
 0x278   :  { %v7790_v32 = vpop.permute.xlu1 %3752  ;;  %9678 = vst [vmem:[#allocation63_spill] sm:$0xff] %v7792_v13 }
 0x279   :  { %9677 = vst [vmem:[#allocation62_spill] sm:$0xff] %v7790_v32  ;;  %5719 = vrot.lane.b32.xlu0 %v5718_v10, %s6040_s14 }
 0x27a   :  { %3644 = vrot.lane.b32.xlu1 %v2080_v48, %s6044_s18 }
 0x27b   :  { %v7799_v58 = vpop.permute.xlu0 %5664 }
 0x27c   :  { %v7797_v8 = vpop.permute.xlu1 %3816  ;;  %9680 = vst [vmem:[#allocation65_spill] sm:$0xff] %v7799_v58  ;;  %v1819_v58 = vld [vmem:[#allocation2 + $0xe0] sm:$0xff] }
 0x27d   :  { %9679 = vst [vmem:[#allocation64_spill] sm:$0xff] %v7797_v8  ;;  %5724 = vrot.lane.b32.xlu0 %v5723_v2, %s6043_s17  ;;  %v1835_v8 = vld [vmem:[#allocation2 + $0xe1] sm:$0xff]  ;;  %v5768_v47 = vpack.i.bf16 %v1899_v33, %v1819_v58 }
 0x27e   :  { %3708 = vrot.lane.b32.xlu1 %v2017_v39, %s6045_s19 }
 0x27f   :  { %v7805_v59 = vpop.permute.xlu0 %5674 }
 0x280   :  { %v7803_v13 = vpop.permute.xlu1 %5669  ;;  %9682 = vst [vmem:[#allocation67_spill] sm:$0xff] %v7805_v59  ;;  %v7831_v59 = vld [vmem:[#allocation2 + $0xf3] sm:$0xff] }
 0x281   :  { %9681 = vst [vmem:[#allocation66_spill] sm:$0xff] %v7803_v13  ;;  %5729 = vrot.lane.b32.xlu0 %v5728_v38, %s6042_s16  ;;  %v7822_v13 = vld [vmem:[#allocation2 + $0xf2] sm:$0xff] }
 0x282   :  { %3772 = vrot.lane.b32.xlu1 %v2033_v55, %s6048_s22 }
 0x283   :  { %v7811_v48 = vpop.permute.xlu0 %3564 }
 0x284   :  { %v7809_v10 = vpop.permute.xlu1 %5679  ;;  %9684 = vst [vmem:[#allocation69_spill] sm:$0xff] %v7811_v48  ;;  %v5758_v48 = vpack.i.bf16 %v1883_v9, %v1803_v7 }
 0x285   :  { %9683 = vst [vmem:[#allocation68_spill] sm:$0xff] %v7809_v10  ;;  %3504 = vrot.lane.b32.xlu0 %v7813_v43, %s6043_s17  ;;  %v1818_v10 = vld [vmem:[#allocation2 + $0xd0] sm:$0xff] }
 0x286   :  { %3836 = vrot.lane.b32.xlu1 %v2049_v19, %s6046_s20  ;;  %v2113_v19 = vld [vmem:[#allocation2 + $0x173] sm:$0xff]  ;;  %v5733_v41 = vpack.i.bf16 %v1819_v58, %v1818_v10 }
 0x287   :  { %v7820_v2 = vpop.permute.xlu0 %3562 }
 0x288   :  { %v7818_v39 = vpop.permute.xlu1 %3626 }
 0x289   :  { %9685 = vst [vmem:[#allocation70_spill] sm:$0xff] %v7818_v39  ;;  %3376 = vrot.lane.b32.xlu0 %v7822_v13, %s6041_s15  ;;  %v1851_v39 = vld [vmem:[#allocation2 + $0xe2] sm:$0xff] }
 0x28a   :  { %3710 = vrot.lane.b32.xlu1 %v2097_v56, %s6045_s19 }
 0x28b   :  { %v7829_v55 = vpop.permute.xlu0 %3372 }
 0x28c   :  { %v7827_v38 = vpop.permute.xlu1 %3690  ;;  %9687 = vst [vmem:[#allocation72_spill] sm:$0xff] %v7829_v55 }
 0x28d   :  { %9686 = vst [vmem:[#allocation71_spill] sm:$0xff] %v7827_v38  ;;  %3440 = vrot.lane.b32.xlu0 %v7831_v59, %s6040_s14 }
 0x28e   :  { %3774 = vrot.lane.b32.xlu1 %v2113_v19, %s6048_s22  ;;  %v5738_v19 = vpack.i.bf16 %v1835_v8, %v7777_v28 }
 0x28f   :  { %v7838_v56 = vpop.permute.xlu0 %3436 }
 0x290   :  { %v7836_v22 = vpop.permute.xlu1 %3754  ;;  %9689 = vst [vmem:[#allocation74_spill] sm:$0xff] %v7838_v56 }
 0x291   :  { %9688 = vst [vmem:[#allocation73_spill] sm:$0xff] %v7836_v22  ;;  %5759 = vrot.lane.b32.xlu0 %v5758_v48, %s6047_s21  ;;  %v5778_v48 = vpack.i.bf16 %v7847_v20, %v1835_v8  ;;  %v7870_v8 = vld [vmem:[#allocation2 + $0x100] sm:$0xff] }
 0x292   :  { %5734 = vrot.lane.b32.xlu1 %v5733_v41, %s6044_s18  ;;  %v5743_v41 = vpack.i.bf16 %v1851_v39, %v7786_v37 }
 0x293   :  { %v7844_v38 = vpop.permute.xlu0 %3500 }
 0x294   :  { %v7842_v32 = vpop.permute.xlu1 %3818  ;;  %9691 = vst [vmem:[#allocation76_spill] sm:$0xff] %v7844_v38  ;;  %v8041_v38 = vld [vmem:[#allocation2 + $0x123] sm:$0xff] }
 0x295   :  { %9690 = vst [vmem:[#allocation75_spill] sm:$0xff] %v7842_v32  ;;  %5769 = vrot.lane.b32.xlu0 %v5768_v47, %s6049_s23  ;;  %v1867_v32 = vld [vmem:[#allocation2 + $0xe3] sm:$0xff]  ;;  %v5788_v47 = vpack.i.bf16 %v7822_v13, %v1851_v39 }
 0x296   :  { %5739 = vrot.lane.b32.xlu1 %v5738_v19, %s6045_s19  ;;  %v5748_v19 = vpack.i.bf16 %v1867_v32, %v1787_v21  ;;  %v7879_v39 = vld [vmem:[#allocation2 + $0x102] sm:$0xff] }
 0x297   :  { %v7853_v10 = vpop.permute.xlu0 %5699 }
 0x298   :  { %v7851_v7 = vpop.permute.xlu1 %5684  ;;  %9694 = vst [vmem:[#allocation79_spill] sm:$0xff] %v7853_v10 }
 0x299   :  { %9693 = vst [vmem:[#allocation78_spill] sm:$0xff] %v7851_v7  ;;  %5779 = vrot.lane.b32.xlu0 %v5778_v48, %s6050_s24  ;;  %v7899_v7 = vld [vmem:[#allocation2 + $0x104] sm:$0xff] }
 0x29a   :  { %5744 = vrot.lane.b32.xlu1 %v5743_v41, %s6048_s22  ;;  %v5833_v55 = vpack.i.bf16 %v7899_v7, %v7813_v43 }
 0x29b   :  { %v7861_v28 = vpop.permute.xlu0 %5704 }
 0x29c   :  { %v7859_v58 = vpop.permute.xlu1 %5689  ;;  %9696 = vst [vmem:[#allocation81_spill] sm:$0xff] %v7861_v28  ;;  %v7889_v28 = vld [vmem:[#allocation2 + $0x103] sm:$0xff] }
 0x29d   :  { %9695 = vst [vmem:[#allocation80_spill] sm:$0xff] %v7859_v58  ;;  %5789 = vrot.lane.b32.xlu0 %v5788_v47, %s6051_s25 }
 0x29e   :  { %5749 = vrot.lane.b32.xlu1 %v5748_v19, %s6046_s20 }
 0x29f   :  { %v7868_v37 = vpop.permute.xlu0 %5709 }
 0x2a0   :  { %v7866_v10 = vpop.permute.xlu1 %5694  ;;  %9698 = vst [vmem:[#allocation83_spill] sm:$0xff] %v7868_v37 }
 0x2a1   :  { %9697 = vst [vmem:[#allocation82_spill] sm:$0xff] %v7866_v10  ;;  %3568 = vrot.lane.b32.xlu0 %v7870_v8, %s6042_s16 }
 0x2a2   :  { %5754 = vrot.lane.b32.xlu1 %v5778_v48, %s6041_s15  ;;  %v5773_v48 = vpack.i.bf16 %v7831_v59, %v1867_v32 }
 0x2a3   :  { %v7877_v21 = vpop.permute.xlu0 %3374 }
 0x2a4   :  { %v7875_v41 = vpop.permute.xlu1 %3822  ;;  %9700 = vst [vmem:[#allocation85_spill] sm:$0xff] %v7877_v21 }
 0x2a5   :  { %9699 = vst [vmem:[#allocation84_spill] sm:$0xff] %v7875_v41  ;;  %3378 = vrot.lane.b32.xlu0 %v7879_v39, %s6041_s15 }
 0x2a6   :  { %5764 = vrot.lane.b32.xlu1 %v5788_v47, %s6040_s14  ;;  %v5783_v47 = vpack.i.bf16 %v7813_v43, %v1883_v9 }
 0x2a7   :  { %v7886_v37 = vpop.permute.xlu0 %3438 }
 0x2a8   :  { %v7884_v19 = vpop.permute.xlu1 %3628  ;;  %9702 = vst [vmem:[#allocation87_spill] sm:$0xff] %v7886_v37  ;;  %v7909_v37 = vld [vmem:[#allocation2 + $0x101] sm:$0xff] }
 0x2a9   :  { %9701 = vst [vmem:[#allocation86_spill] sm:$0xff] %v7884_v19  ;;  %3442 = vrot.lane.b32.xlu0 %v7889_v28, %s6040_s14  ;;  %v5803_v19 = vpack.i.bf16 %v7870_v8, %v1899_v33  ;;  %9707 = vst [vmem:[#allocation92_spill] sm:$0xff] %v7909_v37 }
 0x2aa   :  { %5774 = vrot.lane.b32.xlu1 %v5773_v48, %s6043_s17 }
 0x2ab   :  { %v7896_v58 = vpop.permute.xlu0 %3502 }
 0x2ac   :  { %v7894_v10 = vpop.permute.xlu1 %3692  ;;  %9704 = vst [vmem:[#allocation89_spill] sm:$0xff] %v7896_v58  ;;  %v5808_v58 = vpack.i.bf16 %v7909_v37, %v7847_v20  ;;  %v7963_v20 = vld [vmem:[#allocation2 + $0x112] sm:$0xff] }
 0x2ad   :  { %9703 = vst [vmem:[#allocation88_spill] sm:$0xff] %v7894_v10  ;;  %3506 = vrot.lane.b32.xlu0 %v7899_v7, %s6043_s17 }
 0x2ae   :  { %5784 = vrot.lane.b32.xlu1 %v5783_v47, %s6042_s16 }
 0x2af   :  { %v7906_v41 = vpop.permute.xlu0 %3566 }
 0x2b0   :  { %v7904_v32 = vpop.permute.xlu1 %3756  ;;  %9706 = vst [vmem:[#allocation91_spill] sm:$0xff] %v7906_v41  ;;  %v8006_v41 = vld [vmem:[#allocation2 + $0x134] sm:$0xff] }
 0x2b1   :  { %9705 = vst [vmem:[#allocation90_spill] sm:$0xff] %v7904_v32  ;;  %5804 = vrot.lane.b32.xlu0 %v5803_v19, %s6044_s18  ;;  %9728 = vst [vmem:[#allocation113_spill] sm:$0xff] %v8006_v41 }
 0x2b2   :  { %5794 = vrot.lane.b32.xlu1 %v5773_v48, %s6052_s26  ;;  %v5813_v48 = vpack.i.bf16 %v7879_v39, %v7822_v13 }
 0x2b3   :  { %v7915_v10 = vpop.permute.xlu0 %3386 }
 0x2b4   :  { %v7913_v9 = vpop.permute.xlu1 %3820  ;;  %9709 = vst [vmem:[#allocation94_spill] sm:$0xff] %v7915_v10 }
 0x2b5   :  { %9708 = vst [vmem:[#allocation93_spill] sm:$0xff] %v7913_v9  ;;  %5809 = vrot.lane.b32.xlu0 %v5808_v58, %s6045_s19 }
 0x2b6   :  { %5799 = vrot.lane.b32.xlu1 %v5783_v47, %s6053_s27  ;;  %v5823_v47 = vpack.i.bf16 %v7889_v28, %v7831_v59 }
 0x2b7   :  { %v7923_v33 = vpop.permute.xlu0 %3704 }
 0x2b8   :  { %v7921_v32 = vpop.permute.xlu1 %3630  ;;  %9711 = vst [vmem:[#allocation96_spill] sm:$0xff] %v7923_v33  ;;  %v7943_v33 = vld [vmem:[#allocation2 + $0x120] sm:$0xff] }
 0x2b9   :  { %9710 = vst [vmem:[#allocation95_spill] sm:$0xff] %v7921_v32  ;;  %5814 = vrot.lane.b32.xlu0 %v5813_v48, %s6048_s22 }
 0x2ba   :  { %3632 = vrot.lane.b32.xlu1 %v7909_v37, %s6044_s18 }
 0x2bb   :  { %v7932_v9 = vpop.permute.xlu0 %3514 }
 0x2bc   :  { %v7930_v10 = vpop.permute.xlu1 %3694  ;;  %9713 = vst [vmem:[#allocation98_spill] sm:$0xff] %v7932_v9  ;;  %v7953_v9 = vld [vmem:[#allocation2 + $0x110] sm:$0xff] }
 0x2bd   :  { %9712 = vst [vmem:[#allocation97_spill] sm:$0xff] %v7930_v10  ;;  %5824 = vrot.lane.b32.xlu0 %v5823_v47, %s6046_s20  ;;  %v7974_v10 = vld [vmem:[#allocation2 + $0x113] sm:$0xff] }
 0x2be   :  { %3696 = vrot.lane.b32.xlu1 %v7879_v39, %s6045_s19 }
 0x2bf   :  { %v7941_v13 = vpop.permute.xlu0 %3832 }
 0x2c0   :  { %v7939_v58 = vpop.permute.xlu1 %3758  ;;  %9715 = vst [vmem:[#allocation100_spill] sm:$0xff] %v7941_v13 }
 0x2c1   :  { %9714 = vst [vmem:[#allocation99_spill] sm:$0xff] %v7939_v58  ;;  %3572 = vrot.lane.b32.xlu0 %v7943_v33, %s6042_s16  ;;  %v7972_v58 = vld [vmem:[#allocation2 + $0x111] sm:$0xff] }
 0x2c2   :  { %3760 = vrot.lane.b32.xlu1 %v7889_v28, %s6048_s22  ;;  %v7996_v32 = vpack.i.bf16 %v7972_v58, %v7909_v37  ;;  %v8016_v37 = vld [vmem:[#allocation2 + $0x121] sm:$0xff] }
 0x2c3   :  { %v7951_v59 = vpop.permute.xlu0 %3580 }
 0x2c4   :  { %v7949_v48 = vpop.permute.xlu1 %3576  ;;  %9717 = vst [vmem:[#allocation102_spill] sm:$0xff] %v7951_v59 }
 0x2c5   :  { %9716 = vst [vmem:[#allocation101_spill] sm:$0xff] %v7949_v48  ;;  %3570 = vrot.lane.b32.xlu0 %v7953_v9, %s6042_s16 }
 0x2c6   :  { %3824 = vrot.lane.b32.xlu1 %v7899_v7, %s6046_s20 }
 0x2c7   :  { %v7961_v13 = vpop.permute.xlu0 %3388 }
 0x2c8   :  { %v7959_v47 = vpop.permute.xlu1 %3640  ;;  %9719 = vst [vmem:[#allocation104_spill] sm:$0xff] %v7961_v13  ;;  %v7984_v13 = vld [vmem:[#allocation2 + $0x114] sm:$0xff] }
 0x2c9   :  { %9718 = vst [vmem:[#allocation103_spill] sm:$0xff] %v7959_v47  ;;  %3380 = vrot.lane.b32.xlu0 %v7963_v20, %s6041_s15 }
 0x2ca   :  { %5819 = vrot.lane.b32.xlu1 %v5803_v19, %s6054_s2 }
 0x2cb   :  { %v7970_v59 = vpop.permute.xlu0 %3706 }
 0x2cc   :  { %v7968_v48 = vpop.permute.xlu1 %3450  ;;  %9721 = vst [vmem:[#allocation106_spill] sm:$0xff] %v7970_v59 }
 0x2cd   :  { %9720 = vst [vmem:[#allocation105_spill] sm:$0xff] %v7968_v48  ;;  %3444 = vrot.lane.b32.xlu0 %v7974_v10, %s6040_s14 }
 0x2ce   :  { %3634 = vrot.lane.b32.xlu1 %v7972_v58, %s6044_s18 }
 0x2cf   :  { %v7982_v19 = vpop.permute.xlu0 %3516 }
 0x2d0   :  { %v7980_v47 = vpop.permute.xlu1 %3768  ;;  %9723 = vst [vmem:[#allocation108_spill] sm:$0xff] %v7982_v19 }
 0x2d1   :  { %9722 = vst [vmem:[#allocation107_spill] sm:$0xff] %v7980_v47  ;;  %3508 = vrot.lane.b32.xlu0 %v7984_v13, %s6043_s17 }
 0x2d2   :  { %3698 = vrot.lane.b32.xlu1 %v7963_v20, %s6045_s19 }
 0x2d3   :  { %v7992_v48 = vpop.permute.xlu0 %3390 }
 0x2d4   :  { %v7990_v59 = vpop.permute.xlu1 %3578  ;;  %9725 = vst [vmem:[#allocation110_spill] sm:$0xff] %v7992_v48 }
 0x2d5   :  { %9724 = vst [vmem:[#allocation109_spill] sm:$0xff] %v7990_v59  ;;  %5829 = vrot.lane.b32.xlu0 %v7996_v32, %s6041_s15 }
 0x2d6   :  { %3762 = vrot.lane.b32.xlu1 %v7974_v10, %s6048_s22 }
 0x2d7   :  { %v8004_v19 = vpop.permute.xlu0 %3454 }
 0x2d8   :  { %v8002_v47 = vpop.permute.xlu1 %3642  ;;  %9727 = vst [vmem:[#allocation112_spill] sm:$0xff] %v8004_v19  ;;  %v4080_v19 = vld [vmem:[%s9460_s3 + $0x78] sm:$0xff] }
 0x2d9   :  { %9726 = vst [vmem:[#allocation111_spill] sm:$0xff] %v8002_v47  ;;  %3512 = vrot.lane.b32.xlu0 %v8006_v41, %s6043_s17  ;;  %v9540_v47 = vmov 0.0  }
 0x2da   :  { %3826 = vrot.lane.b32.xlu1 %v7984_v13, %s6046_s20  ;;  %4128 = vmatprep.subr.mxu1 %v9540_v47 }
 0x2db   :  { %v8014_v59 = vpop.permute.xlu0 %3518  ;;  %4129 = vmatpush1.msra.mxu1 %v4080_v19  ;;  %v4079_v19 = vld [vmem:[%s9460_s3 + $0x70] sm:$0xff] }
 0x2dc   :  { %v8012_v48 = vpop.permute.xlu1 %3452  ;;  %9730 = vst [vmem:[#allocation115_spill] sm:$0xff] %v8014_v59  ;;  %v8030_v59 = vld [vmem:[#allocation2 + $0x122] sm:$0xff]  ;;  %4130 = vmatprep.subr.mxu1 %v9540_v47 }
 0x2dd   :  { %9729 = vst [vmem:[#allocation114_spill] sm:$0xff] %v8012_v48  ;;  %3830 = vrot.lane.b32.xlu0 %v8006_v41, %s6046_s20  ;;  %4131 = vmatpush1.msra.mxu1 %v4079_v19  ;;  %v4078_v19 = vld [vmem:[%s9460_s3 + $0x68] sm:$0xff] }
 0x2de   :  { %3636 = vrot.lane.b32.xlu1 %v8016_v37, %s6044_s18 }
 0x2df   :  { %v8028_v48 = vpop.permute.xlu0 %3582 }
 0x2e0   :  { %v8026_v21 = vpop.permute.xlu1 %3770  ;;  %9732 = vst [vmem:[#allocation117_spill] sm:$0xff] %v8028_v48 }
 0x2e1   :  { %9731 = vst [vmem:[#allocation116_spill] sm:$0xff] %v8026_v21  ;;  %3382 = vrot.lane.b32.xlu0 %v8030_v59, %s6041_s15 }
 0x2e2   :  { %3700 = vrot.lane.b32.xlu1 %v8030_v59, %s6045_s19 }
 0x2e3   :  { %v8039_v22 = vpop.permute.xlu0 %3646 }
 0x2e4   :  { %v8037_v41 = vpop.permute.xlu1 %3834  ;;  %9734 = vst [vmem:[#allocation119_spill] sm:$0xff] %v8039_v22  ;;  %v8055_v22 = vld [vmem:[#allocation2 + $0x124] sm:$0xff] }
 0x2e5   :  { %9733 = vst [vmem:[#allocation118_spill] sm:$0xff] %v8037_v41  ;;  %3446 = vrot.lane.b32.xlu0 %v8041_v38, %s6040_s14  ;;  %v9737_v41 = vmov 0.0  }
 0x2e6   :  { %3764 = vrot.lane.b32.xlu1 %v8041_v38, %s6048_s22  ;;  %4132 = vmatprep.subr.mxu1 %v9737_v41 }
 0x2e7   :  { %v8052_v48 = vpop.permute.xlu0 %5714  ;;  %4133 = vmatpush1.msra.mxu1 %v4078_v19 }
 0x2e8   :  { %v8050_v47 = vpop.permute.xlu1 %3838  ;;  %9736 = vst [vmem:[#allocation121_spill] sm:$0xff] %v8052_v48  ;;  %v8070_v48 = vld [vmem:[#allocation2 + $0x130] sm:$0xff]  ;;  %4134 = vmatprep.subr.mxu1 %v9737_v41 }
 0x2e9   :  { %9735 = vst [vmem:[#allocation120_spill] sm:$0xff] %v8050_v47  ;;  %3510 = vrot.lane.b32.xlu0 %v8055_v22, %s6043_s17  ;;  %v8068_v47 = vld [vmem:[#allocation2 + $0x131] sm:$0xff] }
 0x2ea   :  { %3828 = vrot.lane.b32.xlu1 %v8055_v22, %s6046_s20 }
 0x2eb   :  { %v8063_v17 = vpop.permute.xlu0 %5719 }
 0x2ec   :  { %v8061_v21 = vpop.permute.xlu1 %3644  ;;  %9739 = vst [vmem:[#allocation123_spill] sm:$0xff] %v8063_v17  ;;  %v4077_v17 = vld [vmem:[%s9460_s3 + $0x60] sm:$0xff] }
 0x2ed   :  { %9738 = vst [vmem:[#allocation122_spill] sm:$0xff] %v8061_v21  ;;  %3574 = vrot.lane.b32.xlu0 %v8070_v48, %s6042_s16  ;;  %4135 = vmatpush1.msra.mxu1 %v4077_v17  ;;  %v4075_v17 = vld [vmem:[%s9460_s3 + $0x50] sm:$0xff] }
 0x2ee   :  { %3638 = vrot.lane.b32.xlu1 %v8068_v47, %s6044_s18  ;;  %4136 = vmatprep.subr.mxu1 %v9737_v41 }
 0x2ef   :  { %v8082_v56 = vpop.permute.xlu0 %5724 }
 0x2f0   :  { %v8080_v21 = vpop.permute.xlu1 %3708  ;;  %9741 = vst [vmem:[#allocation125_spill] sm:$0xff] %v8082_v56  ;;  %v8098_v56 = vld [vmem:[#allocation2 + $0x133] sm:$0xff] }
 0x2f1   :  { %9740 = vst [vmem:[#allocation124_spill] sm:$0xff] %v8080_v21  ;;  %3384 = vrot.lane.b32.xlu0 %v8084_v27, %s6041_s15  ;;  %v4076_v21 = vld [vmem:[%s9460_s3 + $0x58] sm:$0xff] }
 0x2f2   :  { %3702 = vrot.lane.b32.xlu1 %v8084_v27, %s6045_s19  ;;  %4137 = vmatpush1.msra.mxu1 %v4076_v21  ;;  %v5838_v21 = vpack.i.bf16 %v7963_v20, %v7879_v39  ;;  %v5843_v39 = vpack.i.bf16 %v7953_v9, %v7870_v8  ;;  %v4070_v8 = vld [vmem:[%s9460_s3 + $0x28] sm:$0xff] }
 0x2f3   :  { %v8093_v44 = vpop.permute.xlu0 %5729  ;;  %4138 = vmatprep.subr.mxu1 %v9737_v41 }
 0x2f4   :  { %v8091_v19 = vpop.permute.xlu1 %3772  ;;  %9743 = vst [vmem:[#allocation127_spill] sm:$0xff] %v8093_v44  ;;  %4139 = vmatpush1.msra.mxu1 %v4075_v17  ;;  %v5848_v17 = vpack.i.bf16 %v7974_v10, %v7889_v28  ;;  %v5858_v28 = vpack.i.bf16 %v7984_v13, %v7899_v7 }
 0x2f5   :  { %9742 = vst [vmem:[#allocation126_spill] sm:$0xff] %v8091_v19  ;;  %3448 = vrot.lane.b32.xlu0 %v8098_v56, %s6040_s14  ;;  %4140 = vmatprep.subr.mxu1 %v9737_v41 }
 0x2f6   :  { %3766 = vrot.lane.b32.xlu1 %v8098_v56, %s6048_s22  ;;  %4141 = vmatpush1.msra.mxu1 %v4074_v40 }
 0x2f7   :  { %v8110_v19 = vpop.permute.xlu0 %3504  ;;  %4142 = vmatprep.subr.mxu1 %v9737_v41 }
 0x2f8   :  { %v8108_v44 = vpop.permute.xlu1 %3836  ;;  %9745 = vst [vmem:[#allocation129_spill] sm:$0xff] %v8110_v19 }
 0x2f9   :  { %9744 = vst [vmem:[#allocation128_spill] sm:$0xff] %v8108_v44  ;;  %5839 = vrot.lane.b32.xlu0 %v5838_v21, %s6040_s14  ;;  %v4073_v44 = vld [vmem:[%s9460_s3 + $0x40] sm:$0xff] }
 0x2fa   :  { %5834 = vrot.lane.b32.xlu1 %v5833_v55, %s6047_s21  ;;  %4143 = vmatpush1.msra.mxu1 %v4073_v44  ;;  %v4072_v55 = vld [vmem:[%s9460_s3 + $0x38] sm:$0xff]  ;;  %v4071_v44 = vld [vmem:[%s9460_s3 + $0x30] sm:$0xff] }
 0x2fb   :  { %v8127_v19 = vpop.permute.xlu0 %3376  ;;  %4144 = vmatprep.subr.mxu1 %v9737_v41 }
 0x2fc   :  { %v8125_v43 = vpop.permute.xlu1 %3710  ;;  %4145 = vmatpush1.msra.mxu1 %v4072_v55  ;;  %v4069_v55 = vld [vmem:[%s9460_s3 + $0x20] sm:$0xff] }
 0x2fd   :  { %9746 = vst [vmem:[#allocation130_spill] sm:$0xff] %v8125_v43  ;;  %5849 = vrot.lane.b32.xlu0 %v5848_v17, %s6043_s17  ;;  %4146 = vmatprep.subr.mxu1 %v9737_v41 }
 0x2fe   :  { %5844 = vrot.lane.b32.xlu1 %v5843_v39, %s6049_s23  ;;  %4147 = vmatpush1.msra.mxu1 %v4071_v44 }
 0x2ff   :  { %v8142_v43 = vpop.permute.xlu0 %3440  ;;  %4148 = vmatprep.subr.mxu1 %v9737_v41 }
 0x300   :  { %v8140_v40 = vpop.permute.xlu1 %3774  ;;  %4149 = vmatpush1.msra.mxu1 %v4070_v8  ;;  %v4068_v8 = vld [vmem:[%s9460_s3 + $0x18] sm:$0xff] }
 0x301   :  { %5859 = vrot.lane.b32.xlu0 %v5858_v28, %s6042_s16  ;;  %4150 = vmatprep.subr.mxu1 %v9737_v41 }
 0x302   :  { %5854 = vrot.lane.b32.xlu1 %v7996_v32, %s6050_s24  ;;  %4151 = vmatpush1.msra.mxu1 %v4069_v55  ;;  %v1987_v55 = vld [vmem:[#allocation2 + $0x41] sm:$0xff] }
 0x303   :  { %v8158_v7 = vpop.permute.xlu0 %5759  ;;  %4152 = vmatprep.subr.mxu1 %v9737_v41 }
 0x304   :  { %v8156_v39 = vpop.permute.xlu1 %5734  ;;  %9748 = vst [vmem:[#allocation132_spill] sm:$0xff] %v8158_v7  ;;  %v5868_v7 = vpack.i.bf16 %v7943_v33, %v7953_v9  ;;  %4153 = vmatpush1.msra.mxu1 %v4068_v8  ;;  %v5878_v9 = vpack.i.bf16 %v8016_v37, %v7972_v58 }
 0x305   :  { %9747 = vst [vmem:[#allocation131_spill] sm:$0xff] %v8156_v39  ;;  %5874 = vrot.lane.b32.xlu0 %v5848_v17, %s6052_s26  ;;  %4154 = vmatprep.subr.mxu1 %v9737_v41 }
 0x306   :  { %5864 = vrot.lane.b32.xlu1 %v5838_v21, %s6051_s25  ;;  %v4067_v21 = vld [vmem:[%s9460_s3 + $0x10] sm:$0xff] }
 0x307   :  { %v8169_v44 = vpop.permute.xlu0 %5769  ;;  %4155 = vmatpush1.msra.mxu1 %v4067_v21  ;;  %v6004_v21 = vld [vmem:[#allocation2 + $0x31] sm:$0xff] }
 0x308   :  { %v8167_v32 = vpop.permute.xlu1 %5739  ;;  %9750 = vst [vmem:[#allocation134_spill] sm:$0xff] %v8169_v44  ;;  %4156 = vmatprep.subr.mxu1 %v9737_v41 }
 0x309   :  { %9749 = vst [vmem:[#allocation133_spill] sm:$0xff] %v8167_v32  ;;  %5884 = vrot.lane.b32.xlu0 %v5858_v28, %s6053_s27  ;;  %v4066_v28 = vld [vmem:[%s9460_s3 + $0x8] sm:$0xff]  ;;  %v3857_v32 = vsel %vm1668_vm4, %v1987_v55, %v7554_v11 }
 0x30a   :  { %5869 = vrot.lane.b32.xlu1 %v5868_v7, %s6044_s18  ;;  %v3873_v8 = vsel %vm3106_vm5, %v3857_v32, %v7561_v51  ;;  %4157 = vmatpush1.msra.mxu1 %v4066_v28  ;;  %v4065_v51 = vld [vmem:[%s9460_s3] sm:$0xff] }
 0x30b   :  { %v8184_v44 = vpop.permute.xlu0 %5779  ;;  %4158 = vmatprep.subr.mxu1 %v9737_v41  ;;  %v1989_v28 = vld [vmem:[#allocation2 + $0x61] sm:$0xff] }
 0x30c   :  { %v8182_v17 = vpop.permute.xlu1 %5744  ;;  %9752 = vst [vmem:[#allocation136_spill] sm:$0xff] %v8184_v44  ;;  %v3856_v44 = vsel %vm1668_vm4, %v6004_v21, %v7497_v14  ;;  %4159 = vmatpush1.msra.mxu1 %v4065_v51 }
 0x30d   :  { %9751 = vst [vmem:[#allocation135_spill] sm:$0xff] %v8182_v17  ;;  %5894 = vrot.lane.b32.xlu0 %v5868_v7, %s6054_s2  ;;  %v3889_v17 = vsel %vm3123_vm6, %v3873_v8, %v7571_v50  ;;  %v5888_v7 = vpack.i.bf16 %v8030_v59, %v7963_v20  ;;  %v3872_v14 = vsel %vm3106_vm5, %v3856_v44, %v7506_v4  ;;  %v4083_v20 = vld [vmem:[%s9460_s3 + $0x90] sm:$0x3f] }
 0x30e   :  { %5879 = vrot.lane.b32.xlu1 %v5878_v9, %s6045_s19  ;;  %v5908_v9 = vpack.i.bf16 %v8055_v22, %v7984_v13  ;;  %v3905_v50 = vsel %vm3140_vm7, %v3889_v17, %v7622_v25  ;;  %v3888_v13 = vsel %vm3123_vm6, %v3872_v14, %v7486_v30  ;;  %v5898_v44 = vpack.i.bf16 %v8041_v38, %v7974_v10  ;;  %v4082_v30 = vld [vmem:[%s9460_s3 + $0x88] sm:$0xff]  ;;  %v1988_v8 = vld [vmem:[#allocation2 + $0x51] sm:$0xff] }
 0x30f   :  { %v8205_v11 = vpop.permute.xlu0 %5789  ;;  %v3921_v4 = vsel %vm3157_vm9, %v3905_v50, %v7605_v46  ;;  %v5918_v17 = vpack.i.bf16 %v8070_v48, %v7943_v33  ;;  %4186 = vmatprep.subr.mxu1 %v9737_v41  ;;  %v3904_v55 = vsel %vm3140_vm7, %v3888_v13, %v7559_v15  ;;  %v3859_v10 = vsel %vm1668_vm4, %v1989_v28, %v7697_v52  ;;  %v1990_v13 = vld [vmem:[#allocation2 + $0x71] sm:$0xff] }
 0x310   :  { %v8203_v39 = vpop.permute.xlu1 %5749  ;;  %4906 = vmatpush2.msk.msra.mxu1 %vm4124_vm8, %v4083_v20  ;;  %v3920_v46 = vsel %vm3157_vm9, %v3904_v55, %v7569_v35  ;;  %v3937_v33 = vsel %vm3174_vm10, %v3921_v4, %v7613_v1  ;;  %v3875_v21 = vsel %vm3106_vm5, %v3859_v10, %v7703_v16  ;;  %v3858_v52 = vsel %vm1668_vm4, %v1988_v8, %v7628_v62  ;;  %v4081_v16 = vld [vmem:[%s9460_s3 + $0x80] sm:$0xff]  ;;  %s6056_s3 = smov 96   ;;  %v9753_v55 = vld [vmem:[#allocation44_spill] sm:$0xff]  ;;  %v9758_v8 = vld [vmem:[#allocation39_spill] sm:$0xff] }
 0x311   :  { %5909 = vrot.lane.b32.xlu0 %v5908_v9, %s6047_s21  ;;  %v3936_v15 = vsel %vm3174_vm10, %v3920_v46, %v7578_v5  ;;  %4188 = vmatprep.subr.mxu1 %v9737_v41  ;;  %v5903_v1 = vpack.i.bf16 %v8068_v47, %v8016_v37  ;;  %v3874_v62 = vsel %vm3106_vm5, %v3858_v52, %v7637_v26  ;;  %v6005_v4 = vld [vmem:[#allocation2 + $0x81] sm:$0xff]  ;;  %v9754_v28 = vld [vmem:[#allocation72_spill] sm:$0xff]  ;;  %vm4048_vm8 = vcmask 785408  }
 0x312   :  { %5889 = vrot.lane.b32.xlu1 %v5888_v7, %s6048_s22  ;;  %v3952_v35 = vsel %vm9554_vm11, %v3936_v15, %v7584_v60  ;;  %v3891_v7 = vsel %vm3123_vm6, %v3875_v21, %v7709_v53  ;;  %4189 = vmatpush2.msra.mxu1 %v4082_v30  ;;  %v3953_v51 = vsel %vm9554_vm11, %v3937_v33, %v7620_v31  ;;  %v9755_v30 = vld [vmem:[#allocation30_spill] sm:$0xff]  ;;  %v9756_v10 = vld [vmem:[#allocation56_spill] sm:$0xff]  ;;  %v9759_v21 = vld [vmem:[#allocation59_spill] sm:$0xff] }
 0x313   :  { %v8230_v32 = vpop.permute.xlu0 %3568  ;;  %v3968_v60 = vsel %vm3208_vm12, %v3952_v35, %v7590_v49  ;;  %v3907_v53 = vsel %vm3140_vm7, %v3891_v7, %v7715_v57  ;;  %4190 = vmatprep.subr.mxu1 %v9737_v41  ;;  %v3890_v14 = vsel %vm3123_vm6, %v3874_v62, %v7643_v12  ;;  %v8291_v50 = vpack.i.bf16 %v8084_v27, %v8030_v59  ;;  %v9757_v33 = vld [vmem:[#allocation74_spill] sm:$0xff]  ;;  %v9762_v62 = vld [vmem:[#allocation60_spill] sm:$0xff] }
 0x314   :  { %v8228_v25 = vpop.permute.xlu1 %5754  ;;  %4191 = vmatpush2.msra.mxu1 %v4081_v16  ;;  %v3923_v49 = vsel %vm3157_vm9, %v3907_v53, %v7701_v45  ;;  %v3969_v31 = vsel %vm3208_vm12, %v3953_v51, %v7626_v63  ;;  %v3906_v12 = vsel %vm3140_vm7, %v3890_v14, %v7615_v0  ;;  %v3860_v0 = vsel %vm1668_vm4, %v1990_v13, %v7721_v29  ;;  %v9760_v52 = vld [vmem:[#allocation70_spill] sm:$0xff]  ;;  %v9761_v16 = vld [vmem:[#allocation76_spill] sm:$0xff]  ;;  %v9763_v51 = vld [vmem:[#allocation71_spill] sm:$0xff] }
 0x315   :  { %5919 = vrot.lane.b32.xlu0 %v5918_v17, %s6049_s23  ;;  %4485 = vmatprep.subr.mxu1 %v9737_v41  ;;  %v3922_v20 = vsel %vm3157_vm9, %v3906_v12, %v7674_v3  ;;  %v3939_v59 = vsel %vm3174_vm10, %v3923_v49, %v7707_v23  ;;  %v3861_v3 = vsel %vm1668_vm4, %v6005_v4, %v7763_v36  ;;  %v9764_v49 = vld [vmem:[#allocation62_spill] sm:$0xff]  ;;  %v9765_v12 = vld [vmem:[#allocation73_spill] sm:$0xff] }
 0x316   :  { %5899 = vrot.lane.b32.xlu1 %v5898_v44, %s6046_s20  ;;  %v3938_v45 = vsel %vm3174_vm10, %v3922_v20, %v7680_v54  ;;  %v8319_v54 = vpack.i.bf16 %v8098_v56, %v8041_v38  ;;  %v3877_v29 = vsel %vm3106_vm5, %v3861_v3, %v7769_v34  ;;  %v3955_v38 = vsel %vm9554_vm11, %v3939_v59, %v7713_v24  ;;  %v9767_v59 = vld [vmem:[#allocation43_spill] sm:$0xff] }
 0x317   :  { %v8263_v5 = vpop.permute.xlu0 %3378  ;;  %v3954_v63 = vsel %vm9554_vm11, %v3938_v45, %v7689_v18  ;;  %v3876_v18 = vsel %vm3106_vm5, %v3860_v0, %v7727_v42  ;;  %v3893_v36 = vsel %vm3123_vm6, %v3877_v29, %v7775_v61  ;;  %v3862_v34 = vsel %vm1668_vm4, %v9755_v30, %v9754_v28  ;;  %v9766_v45 = vld [vmem:[#allocation85_spill] sm:$0xff]  ;;  %v9769_v3 = vld [vmem:[#allocation75_spill] sm:$0xff]  ;;  %v9774_v30 = vld [vmem:[#allocation88_spill] sm:$0xff] }
 0x318   :  { %v8261_v9 = vpop.permute.xlu1 %5764  ;;  %v3970_v23 = vsel %vm3208_vm12, %v3954_v63, %v7695_v6  ;;  %v3909_v6 = vsel %vm3140_vm7, %v3893_v36, %v7820_v2  ;;  %v3892_v42 = vsel %vm3123_vm6, %v3876_v18, %v9753_v55  ;;  %v3878_v24 = vsel %vm3106_vm5, %v3862_v34, %v9757_v33  ;;  %v9770_v18 = vld [vmem:[#allocation69_spill] sm:$0xff]  ;;  %v9771_v36 = vld [vmem:[#allocation87_spill] sm:$0xff] }
 0x319   :  { %4000 = vrot.lane.b32.xlu0 %v3968_v60, %s6056_s3  ;;  %v3908_v15 = vsel %vm3140_vm7, %v3892_v42, %v9756_v10  ;;  %v3971_v2 = vsel %vm3208_vm12, %v3955_v38, %v9758_v8  ;;  %v3925_v7 = vsel %vm3157_vm9, %v3909_v6, %v9760_v52  ;;  %v3894_v60 = vsel %vm3123_vm6, %v3878_v24, %v9761_v16  ;;  %v9772_v6 = vld [vmem:[#allocation86_spill] sm:$0xff]  ;;  %v9773_v42 = vld [vmem:[#allocation89_spill] sm:$0xff]  ;;  %v9775_v10 = vld [vmem:[#allocation91_spill] sm:$0xff] }
 0x31a   :  { %5904 = vrot.lane.b32.xlu1 %v5903_v1, %s6041_s15  ;;  %v3924_v35 = vsel %vm3157_vm9, %v3908_v15, %v9759_v21  ;;  %v3941_v14 = vsel %vm3174_vm10, %v3925_v7, %v9763_v51  ;;  %v3863_v13 = vsel %vm1668_vm4, %v9767_v59, %v9766_v45  ;;  %v3910_v29 = vsel %vm3140_vm7, %v3894_v60, %v9770_v18  ;;  %v9776_v33 = vld [vmem:[#allocation9_spill] sm:$0xff]  ;;  %v9777_v8 = vld [vmem:[#allocation90_spill] sm:$0xff]  ;;  %v9778_v21 = vld [vmem:[#allocation95_spill] sm:$0xff] }
 0x31b   :  { %v8287_v57 = vpop.permute.xlu0 %3442  ;;  %v3940_v53 = vsel %vm3174_vm10, %v3924_v35, %v9762_v62  ;;  %v3957_v20 = vsel %vm9554_vm11, %v3941_v14, %v9765_v12  ;;  %v3879_v38 = vsel %vm3106_vm5, %v3863_v13, %v9771_v36  ;;  %v3926_v55 = vsel %vm3157_vm9, %v3910_v29, %v9772_v6  ;;  %v9779_v16 = vld [vmem:[#allocation113_spill] sm:$0xff]  ;;  %v6006_v29 = vld [vmem:[#allocation2 + $0x10] sm:$0xff] }
 0x31c   :  { %v8285_v26 = vpop.permute.xlu1 %5774  ;;  %v3895_v28 = vsel %vm3123_vm6, %v3879_v38, %v9773_v42  ;;  %v3942_v34 = vsel %vm3174_vm10, %v3926_v55, %v9774_v30  ;;  %v5416_v24 = vunpack.i.l.bf16 %v9776_v33  ;;  %v5933_v60 = vpack.i.bf16 %v9779_v16, %v8055_v22  ;;  %v9781_v14 = vld [vmem:[#allocation97_spill] sm:$0xff]  ;;  %v9785_v6 = vld [vmem:[#allocation84_spill] sm:$0xff]  ;;  %v9786_v42 = vld [vmem:[#allocation6_spill] sm:$0xff] }
 0x31d   :  { %4002 = vrot.lane.b32.xlu0 %v3969_v31, %s6056_s3  ;;  %v3956_v31 = vsel %vm9554_vm11, %v3940_v53, %v9764_v49  ;;  %v3911_v15 = vsel %vm3140_vm7, %v3895_v28, %v9775_v10  ;;  %v5417_v62 = vunpack.i.h.bf16 %v9776_v33  ;;  %v9780_v53 = vld [vmem:[#allocation93_spill] sm:$0xff]  ;;  %v5431_v28 = vunpack.i.l.bf16 %v9786_v42 }
 0x31e   :  { %5914 = vrot.lane.b32.xlu1 %v8291_v50, %s6040_s14  ;;  %v3927_v35 = vsel %vm3157_vm9, %v3911_v15, %v9778_v21  ;;  %v1730_v59 = vld [vmem:[#allocation2] sm:$0xff]  ;;  %v5432_v10 = vunpack.i.h.bf16 %v9786_v42  ;;  %v8471_v42 = vld [vmem:[#allocation2 + $0x150] sm:$0xff] }
 0x31f   :  { %v8315_v17 = vpop.permute.xlu0 %3506  ;;  %v3943_v49 = vsel %vm3174_vm10, %v3927_v35, %v9781_v14  ;;  %v3090_v13 = vsel %vm1668_vm4, %v1730_v59, %v5416_v24  ;;  %v8420_v18 = vld [vmem:[#allocation2 + $0x140] sm:$0xff]  ;;  %v3091_v36 = vsel %vm1668_vm4, %v6006_v29, %v5417_v62  ;;  %v9787_v24 = vld [vmem:[#allocation12_spill] sm:$0xff]  ;;  %v9789_v14 = vld [vmem:[#allocation19_spill] sm:$0xff] }
 0x320   :  { %v8313_v44 = vpop.permute.xlu1 %5784  ;;  %v5437_v35 = vunpack.i.h.bf16 %v9787_v24  ;;  %v9788_v62 = vld [vmem:[#allocation17_spill] sm:$0xff] }
 0x321   :  { %4004 = vrot.lane.b32.xlu0 %v3970_v23, %s6056_s3  ;;  %v3973_v23 = vsel %vm3208_vm12, %v3957_v20, %v9769_v3  ;;  %v9783_v20 = vld [vmem:[#allocation15_spill] sm:$0xff] }
 0x322   :  { %5924 = vrot.lane.b32.xlu1 %v8319_v54, %s6043_s17  ;;  %v5421_v45 = vunpack.i.l.bf16 %v9783_v20  ;;  %v5422_v22 = vunpack.i.h.bf16 %v9783_v20 }
 0x323   :  { %v8343_v61 = vpop.permute.xlu0 %5804 }
 0x324   :  { %v8341_v46 = vpop.permute.xlu1 %5794  ;;  %v3107_v30 = vsel %vm3106_vm5, %v3090_v13, %v5421_v45  ;;  %v3108_v15 = vsel %vm3106_vm5, %v3091_v36, %v5422_v22 }
 0x325   :  { %5929 = vrot.lane.b32.xlu0 %v5903_v1, %s6050_s24  ;;  %v9768_v1 = vld [vmem:[#allocation64_spill] sm:$0xff] }
 0x326   :  { %4006 = vrot.lane.b32.xlu1 %v3971_v2, %s6056_s3  ;;  %v3972_v4 = vsel %vm3208_vm12, %v3956_v31, %v9768_v1  ;;  %v3958_v2 = vsel %vm9554_vm11, %v3942_v34, %v9777_v8  ;;  %v9782_v31 = vld [vmem:[#allocation99_spill] sm:$0xff]  ;;  %v9784_v1 = vld [vmem:[#allocation16_spill] sm:$0xff]  ;;  %v5943_v34 = vpack.i.bf16 %v8420_v18, %v8070_v48  ;;  %v5436_v8 = vunpack.i.l.bf16 %v9787_v24 }
 0x327   :  { %v8372_v0 = vpop.permute.xlu0 %5809  ;;  %v3974_v51 = vsel %vm3208_vm12, %v3958_v2, %v9780_v53  ;;  %v3959_v12 = vsel %vm9554_vm11, %v3943_v49, %v9782_v31  ;;  %v5427_v38 = vunpack.i.h.bf16 %v9784_v1  ;;  %v5441_v53 = vunpack.i.l.bf16 %v9788_v62  ;;  %v8483_v24 = vld [vmem:[#allocation2 + $0x143] sm:$0xff] }
 0x328   :  { %v8370_v63 = vpop.permute.xlu1 %5799  ;;  %v3975_v55 = vsel %vm3208_vm12, %v3959_v12, %v9785_v6  ;;  %v5442_v48 = vunpack.i.h.bf16 %v9788_v62  ;;  %v5446_v49 = vunpack.i.l.bf16 %v9789_v14  ;;  %v5447_v12 = vunpack.i.h.bf16 %v9789_v14  ;;  %v9792_v62 = vld [vmem:[#allocation18_spill] sm:$0xff] }
 0x329   :  { %4010 = vrot.lane.b32.xlu0 %v3973_v23, %s6056_s3  ;;  %v5462_v14 = vunpack.i.h.bf16 %v9792_v62 }
 0x32a   :  { %4008 = vrot.lane.b32.xlu1 %v3972_v4, %s6056_s3  ;;  %v5426_v4 = vunpack.i.l.bf16 %v9784_v1 }
 0x32b   :  { %v8399_v7 = vpop.permute.xlu0 %5814 }
 0x32c   :  { %v8397_v52 = vpop.permute.xlu1 %3632  ;;  %v3124_v33 = vsel %vm3123_vm6, %v3107_v30, %v5426_v4  ;;  %v8463_v4 = vld [vmem:[#allocation2 + $0x142] sm:$0xff]  ;;  %v9791_v30 = vld [vmem:[#allocation77_spill] sm:$0xff] }
 0x32d   :  { %4012 = vrot.lane.b32.xlu0 %v3974_v51, %s6056_s3  ;;  %v8444_v51 = vld [vmem:[#allocation2 + $0x141] sm:$0xff]  ;;  %v3141_v31 = vsel %vm3140_vm7, %v3124_v33, %v5431_v28 }
 0x32e   :  { %5934 = vrot.lane.b32.xlu1 %v5933_v60, %s6042_s16  ;;  %v3158_v45 = vsel %vm3157_vm9, %v3141_v31, %v5436_v8  ;;  %v5953_v13 = vpack.i.bf16 %v8444_v51, %v8068_v47  ;;  %v8485_v8 = vld [vmem:[#allocation2 + $0x152] sm:$0xff]  ;;  %v8501_v31 = vld [vmem:[#allocation2 + $0x144] sm:$0xff] }
 0x32f   :  { %v8418_v23 = vpop.permute.xlu0 %5824 }
 0x330   :  { %v8416_v3 = vpop.permute.xlu1 %3696 }
 0x331   :  { %5939 = vrot.lane.b32.xlu0 %v8291_v50, %s6051_s25  ;;  %v3125_v50 = vsel %vm3123_vm6, %v3108_v15, %v5427_v38  ;;  %v9790_v38 = vld [vmem:[#allocation13_spill] sm:$0xff] }
 0x332   :  { %4014 = vrot.lane.b32.xlu1 %v3975_v55, %s6056_s3  ;;  %v3142_v20 = vsel %vm3140_vm7, %v3125_v50, %v5432_v10  ;;  %v5451_v6 = vunpack.i.l.bf16 %v9790_v38  ;;  %v5452_v28 = vunpack.i.h.bf16 %v9790_v38  ;;  %v3864_v10 = vsel %vm1668_vm4, %v9791_v30, %v8127_v19  ;;  %v8487_v50 = vld [vmem:[#allocation2 + $0x153] sm:$0xff] }
 0x333   :  { %v8439_v21 = vpop.permute.xlu0 %3572  ;;  %v3159_v1 = vsel %vm3157_vm9, %v3142_v20, %v5437_v35  ;;  %v3880_v19 = vsel %vm3106_vm5, %v3864_v10, %v8142_v43  ;;  %v5993_v43 = vpack.i.bf16 %v8485_v8, %v8463_v4  ;;  %v9793_v20 = vld [vmem:[#allocation7_spill] sm:$0xff]  ;;  %v9797_v8 = vld [vmem:[#allocation10_spill] sm:$0xff] }
 0x334   :  { %v8437_v2 = vpop.permute.xlu1 %3760  ;;  %v3176_v29 = vsel %vm3174_vm10, %v3159_v1, %v5442_v48 }
 0x335   :  { %5944 = vrot.lane.b32.xlu0 %v5943_v34, %s6044_s18  ;;  %v3193_v55 = vsel %vm9554_vm11, %v3176_v29, %v5447_v12  ;;  %v5998_v12 = vpack.i.bf16 %v8487_v50, %v8483_v24 }
 0x336   :  { %5949 = vrot.lane.b32.xlu1 %v8319_v54, %s6052_s26  ;;  %v3175_v54 = vsel %vm3174_vm10, %v3158_v45, %v5441_v53  ;;  %v5461_v53 = vunpack.i.l.bf16 %v9792_v62  ;;  %v3210_v48 = vsel %vm3208_vm12, %v3193_v55, %v5452_v28  ;;  %v5471_v45 = vunpack.i.l.bf16 %v9793_v20  ;;  %v9796_v55 = vld [vmem:[#allocation8_spill] sm:$0xff]  ;;  %v9798_v62 = vld [vmem:[#allocation11_spill] sm:$0xff] }
 0x337   :  { %v8457_v22 = vpop.permute.xlu0 %3570  ;;  %v3192_v36 = vsel %vm9554_vm11, %v3175_v54, %v5446_v49  ;;  %v5973_v49 = vpack.i.bf16 %v8483_v24, %v8098_v56  ;;  %v3227_v56 = vsel %vm3225_vm13, %v3210_v48, %v5462_v14  ;;  %v5482_v28 = vunpack.i.h.bf16 %v9796_v55  ;;  %v9810_v24 = vld [vmem:[#allocation31_spill] sm:$0xff] }
 0x338   :  { %v8455_v59 = vpop.permute.xlu1 %3824  ;;  %v3209_v35 = vsel %vm3208_vm12, %v3192_v36, %v5451_v6  ;;  %v9795_v36 = vld [vmem:[#allocation14_spill] sm:$0xff]  ;;  %v5481_v30 = vunpack.i.l.bf16 %v9796_v55  ;;  %v5537_v50 = vunpack.i.h.bf16 %v9810_v24 }
 0x339   :  { %5954 = vrot.lane.b32.xlu0 %v5953_v13, %s6045_s19  ;;  %v3226_v13 = vsel %vm3225_vm13, %v3209_v35, %v5461_v53  ;;  %v5457_v38 = vunpack.i.h.bf16 %v9795_v36  ;;  %v5467_v35 = vunpack.i.h.bf16 %v9797_v8 }
 0x33a   :  { %5959 = vrot.lane.b32.xlu1 %v5933_v60, %s6053_s27  ;;  %v5963_v60 = vpack.i.bf16 %v8463_v4, %v8084_v27  ;;  %v5983_v27 = vpack.i.bf16 %v8471_v42, %v8420_v18  ;;  %v9794_v18 = vld [vmem:[#allocation129_spill] sm:$0xff]  ;;  %v5456_v4 = vunpack.i.l.bf16 %v9795_v36  ;;  %v3243_v48 = vsel %vm3242_vm14, %v3226_v13, %v5471_v45 }
 0x33b   :  { %v8479_v33 = vpop.permute.xlu0 %3380  ;;  %v3896_v1 = vsel %vm3123_vm6, %v3880_v19, %v9794_v18  ;;  %v5466_v19 = vunpack.i.l.bf16 %v9797_v8  ;;  %v3260_v45 = vsel %vm3259_vm15, %v3243_v48, %v5481_v30 }
 0x33c   :  { %v8477_v15 = vpop.permute.xlu1 %5819  ;;  %v3912_v6 = vsel %vm3140_vm7, %v3896_v1, %v8230_v32  ;;  %v5491_v32 = vunpack.i.l.bf16 %v9798_v62  ;;  %v6008_v1 = vld [vmem:[#allocation2 + $0x20] sm:$0xff] }
 0x33d   :  { %5964 = vrot.lane.b32.xlu0 %v5963_v60, %s6048_s22  ;;  %v3928_v10 = vsel %vm3157_vm9, %v3912_v6, %v8397_v52  ;;  %v5978_v60 = vpack.i.bf16 %v8501_v31, %v9779_v16  ;;  %v3092_v36 = vsel %vm1668_vm4, %v6008_v1, %v5456_v4  ;;  %v9799_v6 = vld [vmem:[#allocation20_spill] sm:$0xff] }
 0x33e   :  { %5969 = vrot.lane.b32.xlu1 %v5943_v34, %s6054_s2  ;;  %v5472_v34 = vunpack.i.h.bf16 %v9793_v20  ;;  %v3944_v53 = vsel %vm3174_vm10, %v3928_v10, %v8416_v3  ;;  %v6007_v20 = vld [vmem:[#allocation2 + $0x30] sm:$0xff]  ;;  %v5476_v3 = vunpack.i.l.bf16 %v9799_v6  ;;  %v9801_v10 = vld [vmem:[#allocation22_spill] sm:$0xff] }
 0x33f   :  { %v8512_v29 = vpop.permute.xlu0 %3444  ;;  %v3960_v14 = vsel %vm9554_vm11, %v3944_v53, %v8437_v2  ;;  %v3093_v18 = vsel %vm1668_vm4, %v6007_v20, %v5457_v38  ;;  %v5477_v2 = vunpack.i.h.bf16 %v9799_v6  ;;  %v3109_v38 = vsel %vm3106_vm5, %v3092_v36, %v5466_v19  ;;  %v9802_v19 = vld [vmem:[#allocation24_spill] sm:$0xff]  ;;  %v9805_v6 = vld [vmem:[#allocation27_spill] sm:$0xff] }
 0x340   :  { %v3635_v54 = vpop.permute.xlu1 %3634  ;;  %v3244_v52 = vsel %vm3242_vm14, %v3227_v56, %v5472_v34  ;;  %v3976_v34 = vsel %vm3208_vm12, %v3960_v14, %v8455_v59  ;;  %v9800_v56 = vld [vmem:[#allocation92_spill] sm:$0xff]  ;;  %v3110_v4 = vsel %vm3106_vm5, %v3093_v18, %v5467_v35  ;;  %v3277_v59 = vsel %vm3276_vm0, %v3260_v45, %v5491_v32  ;;  %v9804_v18 = vld [vmem:[#allocation21_spill] sm:$0xff] }
 0x341   :  { %5974 = vrot.lane.b32.xlu0 %v5973_v49, %s6046_s20  ;;  %v3261_v13 = vsel %vm3259_vm15, %v3244_v52, %v5482_v28  ;;  %v3865_v55 = vsel %vm1668_vm4, %v9800_v56, %v8263_v5  ;;  %v5487_v8 = vunpack.i.h.bf16 %v9801_v10  ;;  %v5486_v5 = vunpack.i.l.bf16 %v9801_v10 }
 0x342   :  { %5984 = vrot.lane.b32.xlu1 %v5983_v27, %s6049_s23  ;;  %v5492_v27 = vunpack.i.h.bf16 %v9798_v62  ;;  %v3881_v28 = vsel %vm3106_vm5, %v3865_v55, %v8287_v57  ;;  %v3126_v35 = vsel %vm3123_vm6, %v3109_v38, %v5476_v3  ;;  %v5507_v32 = vunpack.i.h.bf16 %v9802_v19 }
 0x343   :  { %v8537_v16 = vpop.permute.xlu0 %3508  ;;  %v5506_v48 = vunpack.i.l.bf16 %v9802_v19  ;;  %v3127_v52 = vsel %vm3123_vm6, %v3110_v4, %v5477_v2  ;;  %v5497_v1 = vunpack.i.h.bf16 %v9804_v18  ;;  %v5496_v36 = vunpack.i.l.bf16 %v9804_v18 }
 0x344   :  { %v3699_v49 = vpop.permute.xlu1 %3698  ;;  %v3278_v30 = vsel %vm3276_vm0, %v3261_v13, %v5492_v27  ;;  %v9803_v27 = vld [vmem:[#allocation25_spill] sm:$0xff]  ;;  %v5516_v3 = vunpack.i.l.bf16 %v9805_v6  ;;  %v3144_v45 = vsel %vm3140_vm7, %v3127_v52, %v5487_v8  ;;  %v5517_v13 = vunpack.i.h.bf16 %v9805_v6 }
 0x345   :  { %5979 = vrot.lane.b32.xlu0 %v5978_v60, %s6047_s21  ;;  %v3897_v60 = vsel %vm3123_vm6, %v3881_v28, %v8315_v17  ;;  %v5512_v14 = vunpack.i.h.bf16 %v9803_v27  ;;  %v5511_v20 = vunpack.i.l.bf16 %v9803_v27  ;;  %v3161_v4 = vsel %vm3157_vm9, %v3144_v45, %v5507_v32 }
 0x346   :  { %4016 = vrot.lane.b32.xlu1 %v3976_v34, %s6056_s3  ;;  %v3913_v57 = vsel %vm3140_vm7, %v3897_v60, %v8457_v22  ;;  %v3143_v22 = vsel %vm3140_vm7, %v3126_v35, %v5486_v5  ;;  %v9807_v5 = vld [vmem:[#allocation28_spill] sm:$0xff]  ;;  %v9808_v35 = vld [vmem:[#allocation26_spill] sm:$0xff]  ;;  %v3294_v27 = vsel %vm9555_vm1, %v3277_v59, %v5496_v36  ;;  %v3295_v18 = vsel %vm9555_vm1, %v3278_v30, %v5497_v1 }
 0x347   :  { %v8562_v53 = vpop.permute.xlu0 %5829  ;;  %v3929_v17 = vsel %vm3157_vm9, %v3913_v57, %v3635_v54  ;;  %v3160_v38 = vsel %vm3157_vm9, %v3143_v22, %v5506_v48  ;;  %v3178_v8 = vsel %vm3174_vm10, %v3161_v4, %v5512_v14  ;;  %v5526_v60 = vunpack.i.l.bf16 %v9807_v5  ;;  %v9809_v57 = vld [vmem:[#allocation29_spill] sm:$0xff]  ;;  %v9811_v22 = vld [vmem:[#allocation32_spill] sm:$0xff]  ;;  %v9812_v1 = vld [vmem:[#allocation34_spill] sm:$0xff] }
 0x348   :  { %v3763_v62 = vpop.permute.xlu1 %3762  ;;  %v3945_v34 = vsel %vm3174_vm10, %v3929_v17, %v3699_v49  ;;  %v3177_v10 = vsel %vm3174_vm10, %v3160_v38, %v5511_v20  ;;  %v5521_v19 = vunpack.i.l.bf16 %v9808_v35  ;;  %v5527_v48 = vunpack.i.h.bf16 %v9807_v5  ;;  %v1735_v30 = vld [vmem:[#allocation2 + $0x50] sm:$0xff]  ;;  %v1734_v4 = vld [vmem:[#allocation2 + $0x40] sm:$0xff] }
 0x349   :  { %v3961_v2 = vsel %vm9554_vm11, %v3945_v34, %v3763_v62  ;;  %v8597_v62 = vld [vmem:[#allocation2 + $0x151] sm:$0xff]  ;;  %v3194_v32 = vsel %vm9554_vm11, %v3177_v10, %v5516_v3  ;;  %v5531_v52 = vunpack.i.l.bf16 %v9809_v57  ;;  %v3195_v14 = vsel %vm9554_vm11, %v3178_v8, %v5517_v13 }
 0x34a   :  { %5994 = vrot.lane.b32.xlu1 %v5993_v43, %s6051_s25  ;;  %v9806_v43 = vld [vmem:[#allocation23_spill] sm:$0xff]  ;;  %v5532_v20 = vunpack.i.h.bf16 %v9809_v57  ;;  %v5536_v6 = vunpack.i.l.bf16 %v9810_v24  ;;  %v5988_v3 = vpack.i.bf16 %v8597_v62, %v8444_v51  ;;  %v5522_v59 = vunpack.i.h.bf16 %v9808_v35 }
 0x34b   :  { %v8582_v54 = vpop.permute.xlu0 %3512  ;;  %v5501_v55 = vunpack.i.l.bf16 %v9806_v43  ;;  %v5502_v49 = vunpack.i.h.bf16 %v9806_v43  ;;  %v3211_v36 = vsel %vm3208_vm12, %v3194_v32, %v5526_v60  ;;  %v5546_v45 = vunpack.i.l.bf16 %v9811_v22  ;;  %v9813_v32 = vld [vmem:[#allocation36_spill] sm:$0xff] }
 0x34c   :  { %v3827_v56 = vpop.permute.xlu1 %3826  ;;  %v5542_v43 = vunpack.i.h.bf16 %v9812_v1  ;;  %v5541_v10 = vunpack.i.l.bf16 %v9812_v1  ;;  %v3094_v60 = vsel %vm1668_vm4, %v1734_v4, %v5536_v6  ;;  %v6009_v6 = vld [vmem:[#allocation2 + $0x141] sm:$0xff] }
 0x34d   :  { %v3977_v28 = vsel %vm3208_vm12, %v3961_v2, %v3827_v56  ;;  %v3311_v34 = vsel %vm3310_vm2, %v3294_v27, %v5501_v55  ;;  %v3312_v13 = vsel %vm3310_vm2, %v3295_v18, %v5502_v49  ;;  %v3212_v2 = vsel %vm3208_vm12, %v3195_v14, %v5527_v48  ;;  %v9814_v14 = vld [vmem:[#allocation33_spill] sm:$0xff] }
 0x34e   :  { %5999 = vrot.lane.b32.xlu1 %v5998_v12, %s6052_s26  ;;  %4018 = vrot.lane.b32.xlu0 %v3977_v28, %s6056_s3  ;;  %v3228_v56 = vsel %vm3225_vm13, %v3211_v36, %v5531_v52  ;;  %v8622_v38 = vsel %vm9553_vm3, %v3311_v34, %v5521_v19  ;;  %v3229_v55 = vsel %vm3225_vm13, %v3212_v2, %v5532_v20  ;;  %v5552_v48 = vunpack.i.h.bf16 %v9813_v32  ;;  %v9816_v34 = vld [vmem:[#allocation94_spill] sm:$0xff] }
 0x34f   :  { %v8607_v17 = vpop.permute.xlu0 %3830  ;;  %v3095_v28 = vsel %vm1668_vm4, %v1735_v30, %v5537_v50  ;;  %v3866_v49 = vsel %vm1668_vm4, %v7972_v58, %v8479_v33  ;;  %v5551_v19 = vunpack.i.l.bf16 %v9813_v32  ;;  %v5547_v52 = vunpack.i.h.bf16 %v9811_v22  ;;  %v9815_v50 = vld [vmem:[#allocation38_spill] sm:$0xff]  ;;  %v9817_v22 = vld [vmem:[#allocation35_spill] sm:$0xff]  ;;  %v9819_v32 = vld [vmem:[#allocation37_spill] sm:$0xff] }
 0x350   :  { %v3637_v12 = vpop.permute.xlu1 %3636  ;;  %v3882_v57 = vsel %vm3106_vm5, %v3866_v49, %v8512_v29  ;;  %v3245_v27 = vsel %vm3242_vm14, %v3228_v56, %v5546_v45  ;;  %v5557_v20 = vunpack.i.h.bf16 %v9814_v14  ;;  %v5556_v33 = vunpack.i.l.bf16 %v9814_v14  ;;  %v9818_v56 = vld [vmem:[#allocation105_spill] sm:$0xff]  ;;  %v9820_v14 = vld [vmem:[#allocation104_spill] sm:$0xff] }
 0x351   :  { %v3898_v58 = vsel %vm3123_vm6, %v3882_v57, %v8537_v16  ;;  %v3112_v24 = vsel %vm3106_vm5, %v3095_v28, %v5542_v43  ;;  %v5561_v18 = vunpack.i.l.bf16 %v9815_v50  ;;  %v3869_v36 = vsel %vm1668_vm4, %v6009_v6, %v9816_v34  ;;  %v6010_v57 = vld [vmem:[#allocation2 + $0x151] sm:$0xff] }
 0x352   :  { %v3111_v29 = vsel %vm3106_vm5, %v3094_v60, %v5541_v10  ;;  %v5567_v2 = vunpack.i.h.bf16 %v9817_v22  ;;  %v5562_v45 = vunpack.i.h.bf16 %v9815_v50  ;;  %v3885_v30 = vsel %vm3106_vm5, %v3869_v36, %v9818_v56  ;;  %v9821_v36 = vld [vmem:[#allocation98_spill] sm:$0xff]  ;;  %v9824_v56 = vld [vmem:[#allocation109_spill] sm:$0xff] }
 0x353   :  { %v8630_v5 = vpop.permute.xlu0 %3382  ;;  %v5566_v4 = vunpack.i.l.bf16 %v9817_v22  ;;  %v3128_v43 = vsel %vm3123_vm6, %v3111_v29, %v5551_v19  ;;  %v3129_v28 = vsel %vm3123_vm6, %v3112_v24, %v5552_v48  ;;  %v3914_v49 = vsel %vm3140_vm7, %v3898_v58, %v8439_v21  ;;  %v9822_v29 = vld [vmem:[#allocation114_spill] sm:$0xff]  ;;  %v9823_v24 = vld [vmem:[#allocation40_spill] sm:$0xff] }
 0x354   :  { %v3701_v8 = vpop.permute.xlu1 %3700  ;;  %v5572_v10 = vunpack.i.h.bf16 %v9819_v32  ;;  %v5571_v60 = vunpack.i.l.bf16 %v9819_v32  ;;  %v3870_v50 = vsel %vm1668_vm4, %v6010_v57, %v9820_v14  ;;  %v3930_v6 = vsel %vm3157_vm9, %v3914_v49, %v3637_v12 }
 0x355   :  { %v3145_v34 = vsel %vm3140_vm7, %v3128_v43, %v5561_v18  ;;  %v3901_v19 = vsel %vm3123_vm6, %v3885_v30, %v9821_v36  ;;  %v3886_v48 = vsel %vm3106_vm5, %v3870_v50, %v9822_v29  ;;  %v3946_v21 = vsel %vm3174_vm10, %v3930_v6, %v3701_v8  ;;  %v9825_v43 = vld [vmem:[#allocation111_spill] sm:$0xff]  ;;  %v9826_v50 = vld [vmem:[#allocation108_spill] sm:$0xff]  ;;  %v9827_v36 = vld [vmem:[#allocation110_spill] sm:$0xff] }
 0x356   :  { %v3146_v58 = vsel %vm3140_vm7, %v3129_v28, %v5562_v45  ;;  %v5576_v22 = vunpack.i.l.bf16 %v9823_v24  ;;  %v3917_v32 = vsel %vm3140_vm7, %v3901_v19, %v9824_v56  ;;  %v3246_v18 = vsel %vm3242_vm14, %v3229_v55, %v5547_v52 }
 0x357   :  { %v3447_v1 = vpop.permute.xlu0 %3446  ;;  %v3262_v30 = vsel %vm3259_vm15, %v3245_v27, %v5556_v33  ;;  %v3933_v14 = vsel %vm3157_vm9, %v3917_v32, %v9825_v43  ;;  %v3263_v45 = vsel %vm3259_vm15, %v3246_v18, %v5557_v20  ;;  %v3902_v6 = vsel %vm3123_vm6, %v3886_v48, %v9826_v50  ;;  %v6012_v43 = vld [vmem:[#allocation2 + $0xe0] sm:$0xff]  ;;  %v6013_v50 = vld [vmem:[#allocation2 + $0xf0] sm:$0xff] }
 0x358   :  { %v3765_v16 = vpop.permute.xlu1 %3764  ;;  %v3279_v28 = vsel %vm3276_vm0, %v3262_v30, %v5566_v4  ;;  %v8686_v55 = vsel %vm9553_vm3, %v3312_v13, %v5522_v59  ;;  %v8689_v52 = vsel %vm3276_vm0, %v3263_v45, %v5567_v2  ;;  %v5577_v27 = vunpack.i.h.bf16 %v9823_v24  ;;  %v6011_v4 = vld [vmem:[#allocation2 + $0x161] sm:$0xff]  ;;  %v9832_v30 = vld [vmem:[#allocation124_spill] sm:$0xff] }
 0x359   :  { %v3962_v57 = vsel %vm9554_vm11, %v3946_v21, %v3765_v16  ;;  %v8693_v33 = vsel %vm3157_vm9, %v3145_v34, %v5571_v60  ;;  %v8696_v20 = vsel %vm3157_vm9, %v3146_v58, %v5572_v10  ;;  %v8699_v16 = vsel %vm9555_vm1, %v3279_v28, %v5576_v22  ;;  %v9828_v59 = vld [vmem:[#allocation106_spill] sm:$0xff]  ;;  %v9830_v58 = vld [vmem:[#allocation116_spill] sm:$0xff] }
 0x35a   :  { %v8703_v35 = vsel %vm1668_vm4, %v6011_v4, %v9827_v36  ;;  %v3949_v13 = vsel %vm3174_vm10, %v3933_v14, %v9828_v59  ;;  %v5756_v2 = vunpack.i.l.bf16 %v8228_v25  ;;  %v9829_v60 = vld [vmem:[#allocation102_spill] sm:$0xff]  ;;  %v5757_v10 = vunpack.i.h.bf16 %v8228_v25  ;;  %v9835_v4 = vld [vmem:[#allocation128_spill] sm:$0xff] }
 0x35b   :  { %v3511_v49 = vpop.permute.xlu0 %3510  ;;  %v3918_v34 = vsel %vm3140_vm7, %v3902_v6, %v9829_v60  ;;  %v5766_v48 = vunpack.i.l.bf16 %v8261_v9  ;;  %v3867_v21 = vsel %vm1668_vm4, %v8016_v37, %v8630_v5  ;;  %v3965_v22 = vsel %vm9554_vm11, %v3949_v13, %v9830_v58  ;;  %v9831_v25 = vld [vmem:[#allocation122_spill] sm:$0xff] }
 0x35c   :  { %v3829_v12 = vpop.permute.xlu1 %3828  ;;  %v5767_v56 = vunpack.i.h.bf16 %v8261_v9  ;;  %v5776_v32 = vunpack.i.l.bf16 %v8285_v26  ;;  %v5777_v18 = vunpack.i.h.bf16 %v8285_v26  ;;  %v5786_v37 = vunpack.i.l.bf16 %v8313_v44  ;;  %v9834_v26 = vld [vmem:[#allocation126_spill] sm:$0xff] }
 0x35d   :  { %v3978_v8 = vsel %vm3208_vm12, %v3962_v57, %v3829_v12  ;;  %v3883_v57 = vsel %vm3106_vm5, %v3867_v21, %v3447_v1  ;;  %v3934_v12 = vsel %vm3157_vm9, %v3918_v34, %v9831_v25  ;;  %v3100_v1 = vsel %vm1668_vm4, %v6012_v43, %v5756_v2  ;;  %v9837_v43 = vld [vmem:[#allocation103_spill] sm:$0xff] }
 0x35e   :  { %4020 = vrot.lane.b32.xlu0 %v3978_v8, %s6056_s3  ;;  %v3899_v5 = vsel %vm3123_vm6, %v3883_v57, %v3511_v49  ;;  %v3950_v9 = vsel %vm3174_vm10, %v3934_v12, %v9832_v30  ;;  %v5787_v14 = vunpack.i.h.bf16 %v8313_v44  ;;  %v9833_v8 = vld [vmem:[#allocation118_spill] sm:$0xff]  ;;  %v3101_v49 = vsel %vm1668_vm4, %v6013_v50, %v5757_v10  ;;  %v9836_v30 = vld [vmem:[#allocation101_spill] sm:$0xff] }
 0x35f   :  { %v3575_v29 = vpop.permute.xlu0 %3574  ;;  %v3981_v45 = vsel %vm3208_vm12, %v3965_v22, %v9833_v8  ;;  %v3966_v28 = vsel %vm9554_vm11, %v3950_v9, %v9834_v26  ;;  %v3117_v6 = vsel %vm3106_vm5, %v3100_v1, %v5766_v48  ;;  %v3118_v44 = vsel %vm3106_vm5, %v3101_v49, %v5767_v56 }
 0x360   :  { %v3639_v19 = vpop.permute.xlu1 %3638  ;;  %v3915_v51 = vsel %vm3140_vm7, %v3899_v5, %v3575_v29  ;;  %v3982_v36 = vsel %vm3208_vm12, %v3966_v28, %v9835_v4  ;;  %v3134_v59 = vsel %vm3123_vm6, %v3117_v6, %v5776_v32  ;;  %v5807_v13 = vunpack.i.h.bf16 %v8343_v61 }
 0x361   :  { %v3135_v2 = vsel %vm3123_vm6, %v3118_v44, %v5777_v18  ;;  %v3151_v29 = vsel %vm3140_vm7, %v3134_v59, %v5786_v37  ;;  %v5806_v60 = vunpack.i.l.bf16 %v8343_v61  ;;  %v3931_v34 = vsel %vm3157_vm9, %v3915_v51, %v3639_v19 }
 0x362   :  { %5989 = vrot.lane.b32.xlu0 %v5988_v3, %s6050_s24  ;;  %v3152_v10 = vsel %vm3140_vm7, %v3135_v2, %v5787_v14  ;;  %v5811_v48 = vunpack.i.l.bf16 %v8372_v0  ;;  %v5812_v32 = vunpack.i.h.bf16 %v8372_v0  ;;  %v5832_v57 = vunpack.i.h.bf16 %v8562_v53 }
 0x363   :  { %v3385_v3 = vpop.permute.xlu0 %3384  ;;  %v3169_v19 = vsel %vm3157_vm9, %v3152_v10, %v5807_v13  ;;  %v5831_v12 = vunpack.i.l.bf16 %v8562_v53  ;;  %v3168_v0 = vsel %vm3157_vm9, %v3151_v29, %v5806_v60  ;;  %v5817_v37 = vunpack.i.h.bf16 %v8399_v7  ;;  %v9839_v13 = vld [vmem:[#allocation112_spill] sm:$0xff] }
 0x364   :  { %v3703_v62 = vpop.permute.xlu1 %3702  ;;  %v3868_v58 = vsel %vm1668_vm4, %v8068_v47, %v3385_v3  ;;  %v5816_v5 = vunpack.i.l.bf16 %v8399_v7  ;;  %v3185_v53 = vsel %vm3174_vm10, %v3168_v0, %v5811_v48  ;;  %v3186_v51 = vsel %vm3174_vm10, %v3169_v19, %v5812_v32 }
 0x365   :  { %v3947_v21 = vsel %vm3174_vm10, %v3931_v34, %v3703_v62  ;;  %v6014_v62 = vld [vmem:[#allocation2 + $0x110] sm:$0xff]  ;;  %v3203_v4 = vsel %vm9554_vm11, %v3186_v51, %v5817_v37  ;;  %v3887_v2 = vsel %vm3106_vm5, %v8703_v35, %v9839_v13 }
 0x366   :  { %4026 = vrot.lane.b32.xlu0 %v3981_v45, %s6056_s3  ;;  %v3103_v7 = vsel %vm1668_vm4, %v6014_v62, %v5832_v57  ;;  %v6015_v45 = vld [vmem:[#allocation2 + $0x100] sm:$0xff]  ;;  %v3202_v6 = vsel %vm9554_vm11, %v3185_v53, %v5816_v5  ;;  %v9840_v34 = vld [vmem:[#allocation107_spill] sm:$0xff] }
 0x367   :  { %v3449_v56 = vpop.permute.xlu0 %3448  ;;  %v3102_v26 = vsel %vm1668_vm4, %v6015_v45, %v5831_v12  ;;  %v1985_v57 = vld [vmem:[#allocation2 + $0x160] sm:$0xff] }
 0x368   :  { %v3767_v22 = vpop.permute.xlu1 %3766  ;;  %v3884_v61 = vsel %vm3106_vm5, %v3868_v58, %v3449_v56 }
 0x369   :  { %v3963_v25 = vsel %vm9554_vm11, %v3947_v21, %v3767_v22  ;;  %v3900_v18 = vsel %vm3123_vm6, %v3884_v61, %v8582_v54  ;;  %v5827_v54 = vunpack.i.h.bf16 %v8418_v23  ;;  %v9841_v22 = vld [vmem:[#allocation100_spill] sm:$0xff] }
 0x36a   :  { %3006 = vrot.lane.b32.xlu0 %v8501_v31, %s6053_s27  ;;  %v3979_v47 = vsel %vm3208_vm12, %v3963_v25, %v8607_v17  ;;  %v3916_v9 = vsel %vm3140_vm7, %v3900_v18, %v9836_v30  ;;  %v5826_v31 = vunpack.i.l.bf16 %v8418_v23  ;;  %v9838_v23 = vld [vmem:[#allocation96_spill] sm:$0xff]  ;;  %v9842_v25 = vld [vmem:[#allocation115_spill] sm:$0xff]  ;;  %v9843_v18 = vld [vmem:[#allocation117_spill] sm:$0xff] }
 0x36b   :  { %4022 = vrot.lane.b32.xlu1 %v3979_v47, %s6056_s3  ;;  %v3932_v17 = vsel %vm3157_vm9, %v3916_v9, %v9837_v43  ;;  %v5840_v14 = vpop.permute.xlu0 %5839  ;;  %v3220_v60 = vsel %vm3208_vm12, %v3203_v4, %v5827_v54  ;;  %v3903_v61 = vsel %vm3123_vm6, %v3887_v2, %v9842_v25  ;;  %v9844_v30 = vld [vmem:[#allocation41_spill] sm:$0xff]  ;;  %v9845_v54 = vld [vmem:[#allocation119_spill] sm:$0xff]  ;;  %v9848_v4 = vld [vmem:[#allocation42_spill] sm:$0xff] }
 0x36c   :  { %v5835_v1 = vpop.permute.xlu1 %5834  ;;  %v5842_v3 = vunpack.i.h.bf16 %v5840_v14  ;;  %v5841_v8 = vunpack.i.l.bf16 %v5840_v14  ;;  %v3948_v49 = vsel %vm3174_vm10, %v3932_v17, %v9838_v23  ;;  %v3219_v29 = vsel %vm3208_vm12, %v3202_v6, %v5826_v31 }
 0x36d   :  { %v5837_v28 = vunpack.i.h.bf16 %v5835_v1  ;;  %v5836_v50 = vunpack.i.l.bf16 %v5835_v1  ;;  %v3964_v10 = vsel %vm9554_vm11, %v3948_v49, %v9840_v34  ;;  %v3919_v47 = vsel %vm3140_vm7, %v3903_v61, %v9843_v18 }
 0x36e   :  { %4028 = vrot.lane.b32.xlu0 %v3982_v36, %s6056_s3  ;;  %v3119_v44 = vsel %vm3106_vm5, %v3102_v26, %v5841_v8  ;;  %v3120_v59 = vsel %vm3106_vm5, %v3103_v7, %v5842_v3  ;;  %v3980_v56 = vsel %vm3208_vm12, %v3964_v10, %v9841_v22  ;;  %v5582_v9 = vunpack.i.h.bf16 %v9844_v30  ;;  %v9846_v8 = vld [vmem:[#allocation45_spill] sm:$0xff]  ;;  %v9850_v22 = vld [vmem:[#allocation47_spill] sm:$0xff] }
 0x36f   :  { %v5850_v48 = vpop.permute.xlu0 %5849  ;;  %v3236_v35 = vsel %vm3225_vm13, %v3219_v29, %v5836_v50  ;;  %v3237_v19 = vsel %vm3225_vm13, %v3220_v60, %v5837_v28  ;;  %4024 = vrot.lane.b32.xlu1 %v3980_v56, %s6056_s3  ;;  %v5581_v53 = vunpack.i.l.bf16 %v9844_v30  ;;  %v3935_v31 = vsel %vm3157_vm9, %v3919_v47, %v9845_v54  ;;  %v9847_v28 = vld [vmem:[#allocation130_spill] sm:$0xff]  ;;  %v1969_v60 = vld [vmem:[#allocation2 + $0x154] sm:$0xff] }
 0x370   :  { %v5845_v36 = vpop.permute.xlu1 %5844  ;;  %v5852_v32 = vunpack.i.h.bf16 %v5850_v48  ;;  %v5851_v12 = vunpack.i.l.bf16 %v5850_v48  ;;  %v3297_v3 = vsel %vm9555_vm1, %v8689_v52, %v5577_v27  ;;  %v5592_v45 = vunpack.i.h.bf16 %v9846_v8 }
 0x371   :  { %v5847_v21 = vunpack.i.h.bf16 %v5845_v36  ;;  %v5846_v58 = vunpack.i.l.bf16 %v5845_v36  ;;  %v5591_v26 = vunpack.i.l.bf16 %v9846_v8  ;;  %v3951_v50 = vsel %vm3174_vm10, %v3935_v31, %v9847_v28 }
 0x372   :  { %3072 = vrot.lane.b32.xlu0 %v1985_v57, %s6054_s2  ;;  %v3137_v5 = vsel %vm3123_vm6, %v3120_v59, %v5852_v32  ;;  %v3136_v43 = vsel %vm3123_vm6, %v3119_v44, %v5851_v12  ;;  %v5587_v52 = vunpack.i.h.bf16 %v9848_v4  ;;  %v3967_v27 = vsel %vm9554_vm11, %v3951_v50, %v8140_v40 }
 0x373   :  { %v3253_v0 = vsel %vm3242_vm14, %v3236_v35, %v5846_v58  ;;  %v3254_v37 = vsel %vm3242_vm14, %v3237_v19, %v5847_v21  ;;  %v5860_v1 = vpop.permute.xlu0 %5859  ;;  %3070 = vrot.lane.b32.xlu1 %v8471_v42, %s6054_s2  ;;  %v3313_v13 = vsel %vm3310_vm2, %v8699_v16, %v5581_v53  ;;  %v3314_v42 = vsel %vm3310_vm2, %v3297_v3, %v5582_v9  ;;  %v9849_v21 = vld [vmem:[#allocation46_spill] sm:$0xff]  ;;  %v9851_v19 = vld [vmem:[#allocation120_spill] sm:$0xff] }
 0x374   :  { %v5855_v17 = vpop.permute.xlu1 %5854  ;;  %v5862_v62 = vunpack.i.h.bf16 %v5860_v1  ;;  %v5861_v7 = vunpack.i.l.bf16 %v5860_v1  ;;  %v5586_v10 = vunpack.i.l.bf16 %v9848_v4  ;;  %v3179_v48 = vsel %vm3174_vm10, %v8693_v33, %v5591_v26  ;;  %v9852_v9 = vld [vmem:[#allocation48_spill] sm:$0xff] }
 0x375   :  { %v5857_v14 = vunpack.i.h.bf16 %v5855_v17  ;;  %v5856_v51 = vunpack.i.l.bf16 %v5855_v17  ;;  %v5597_v58 = vunpack.i.h.bf16 %v9849_v21  ;;  %v5596_v40 = vunpack.i.l.bf16 %v9849_v21  ;;  %v9856_v21 = vld [vmem:[#allocation52_spill] sm:$0xff] }
 0x376   :  { %v3153_v6 = vsel %vm3140_vm7, %v3136_v43, %v5861_v7  ;;  %v3154_v24 = vsel %vm3140_vm7, %v3137_v5, %v5862_v62  ;;  %v3180_v16 = vsel %vm3174_vm10, %v8696_v20, %v5592_v45  ;;  %v5602_v56 = vunpack.i.h.bf16 %v9850_v22  ;;  %v9853_v62 = vld [vmem:[#allocation49_spill] sm:$0xff] }
 0x377   :  { %v3270_v23 = vsel %vm3259_vm15, %v3253_v0, %v5856_v51  ;;  %v3271_v49 = vsel %vm3259_vm15, %v3254_v37, %v5857_v14  ;;  %v5875_v59 = vpop.permute.xlu0 %5874  ;;  %3008 = vrot.lane.b32.xlu1 %v1969_v60, %s6053_s27  ;;  %v5601_v25 = vunpack.i.l.bf16 %v9850_v22  ;;  %v3983_v12 = vsel %vm3208_vm12, %v3967_v27, %v9851_v19  ;;  %v9855_v27 = vld [vmem:[#allocation51_spill] sm:$0xff] }
 0x378   :  { %v5865_v44 = vpop.permute.xlu1 %5864  ;;  %v5877_v36 = vunpack.i.h.bf16 %v5875_v59  ;;  %v5876_v34 = vunpack.i.l.bf16 %v5875_v59  ;;  %v3196_v5 = vsel %vm9554_vm11, %v3179_v48, %v5596_v40  ;;  %v3197_v30 = vsel %vm9554_vm11, %v3180_v16, %v5597_v58  ;;  %v1737_v48 = vld [vmem:[#allocation2 + $0x70] sm:$0xff] }
 0x379   :  { %v5867_v2 = vunpack.i.h.bf16 %v5865_v44  ;;  %v5866_v29 = vunpack.i.l.bf16 %v5865_v44  ;;  %v5612_v53 = vunpack.i.h.bf16 %v9852_v9  ;;  %v5611_v54 = vunpack.i.l.bf16 %v9852_v9 }
 0x37a   :  { %v3213_v14 = vsel %vm3208_vm12, %v3196_v5, %v5601_v25  ;;  %v3214_v51 = vsel %vm3208_vm12, %v3197_v30, %v5602_v56  ;;  %v5607_v7 = vunpack.i.h.bf16 %v9853_v62  ;;  %v5606_v3 = vunpack.i.l.bf16 %v9853_v62 }
 0x37b   :  { %v3287_v32 = vsel %vm3276_vm0, %v3270_v23, %v5866_v29  ;;  %v3288_v57 = vsel %vm3276_vm0, %v3271_v49, %v5867_v2  ;;  %v5885_v18 = vpop.permute.xlu0 %5884  ;;  %4030 = vrot.lane.b32.xlu1 %v3983_v12, %s6056_s3  ;;  %v9854_v49 = vld [vmem:[#allocation50_spill] sm:$0xff]  ;;  %v5617_v44 = vunpack.i.h.bf16 %v9855_v27  ;;  %v5616_v59 = vunpack.i.l.bf16 %v9855_v27 }
 0x37c   :  { %v3304_v61 = vsel %vm9555_vm1, %v3287_v32, %v5876_v34  ;;  %v3305_v33 = vsel %vm9555_vm1, %v3288_v57, %v5877_v36  ;;  %v5870_v35 = vpop.permute.xlu1 %5869  ;;  %v5887_v20 = vunpack.i.h.bf16 %v5885_v18  ;;  %v5886_v37 = vunpack.i.l.bf16 %v5885_v18  ;;  %v1736_v57 = vld [vmem:[#allocation2 + $0x60] sm:$0xff] }
 0x37d   :  { %v5872_v47 = vunpack.i.h.bf16 %v5870_v35  ;;  %v5871_v0 = vunpack.i.l.bf16 %v5870_v35  ;;  %v3230_v34 = vsel %vm3225_vm13, %v3213_v14, %v5611_v54  ;;  %v5631_v58 = vunpack.i.l.bf16 %v9856_v21 }
 0x37e   :  { %v3321_v17 = vsel %vm3310_vm2, %v3304_v61, %v5886_v37  ;;  %v3322_v1 = vsel %vm3310_vm2, %v3305_v33, %v5887_v20  ;;  %v8877_v22 = vsel %vm9553_vm3, %v3313_v13, %v5586_v10  ;;  %v8882_v56 = vsel %vm9553_vm3, %v3314_v42, %v5587_v52  ;;  %v9858_v37 = vld [vmem:[#allocation54_spill] sm:$0xff] }
 0x37f   :  { %v3170_v31 = vsel %vm3157_vm9, %v3153_v6, %v5871_v0  ;;  %v3171_v43 = vsel %vm3157_vm9, %v3154_v24, %v5872_v47  ;;  %v5895_v45 = vpop.permute.xlu0 %5894  ;;  %v5622_v6 = vunpack.i.h.bf16 %v9854_v49  ;;  %v5621_v24 = vunpack.i.l.bf16 %v9854_v49  ;;  %v9857_v47 = vld [vmem:[#allocation53_spill] sm:$0xff] }
 0x380   :  { %v5880_v8 = vpop.permute.xlu1 %5879  ;;  %v5897_v50 = vunpack.i.h.bf16 %v5895_v45  ;;  %v5896_v23 = vunpack.i.l.bf16 %v5895_v45  ;;  %v3231_v32 = vsel %vm3225_vm13, %v3214_v51, %v5612_v53  ;;  %v3097_v25 = vsel %vm1668_vm4, %v1737_v48, %v5607_v7  ;;  %v9859_v53 = vld [vmem:[#allocation55_spill] sm:$0xff] }
 0x381   :  { %v5882_v26 = vunpack.i.h.bf16 %v5880_v8  ;;  %v5881_v28 = vunpack.i.l.bf16 %v5880_v8  ;;  %v3096_v35 = vsel %vm1668_vm4, %v1736_v57, %v5606_v3  ;;  %v3247_v19 = vsel %vm3242_vm14, %v3230_v34, %v5621_v24  ;;  %v9862_v57 = vld [vmem:[#allocation58_spill] sm:$0xff] }
 0x382   :  { %v8869_v60 = vsel %vm9553_vm3, %v3321_v17, %v5896_v23  ;;  %v8872_v36 = vsel %vm9553_vm3, %v3322_v1, %v5897_v50  ;;  %v3248_v12 = vsel %vm3242_vm14, %v3231_v32, %v5622_v6  ;;  %v5632_v13 = vunpack.i.h.bf16 %v9856_v21  ;;  %v9860_v6 = vld [vmem:[#allocation57_spill] sm:$0xff] }
 0x383   :  { %v3187_v2 = vsel %vm3174_vm10, %v3170_v31, %v5881_v28  ;;  %v3188_v29 = vsel %vm3174_vm10, %v3171_v43, %v5882_v26  ;;  %v5910_v16 = vpop.permute.xlu0 %5909  ;;  %v3113_v4 = vsel %vm3106_vm5, %v3096_v35, %v5616_v59  ;;  %v3114_v52 = vsel %vm3106_vm5, %v3097_v25, %v5617_v44 }
 0x384   :  { %v5890_v40 = vpop.permute.xlu1 %5889  ;;  %v3264_v18 = vsel %vm3259_vm15, %v3247_v19, %v5631_v58  ;;  %v5627_v0 = vunpack.i.h.bf16 %v9857_v47  ;;  %v5626_v20 = vunpack.i.l.bf16 %v9857_v47  ;;  %v5641_v5 = vunpack.i.l.bf16 %v9858_v37 }
 0x385   :  { %v5892_v61 = vunpack.i.h.bf16 %v5890_v40  ;;  %v5891_v33 = vunpack.i.l.bf16 %v5890_v40  ;;  %v5637_v54 = vunpack.i.h.bf16 %v9859_v53  ;;  %v5636_v31 = vunpack.i.l.bf16 %v9859_v53  ;;  %v9861_v40 = vld [vmem:[#allocation61_spill] sm:$0xff] }
 0x386   :  { %v5912_v1 = vunpack.i.h.bf16 %v5910_v16  ;;  %v5911_v14 = vunpack.i.l.bf16 %v5910_v16  ;;  %vm4091_vm3 = vcmask 179200   ;;  %v8903_v8 = vsel %vm3259_vm15, %v3248_v12, %v5632_v13  ;;  %v1744_v13 = vld [vmem:[#allocation2 + $0x120] sm:$0xff] }
 0x387   :  { %v3204_v42 = vsel %vm9554_vm11, %v3187_v2, %v5891_v33  ;;  %v3205_v10 = vsel %vm9554_vm11, %v3188_v29, %v5892_v61  ;;  %v5920_v9 = vpop.permute.xlu0 %5919  ;;  %v5642_v45 = vunpack.i.h.bf16 %v9858_v37  ;;  %v3130_v49 = vsel %vm3123_vm6, %v3113_v4, %v5626_v20  ;;  %v9863_v33 = vld [vmem:[#allocation63_spill] sm:$0xff] }
 0x388   :  { %v5900_v30 = vpop.permute.xlu1 %5899  ;;  %v5922_v7 = vunpack.i.h.bf16 %v5920_v9  ;;  %v5921_v3 = vunpack.i.l.bf16 %v5920_v9  ;;  %v5646_v24 = vunpack.i.l.bf16 %v9860_v6  ;;  %v3131_v59 = vsel %vm3123_vm6, %v3114_v52, %v5627_v0  ;;  %v6016_v0 = vld [vmem:[#allocation2 + $0x130] sm:$0xff] }
 0x389   :  { %v5902_v43 = vunpack.i.h.bf16 %v5900_v30  ;;  %v5901_v17 = vunpack.i.l.bf16 %v5900_v30  ;;  %v3281_v48 = vsel %vm3276_vm0, %v3264_v18, %v5641_v5  ;;  %v3147_v21 = vsel %vm3140_vm7, %v3130_v49, %v5636_v31  ;;  %v9864_v18 = vld [vmem:[#allocation65_spill] sm:$0xff] }
 0x38a   :  { %v3148_v58 = vsel %vm3140_vm7, %v3131_v59, %v5637_v54  ;;  %v5656_v16 = vunpack.i.l.bf16 %v9861_v40  ;;  %v5647_v32 = vunpack.i.h.bf16 %v9860_v6  ;;  %v5651_v25 = vunpack.i.l.bf16 %v9862_v57 }
 0x38b   :  { %v3221_v51 = vsel %vm3208_vm12, %v3204_v42, %v5901_v17  ;;  %v3222_v62 = vsel %vm3208_vm12, %v3205_v10, %v5902_v43  ;;  %v4001_v23 = vpop.permute.xlu0 %4000  ;;  %v5657_v61 = vunpack.i.h.bf16 %v9861_v40  ;;  %v5661_v35 = vunpack.i.l.bf16 %v9863_v33  ;;  %v9865_v43 = vld [vmem:[#allocation67_spill] sm:$0xff] }
 0x38c   :  { %v3238_v26 = vsel %vm3225_vm13, %v3221_v51, %v5911_v14  ;;  %v3239_v28 = vsel %vm3225_vm13, %v3222_v62, %v5912_v1  ;;  %v5905_v50 = vpop.permute.xlu1 %5904  ;;  %4907 = vmatprep.mubr.msk.f32.mxu1 %vm4091_vm3, %v4001_v23  ;;  %v4049_v34 = vsel %vm4048_vm8, %v8622_v38, %v4001_v23  ;;  %v3298_v38 = vsel %vm9555_vm1, %v3281_v48, %v5646_v24  ;;  %v9866_v62 = vld [vmem:[#allocation68_spill] sm:$0xff]  ;;  %v9867_v24 = vld [vmem:[#allocation78_spill] sm:$0xff] }
 0x38d   :  { %v8911_v27 = vsel %vm3242_vm14, %v3238_v26, %v5921_v3  ;;  %v8914_v44 = vsel %vm3242_vm14, %v3239_v28, %v5922_v7  ;;  %v5907_v2 = vunpack.i.h.bf16 %v5905_v50  ;;  %v5906_v29 = vunpack.i.l.bf16 %v5905_v50  ;;  %4193 = vmatmul.mubr.f32.vlgmr.msra.gmra.mxu1 %v4049_v34  ;;  %v9869_v34 = vld [vmem:[#allocation80_spill] sm:$0xff] }
 0x38e   :  { %v5662_v10 = vunpack.i.h.bf16 %v9863_v33  ;;  %v5666_v47 = vunpack.i.l.bf16 %v9864_v18  ;;  %v5652_v30 = vunpack.i.h.bf16 %v9862_v57  ;;  %v3164_v9 = vsel %vm3157_vm9, %v3147_v21, %v5656_v16  ;;  %v9877_v57 = vld [vmem:[#allocation83_spill] sm:$0xff] }
 0x38f   :  { %v4003_v12 = vpop.permute.xlu0 %4002  ;;  %v3105_v20 = vsel %vm1668_vm4, %v6016_v0, %v5907_v2  ;;  %v3104_v5 = vsel %vm1668_vm4, %v1744_v13, %v5906_v29  ;;  %v3181_v31 = vsel %vm3174_vm10, %v3164_v9, %v5661_v35  ;;  %v5676_v17 = vunpack.i.l.bf16 %v9865_v43  ;;  %v9868_v2 = vld [vmem:[#allocation66_spill] sm:$0xff] }
 0x390   :  { %v5915_v19 = vpop.permute.xlu1 %5914  ;;  %4908 = vmatprep.mubr.msk.f32.mxu1 %vm4091_vm3, %v4003_v12  ;;  %v4050_v42 = vsel %vm4048_vm8, %v8686_v55, %v4003_v12  ;;  %v3165_v55 = vsel %vm3157_vm9, %v3148_v58, %v5657_v61  ;;  %v3315_v51 = vsel %vm3310_vm2, %v3298_v38, %v5651_v25  ;;  %v5681_v7 = vunpack.i.l.bf16 %v9866_v62  ;;  %v9870_v25 = vld [vmem:[#allocation82_spill] sm:$0xff] }
 0x391   :  { %v5917_v4 = vunpack.i.h.bf16 %v5915_v19  ;;  %v5916_v52 = vunpack.i.l.bf16 %v5915_v19  ;;  %4198 = vmatmul.mubr.f32.gmra.mxu1 %v4050_v42  ;;  %v3182_v50 = vsel %vm3174_vm10, %v3165_v55, %v5662_v10  ;;  %v5667_v23 = vunpack.i.h.bf16 %v9864_v18 }
 0x392   :  { %v3198_v49 = vsel %vm9554_vm11, %v3181_v31, %v5666_v47  ;;  %v5686_v59 = vunpack.i.l.bf16 %v9867_v24  ;;  %v5671_v29 = vunpack.i.l.bf16 %v9868_v2  ;;  %v5691_v48 = vunpack.i.l.bf16 %v9869_v34 }
 0x393   :  { %v3121_v53 = vsel %vm3106_vm5, %v3104_v5, %v5916_v52  ;;  %v3122_v54 = vsel %vm3106_vm5, %v3105_v20, %v5917_v4  ;;  %v4005_v14 = vpop.permute.xlu0 %4004  ;;  %v3215_v40 = vsel %vm3208_vm12, %v3198_v49, %v5676_v17  ;;  %v5682_v16 = vunpack.i.h.bf16 %v9866_v62 }
 0x394   :  { %v5925_v1 = vpop.permute.xlu1 %5924  ;;  %4909 = vmatprep.mubr.msk.f32.mxu1 %vm4091_vm3, %v4005_v14  ;;  %v4051_v28 = vsel %vm4048_vm8, %v8877_v22, %v4005_v14  ;;  %v5677_v22 = vunpack.i.h.bf16 %v9865_v43  ;;  %v5696_v61 = vunpack.i.l.bf16 %v9870_v25  ;;  %v3232_v19 = vsel %vm3225_vm13, %v3215_v40, %v5681_v7  ;;  %v9874_v7 = vld [vmem:[#allocation123_spill] sm:$0xff] }
 0x395   :  { %v5927_v3 = vunpack.i.h.bf16 %v5925_v1  ;;  %v5926_v26 = vunpack.i.l.bf16 %v5925_v1  ;;  %4203 = vmatmul.mubr.f32.gmra.mxu1 %v4051_v28  ;;  %v3199_v4 = vsel %vm9554_vm11, %v3182_v50, %v5667_v23  ;;  %v5672_v52 = vunpack.i.h.bf16 %v9868_v2  ;;  %v9879_v40 = vld [vmem:[#allocation131_spill] sm:$0xff] }
 0x396   :  { %v5687_v42 = vunpack.i.h.bf16 %v9867_v24  ;;  %v3249_v10 = vsel %vm3242_vm14, %v3232_v19, %v5686_v59  ;;  %v5692_v18 = vunpack.i.h.bf16 %v9869_v34  ;;  %v5697_v5 = vunpack.i.h.bf16 %v9870_v25 }
 0x397   :  { %v8955_v21 = vsel %vm3123_vm6, %v3121_v53, %v5926_v26  ;;  %v3139_v58 = vsel %vm3123_vm6, %v3122_v54, %v5927_v3  ;;  %v5930_v35 = vpop.permute.xlu0 %5929  ;;  %v3266_v47 = vsel %vm3259_vm15, %v3249_v10, %v5691_v48  ;;  %vm9871_vm11 = vcmask 736256   ;;  %v9875_v26 = vld [vmem:[#allocation81_spill] sm:$0xff] }
 0x398   :  { %v4007_v33 = vpop.permute.xlu1 %4006  ;;  %v5932_v12 = vunpack.i.h.bf16 %v5930_v35  ;;  %v5931_v38 = vunpack.i.l.bf16 %v5930_v35  ;;  %v3283_v9 = vsel %vm3276_vm0, %v3266_v47, %v5696_v61  ;;  %v3332_v55 = vsel %vm9871_vm11, %v3315_v51, %v5671_v29  ;;  %v9873_v51 = vld [vmem:[#allocation121_spill] sm:$0xff]  ;;  %v9878_v29 = vld [vmem:[#allocation127_spill] sm:$0xff] }
 0x399   :  { %4910 = vmatprep.mubr.msk.f32.mxu1 %vm4091_vm3, %v4007_v33  ;;  %v4052_v13 = vsel %vm4048_vm8, %v8882_v56, %v4007_v33  ;;  %v3216_v56 = vsel %vm3208_vm12, %v3199_v4, %v5677_v22  ;;  %v5716_v62 = vunpack.i.l.bf16 %v9873_v51  ;;  %v5706_v28 = vunpack.i.l.bf16 %v9875_v26  ;;  %v9880_v35 = vld [vmem:[#allocation133_spill] sm:$0xff] }
 0x39a   :  { %v8974_v0 = vsel %vm3259_vm15, %v8911_v27, %v5931_v38  ;;  %v8978_v20 = vsel %vm3259_vm15, %v8914_v44, %v5932_v12  ;;  %4208 = vmatmul.mubr.f32.gmra.mxu1 %v4052_v13  ;;  %v3282_v27 = vsel %vm3276_vm0, %v8903_v8, %v5642_v45  ;;  %v3233_v31 = vsel %vm3225_vm13, %v3216_v56, %v5682_v16  ;;  %v9872_v44 = vld [vmem:[#allocation79_spill] sm:$0xff] }
 0x39b   :  { %v4011_v54 = vpop.permute.xlu0 %4010  ;;  %v5701_v43 = vunpack.i.l.bf16 %v9872_v44  ;;  %v3299_v1 = vsel %vm9555_vm1, %v3282_v27, %v5647_v32  ;;  %v3250_v14 = vsel %vm3242_vm14, %v3233_v31, %v5687_v42  ;;  %v5721_v8 = vunpack.i.l.bf16 %v9874_v7  ;;  %v9876_v32 = vld [vmem:[#allocation125_spill] sm:$0xff] }
 0x39c   :  { %v4009_v53 = vpop.permute.xlu1 %4008  ;;  %v3267_v37 = vsel %vm3259_vm15, %v3250_v14, %v5692_v18  ;;  %v3316_v45 = vsel %vm3310_vm2, %v3299_v1, %v5652_v30  ;;  %v5726_v50 = vunpack.i.l.bf16 %v9876_v32  ;;  %v5702_v59 = vunpack.i.h.bf16 %v9872_v44  ;;  %v1738_v30 = vld [vmem:[#allocation2 + $0xc0] sm:$0xff] }
 0x39d   :  { %4911 = vmatprep.mubr.msk.f32.mxu1 %vm4091_vm3, %v4009_v53  ;;  %v4053_v17 = vsel %vm4048_vm8, %v3332_v55, %v4009_v53  ;;  %v3300_v3 = vsel %vm9555_vm1, %v3283_v9, %v5701_v43  ;;  %v3284_v6 = vsel %vm3276_vm0, %v3267_v37, %v5697_v5  ;;  %v3333_v24 = vsel %vm9871_vm11, %v3316_v45, %v5672_v52  ;;  %v9881_v52 = vld [vmem:[#allocation135_spill] sm:$0xff]  ;;  %v9883_v45 = vld [vmem:[#allocation132_spill] sm:$0xff] }
 0x39e   :  { %4213 = vmatmul.mubr.f32.gmra.mxu1 %v4053_v17  ;;  %v5711_v2 = vunpack.i.l.bf16 %v9877_v57  ;;  %v5731_v34 = vunpack.i.l.bf16 %v9878_v29  ;;  %v3098_v22 = vsel %vm1668_vm4, %v1738_v30, %v5716_v62  ;;  %v5736_v16 = vunpack.i.l.bf16 %v9879_v40  ;;  %v6017_v37 = vld [vmem:[#allocation2 + $0xd0] sm:$0xff] }
 0x39f   :  { %4912 = vmatprep.mubr.msk.f32.mxu1 %vm4091_vm3, %v4011_v54  ;;  %v4013_v49 = vpop.permute.xlu0 %4012  ;;  %v4054_v25 = vsel %vm4048_vm8, %v3333_v24, %v4011_v54  ;;  %v3317_v61 = vsel %vm3310_vm2, %v3300_v3, %v5706_v28  ;;  %v3115_v33 = vsel %vm3106_vm5, %v3098_v22, %v5721_v8  ;;  %v5741_v19 = vunpack.i.l.bf16 %v9880_v35 }
 0x3a0   :  { %v9007_v23 = vpop.permute.xlu1 %5934  ;;  %v3301_v38 = vsel %vm9555_vm1, %v3284_v6, %v5702_v59  ;;  %v5707_v13 = vunpack.i.h.bf16 %v9875_v26  ;;  %v3132_v4 = vsel %vm3123_vm6, %v3115_v33, %v5726_v50  ;;  %v5746_v42 = vunpack.i.l.bf16 %v9881_v52 }
 0x3a1   :  { %v5937_v48 = vunpack.i.h.bf16 %v9007_v23  ;;  %v3149_v47 = vsel %vm3140_vm7, %v3132_v4, %v5731_v34  ;;  %v5751_v56 = vunpack.i.l.bf16 %v8203_v39  ;;  %v5717_v5 = vunpack.i.h.bf16 %v9873_v51 }
 0x3a2   :  { %4218 = vmatmul.mubr.f32.gmra.mxu1 %v4054_v25  ;;  %v3166_v9 = vsel %vm3157_vm9, %v3149_v47, %v5736_v16  ;;  %v3318_v54 = vsel %vm3310_vm2, %v3301_v38, %v5707_v13  ;;  %v5712_v55 = vunpack.i.h.bf16 %v9877_v57  ;;  %v5722_v27 = vunpack.i.h.bf16 %v9874_v7  ;;  %v9886_v16 = vld [vmem:[#allocation136_spill] sm:$0xff] }
 0x3a3   :  { %v9021_v12 = vsel %vm3140_vm7, %v3139_v58, %v5937_v48  ;;  %4913 = vmatprep.mubr.msk.f32.mxu1 %vm4091_vm3, %v4013_v49  ;;  %v9028_v18 = vpop.permute.xlu0 %5939  ;;  %v3334_v58 = vsel %vm9871_vm11, %v3317_v61, %v5711_v2  ;;  %v3183_v31 = vsel %vm3174_vm10, %v3166_v9, %v5741_v19  ;;  %v5727_v44 = vunpack.i.h.bf16 %v9876_v32  ;;  %v9884_v2 = vld [vmem:[#allocation134_spill] sm:$0xff] }
 0x3a4   :  { %v4015_v10 = vpop.permute.xlu1 %4014  ;;  %v4055_v53 = vsel %vm4048_vm8, %v3334_v58, %v4013_v49  ;;  %vm9882_vm1 = vcmask 343040   ;;  %v5732_v14 = vunpack.i.h.bf16 %v9878_v29  ;;  %v3335_v62 = vsel %vm9871_vm11, %v3318_v54, %v5712_v55 }
 0x3a5   :  { %v3200_v43 = vsel %vm9882_vm1, %v3183_v31, %v5746_v42  ;;  %v3099_v7 = vsel %vm1668_vm4, %v6017_v37, %v5717_v5  ;;  %v5737_v8 = vunpack.i.h.bf16 %v9879_v40  ;;  %v5761_v3 = vunpack.i.l.bf16 %v9883_v45  ;;  %vm9885_vm4 = vmmov %vm9882_vm1 }
 0x3a6   :  { %4223 = vmatmul.mubr.f32.gmra.mxu1 %v4055_v53  ;;  %v3217_v51 = vsel %vm3208_vm12, %v3200_v43, %v5751_v56  ;;  %v4056_v26 = vsel %vm4048_vm8, %v3335_v62, %v4015_v10  ;;  %v3116_v28 = vsel %vm3106_vm5, %v3099_v7, %v5722_v27  ;;  %v5742_v6 = vunpack.i.h.bf16 %v9880_v35  ;;  %vm9888_vm1 = vmmov %vm9871_vm11 }
 0x3a7   :  { %4914 = vmatprep.mubr.msk.f32.mxu1 %vm4091_vm3, %v4015_v10  ;;  %v9045_v1 = vpop.permute.xlu0 %5944  ;;  %v3133_v32 = vsel %vm3123_vm6, %v3116_v28, %v5727_v44  ;;  %v5747_v50 = vunpack.i.h.bf16 %v9881_v52  ;;  %v3234_v49 = vsel %vm3225_vm13, %v3217_v51, %v5761_v3  ;;  %v5771_v30 = vunpack.i.l.bf16 %v9884_v2 }
 0x3a8   :  { %v9043_v17 = vpop.permute.xlu1 %5949  ;;  %v3150_v57 = vsel %vm3140_vm7, %v3133_v32, %v5732_v14  ;;  %v5752_v29 = vunpack.i.h.bf16 %v8203_v39  ;;  %v5781_v25 = vunpack.i.l.bf16 %v9886_v16  ;;  %v5762_v19 = vunpack.i.h.bf16 %v9883_v45 }
 0x3a9   :  { %v3167_v34 = vsel %vm3157_vm9, %v3150_v57, %v5737_v8  ;;  %v3251_v22 = vsel %vm3242_vm14, %v3234_v49, %v5771_v30  ;;  %v5796_v38 = vunpack.i.l.bf16 %v8341_v46  ;;  %v5791_v13 = vunpack.i.l.bf16 %v8205_v11 }
 0x3aa   :  { %4228 = vmatmul.mubr.f32.gmra.mxu1 %v4056_v26  ;;  %v3184_v48 = vsel %vm3174_vm10, %v3167_v34, %v5742_v6  ;;  %v3268_v39 = vsel %vm3259_vm15, %v3251_v22, %v5781_v25  ;;  %v5801_v4 = vunpack.i.l.bf16 %v8370_v63  ;;  %v5821_v42 = vunpack.i.l.bf16 %v8477_v15 }
 0x3ab   :  { %v9061_v59 = vpop.permute.xlu0 %5954  ;;  %v3201_v40 = vsel %vm9885_vm4, %v3184_v48, %v5747_v50  ;;  %v5772_v47 = vunpack.i.h.bf16 %v9884_v2  ;;  %v3285_v56 = vsel %vm3276_vm0, %v3268_v39, %v5791_v13  ;;  %vm9887_vm6 = vcmask 637952   ;;  %vm9890_vm4 = vmmov %vm9888_vm1 }
 0x3ac   :  { %v9059_v24 = vpop.permute.xlu1 %5959  ;;  %v3218_v35 = vsel %vm3208_vm12, %v3201_v40, %v5752_v29  ;;  %v3302_v58 = vsel %vm9887_vm6, %v3285_v56, %v5796_v38  ;;  %v5782_v54 = vunpack.i.h.bf16 %v9886_v16  ;;  %v5797_v43 = vunpack.i.h.bf16 %v8341_v46  ;;  %vm9889_vm11 = vmmov %vm9887_vm6 }
 0x3ad   :  { %v3235_v52 = vsel %vm3225_vm13, %v3218_v35, %v5762_v19  ;;  %v3319_v53 = vsel %vm3310_vm2, %v3302_v58, %v5801_v4  ;;  %v5792_v14 = vunpack.i.h.bf16 %v8205_v11  ;;  %v5802_v51 = vunpack.i.h.bf16 %v8370_v63 }
 0x3ae   :  { %v3252_v9 = vsel %vm3242_vm14, %v3235_v52, %v5772_v47  ;;  %v3336_v27 = vsel %vm9888_vm1, %v3319_v53, %v5821_v42  ;;  %v5822_v62 = vunpack.i.h.bf16 %v8477_v15  ;;  %v5936_v28 = vunpack.i.l.bf16 %v9007_v23  ;;  %vm9893_vm1 = vmmov %vm9889_vm11 }
 0x3af   :  { %v9073_v33 = vpop.permute.xlu0 %5964  ;;  %v3269_v44 = vsel %vm3259_vm15, %v3252_v9, %v5782_v54  ;;  %v5946_v6 = vunpack.i.l.bf16 %v9045_v1  ;;  %v5956_v32 = vunpack.i.l.bf16 %v9061_v59  ;;  %v5947_v2 = vunpack.i.h.bf16 %v9045_v1 }
 0x3b0   :  { %v9071_v61 = vpop.permute.xlu1 %5969  ;;  %v3286_v7 = vsel %vm3276_vm0, %v3269_v44, %v5792_v14  ;;  %v5966_v49 = vunpack.i.l.bf16 %v9073_v33  ;;  %v3155_v57 = vsel %vm3140_vm7, %v8955_v21, %v5936_v28  ;;  %v5957_v23 = vunpack.i.h.bf16 %v9061_v59 }
 0x3b1   :  { %v3303_v8 = vsel %vm9889_vm11, %v3286_v7, %v5797_v43  ;;  %v3172_v29 = vsel %vm3157_vm9, %v3155_v57, %v5946_v6  ;;  %v5941_v22 = vunpack.i.l.bf16 %v9028_v18  ;;  %v5967_v40 = vunpack.i.h.bf16 %v9073_v33  ;;  %vm9894_vm11 = vmmov %vm9890_vm4 }
 0x3b2   :  { %v3320_v45 = vsel %vm3310_vm2, %v3303_v8, %v5802_v51  ;;  %v3189_v48 = vsel %vm3174_vm10, %v3172_v29, %v5956_v32  ;;  %vm9891_vm6 = vcmask 343040   ;;  %v5951_v21 = vunpack.i.l.bf16 %v9043_v17 }
 0x3b3   :  { %v9088_v5 = vpop.permute.xlu0 %5974  ;;  %v3337_v26 = vsel %vm9890_vm4, %v3320_v45, %v5822_v62  ;;  %v3206_v16 = vsel %vm9891_vm6, %v3189_v48, %v5966_v49  ;;  %v3173_v1 = vsel %vm3157_vm9, %v9021_v12, %v5947_v2  ;;  %v5961_v4 = vunpack.i.l.bf16 %v9059_v24  ;;  %vm9892_vm9 = vmmov %vm9891_vm6  ;;  %v4464_v48 = vld [vmem:[%s9462_s5 + $0x70] sm:$0xff] }
 0x3b4   :  { %v9083_v10 = vpop.permute.xlu1 %5984  ;;  %v5976_v30 = vunpack.i.l.bf16 %v9088_v5  ;;  %v5977_v25 = vunpack.i.h.bf16 %v9088_v5  ;;  %v3190_v52 = vsel %vm3174_vm10, %v3173_v1, %v5957_v23  ;;  %v5942_v42 = vunpack.i.h.bf16 %v9028_v18  ;;  %vm9896_vm4 = vmmov %vm9893_vm1  ;;  %v4465_v23 = vld [vmem:[%s9462_s5 + $0x78] sm:$0xff] }
 0x3b5   :  { %v5986_v12 = vunpack.i.l.bf16 %v9083_v10  ;;  %v5971_v47 = vunpack.i.l.bf16 %v9071_v61  ;;  %v3207_v56 = vsel %vm9892_vm9, %v3190_v52, %v5967_v40  ;;  %v3289_v58 = vsel %vm3276_vm0, %v8974_v0, %v5941_v22  ;;  %vm9897_vm6 = vmmov %vm9894_vm11  ;;  %4486 = vmatpush1.msra.mxu1 %v4465_v23 }
 0x3b6   :  { %v3223_v35 = vsel %vm3208_vm12, %v3206_v16, %v5976_v30  ;;  %v5952_v5 = vunpack.i.h.bf16 %v9043_v17  ;;  %v3306_v53 = vsel %vm9893_vm1, %v3289_v58, %v5951_v21  ;;  %v5972_v43 = vunpack.i.h.bf16 %v9071_v61  ;;  %vm9899_vm9 = vmmov %vm9893_vm1  ;;  %4487 = vmatprep.subr.mxu1 %v9737_v41 }
 0x3b7   :  { %v5980_v37 = vpop.permute.xlu0 %5979  ;;  %v3323_v17 = vsel %vm3310_vm2, %v3306_v53, %v5961_v4  ;;  %v3290_v62 = vsel %vm3276_vm0, %v8978_v20, %v5942_v42  ;;  %4488 = vmatpush1.msra.mxu1 %v4464_v48 }
 0x3b8   :  { %v4017_v55 = vpop.permute.xlu1 %4016  ;;  %v5981_v34 = vunpack.i.l.bf16 %v5980_v37  ;;  %v5982_v59 = vunpack.i.h.bf16 %v5980_v37  ;;  %v3340_v51 = vsel %vm9894_vm11, %v3323_v17, %v5971_v47  ;;  %4489 = vmatprep.subr.mxu1 %v9737_v41  ;;  %vm4440_vm11 = vcmask 31744  }
 0x3b9   :  { %4915 = vmatprep.mubr.msk.f32.mxu1 %vm4091_vm3, %v4017_v55  ;;  %v4057_v31 = vsel %vm4048_vm8, %v3336_v27, %v4017_v55  ;;  %v5962_v27 = vunpack.i.h.bf16 %v9059_v24 }
 0x3ba   :  { %4233 = vmatmul.mubr.f32.gmra.mxu1 %v4057_v31  ;;  %v3240_v38 = vsel %vm3225_vm13, %v3223_v35, %v5981_v34  ;;  %v5987_v31 = vunpack.i.h.bf16 %v9083_v10 }
 0x3bb   :  { %v3257_v9 = vsel %vm3242_vm14, %v3240_v38, %v5986_v12 }
 0x3bc   :  { %v9110_v15 = vpop.permute.xlu1 %5994 }
 0x3bd   :  { %v5996_v44 = vunpack.i.l.bf16 %v9110_v15  ;;  %v5997_v45 = vunpack.i.h.bf16 %v9110_v15 }
 0x3c0   :  { %v4019_v3 = vpop.permute.xlu0 %4018 }
 0x3c1   :  { %4916 = vmatprep.mubr.msk.f32.mxu1 %vm4091_vm3, %v4019_v3  ;;  %v4058_v46 = vsel %vm4048_vm8, %v3337_v26, %v4019_v3 }
 0x3c2   :  { %4238 = vmatmul.mubr.f32.gmra.mxu1 %v4058_v46 }
 0x3d0   :  { %v4021_v11 = vpop.permute.xlu0 %4020 }
 0x3d1   :  { %4917 = vmatprep.mubr.msk.f32.mxu1 %vm4091_vm3, %v4021_v11  ;;  %v4059_v63 = vsel %vm4048_vm8, %v8869_v60, %v4021_v11  ;;  %v9120_v60 = vpop.permute.xlu1 %5999 }
 0x3d2   :  { %4243 = vmatmul.mubr.f32.gmra.mxu1 %v4059_v63  ;;  %v6001_v8 = vunpack.i.l.bf16 %v9120_v60  ;;  %v6002_v32 = vunpack.i.h.bf16 %v9120_v60 }
 0x3d4   :  { %v5990_v50 = vpop.permute.xlu0 %5989 }
 0x3d5   :  { %v5991_v13 = vunpack.i.l.bf16 %v5990_v50  ;;  %v5992_v55 = vunpack.i.h.bf16 %v5990_v50 }
 0x3d7   :  { %v3274_v18 = vsel %vm3259_vm15, %v3257_v9, %v5991_v13 }
 0x3d8   :  { %v4027_v19 = vpop.permute.xlu0 %4026  ;;  %v3291_v7 = vsel %vm3276_vm0, %v3274_v18, %v5996_v44 }
 0x3d9   :  { %v3308_v3 = vsel %vm9896_vm4, %v3291_v7, %v6001_v8  ;;  %vm4436_vm4 = vcmask 883712  }
 0x3dc   :  { %v3007_v0 = vpop.permute.xlu0 %3006 }
 0x3dd   :  { %v4023_v39 = vpop.permute.xlu1 %4022  ;;  %v3325_v11 = vsel %vm3310_vm2, %v3308_v3, %v3007_v0 }
 0x3de   :  { %4918 = vmatprep.mubr.msk.f32.mxu1 %vm4091_vm3, %v4023_v39  ;;  %v4060_v33 = vsel %vm4048_vm8, %v8872_v36, %v4023_v39  ;;  %v3224_v36 = vsel %vm3208_vm12, %v3207_v56, %v5977_v25  ;;  %v9194_v25 = vld [vmem:[%s9461_s4] ss:$0 sm:$0xff]  ;;  %s6057_s4 = smov 4  }
 0x3df   :  { %4248 = vmatmul.mubr.f32.gmra.mxu1 %v4060_v33  ;;  %v3241_v54 = vsel %vm3225_vm13, %v3224_v36, %v5982_v59  ;;  %vm9895_vm13 = vmmov %vm9893_vm1 }
 0x3e0   :  { %v3258_v37 = vsel %vm3242_vm14, %v3241_v54, %v5987_v31  ;;  %v3307_v10 = vsel %vm9895_vm13, %v3290_v62, %v5952_v5  ;;  %v4029_v63 = vpop.permute.xlu0 %4028  ;;  %vm9900_vm1 = vmmov %vm9897_vm6  ;;  %vm4442_vm13 = vcmask 130048  }
 0x3e1   :  { %v4025_v14 = vpop.permute.xlu1 %4024  ;;  %v3275_v61 = vsel %vm3259_vm15, %v3258_v37, %v5992_v55  ;;  %v3324_v20 = vsel %vm3310_vm2, %v3307_v10, %v5962_v27  ;;  %vm9898_vm15 = vmmov %vm9897_vm6 }
 0x3e2   :  { %4919 = vmatprep.mubr.msk.f32.mxu1 %vm4091_vm3, %v4025_v14  ;;  %v4061_v24 = vsel %vm4048_vm8, %v3340_v51, %v4025_v14  ;;  %v3341_v46 = vsel %vm9897_vm6, %v3324_v20, %v5972_v43  ;;  %v3292_v6 = vsel %vm3276_vm0, %v3275_v61, %v5997_v45  ;;  %v4463_v45 = vld [vmem:[%s9462_s5 + $0x68] sm:$0xff]  ;;  %vm4444_vm6 = vcmask 228352  }
 0x3e3   :  { %4253 = vmatmul.mubr.f32.gmra.mxu1 %v4061_v24  ;;  %v4062_v28 = vsel %vm4048_vm8, %v3341_v46, %v4027_v19  ;;  %v3309_v49 = vsel %vm9899_vm9, %v3292_v6, %v6002_v32 }
 0x3e4   :  { %4920 = vmatprep.mubr.msk.f32.mxu1 %vm4091_vm3, %v4027_v19  ;;  %v3073_v30 = vpop.permute.xlu0 %3072  ;;  %4490 = vmatpush1.msra.mxu1 %v4463_v45  ;;  %v4472_v45 = vld [vmem:[%s9462_s5 + $0xb0] sm:$0xff] }
 0x3e5   :  { %v3071_v26 = vpop.permute.xlu1 %3070  ;;  %4491 = vmatprep.subr.mxu1 %v9737_v41 }
 0x3e6   :  { %v3342_v15 = vsel %vm9898_vm15, %v3325_v11, %v3071_v26 }
 0x3e7   :  { %4258 = vmatmul.mubr.f32.gmra.mxu1 %v4062_v28  ;;  %v4063_v2 = vsel %vm4048_vm8, %v3342_v15, %v4029_v63  ;;  %v4461_v28 = vld [vmem:[%s9462_s5 + $0x58] sm:$0xff]  ;;  %v4460_v15 = vld [vmem:[%s9462_s5 + $0x50] sm:$0xff] }
 0x3e8   :  { %4921 = vmatprep.mubr.msk.f32.mxu1 %vm4091_vm3, %v4029_v63  ;;  %v4462_v63 = vld [vmem:[%s9462_s5 + $0x60] sm:$0xff] }
 0x3e9   :  { %v3009_v50 = vpop.permute.xlu1 %3008  ;;  %4492 = vmatpush1.msra.mxu1 %v4462_v63 }
 0x3ea   :  { %v3326_v57 = vsel %vm3310_vm2, %v3309_v49, %v3009_v50  ;;  %4493 = vmatprep.subr.mxu1 %v9737_v41  ;;  %v4459_v49 = vld [vmem:[%s9462_s5 + $0x48] sm:$0xff] }
 0x3eb   :  { %4263 = vmatmul.mubr.f32.gmra.mxu1 %v4063_v2  ;;  %v3343_v34 = vsel %vm9900_vm1, %v3326_v57, %v3073_v30 }
 0x3ec   :  { %4494 = vmatpush1.msra.mxu1 %v4461_v28 }
 0x3ed   :  { %v4031_v29 = vpop.permute.xlu1 %4030  ;;  %4495 = vmatprep.subr.mxu1 %v9737_v41 }
 0x3ee   :  { %4922 = vmatprep.mubr.msk.f32.mxu1 %vm4091_vm3, %v4031_v29  ;;  %v4064_v60 = vsel %vm4048_vm8, %v3343_v34, %v4031_v29  ;;  %vm4332_vm3 = vcmask 1041409   ;;  %4496 = vmatpush1.msra.mxu1 %v4460_v15 }
 0x3ef   :  { %4268 = vmatmul.mubr.f32.gmra.mxu1 %v4064_v60  ;;  %4497 = vmatprep.subr.mxu1 %v9737_v41  ;;  %v4458_v60 = vld [vmem:[%s9462_s5 + $0x40] sm:$0xff] }
 0x3f0   :  { %4498 = vmatpush1.msra.mxu1 %v4459_v49 }
 0x3f1   :  { %4499 = vmatprep.subr.mxu1 %v9737_v41 }
 0x3f2   :  { %4500 = vmatpush1.msra.mxu1 %v4458_v60 }
 0x3f3   :  { %4501 = vmatprep.subr.mxu1 %v9737_v41 }
 0x44d   :  { %v4194_v22 = vpop.f32.mrf.mxu1 }
 0x44e   :  { %v4195_v14 = vadd.f32 %v9194_v25, %v4194_v22 }
 0x44f   :  { %v4196_v40 = vpop.f32.mrf.mxu1 }
 0x450   :  { %v4273_v7 = vmax.f32 %v4195_v14, 0.0 }
 0x451   :  { %v4199_v16 = vpop.f32.mrf.mxu1 }
 0x452   :  { %v4200_v43 = vadd.f32 %v9194_v25, %v4199_v16  ;;  %v4457_v16 = vld [vmem:[%s9462_s5 + $0x38] sm:$0xff] }
 0x453   :  { %v4201_v21 = vpop.f32.mrf.mxu1  ;;  %4502 = vmatpush1.msra.mxu1 %v4457_v16 }
 0x454   :  { %v4274_v62 = vmax.f32 %v4200_v43, 0.0  ;;  %4503 = vmatprep.subr.mxu1 %v9737_v41 }
 0x455   :  { %v4204_v1 = vpop.f32.mrf.mxu1 }
 0x456   :  { %v4205_v19 = vadd.f32 %v9194_v25, %v4204_v1  ;;  %v4289_v24 = vmax.f32 %v4273_v7, %v4274_v62 }
 0x457   :  { %v4206_v35 = vpop.f32.mrf.mxu1 }
 0x458   :  { %v4275_v13 = vmax.f32 %v4205_v19, 0.0  ;;  %v4293_v20 = vrot.slane %v4289_v24, 1  ;;  %v4456_v35 = vld [vmem:[%s9462_s5 + $0x30] sm:$0xff] }
 0x459   :  { %4504 = vmatpush1.msra.mxu1 %v4456_v35 }
 0x45a   :  { %v4209_v39 = vpop.f32.mrf.mxu1  ;;  %v4297_v6 = vmax.f32 %v4289_v24, %v4293_v20  ;;  %4505 = vmatprep.subr.mxu1 %v9737_v41 }
 0x45b   :  { %v4210_v59 = vadd.f32 %v9194_v25, %v4209_v39 }
 0x45c   :  { %v4211_v38 = vpop.f32.mrf.mxu1  ;;  %v4341_v57 = vrot.slane %v4297_v6, 4  ;;  %v4335_v30 = vrot.slane %v4297_v6, 2  ;;  %v4347_v21 = vrot.slane %v4297_v6, 6 }
 0x45d   :  { %v4276_v33 = vmax.f32 %v4210_v59, 0.0  ;;  %v4455_v59 = vld [vmem:[%s9462_s5 + $0x28] sm:$0xff]  ;;  %v4454_v38 = vld [vmem:[%s9462_s5 + $0x20] sm:$0xff] }
 0x45e   :  { %v4214_v4 = vpop.f32.mrf.mxu1  ;;  %4506 = vmatpush1.msra.mxu1 %v4455_v59 }
 0x45f   :  { %v9198_v52 = vmax.f32 %v4275_v13, %v4276_v33  ;;  %v4215_v42 = vadd.f32 %v9194_v25, %v4214_v4  ;;  %4507 = vmatprep.subr.mxu1 %v9737_v41  ;;  %v4453_v13 = vld [vmem:[%s9462_s5 + $0x18] sm:$0xff] }
 0x460   :  { %v4216_v12 = vpop.f32.mrf.mxu1  ;;  %4508 = vmatpush1.msra.mxu1 %v4454_v38 }
 0x461   :  { %v4277_v5 = vmax.f32 %v4215_v42, 0.0  ;;  %4509 = vmatprep.subr.mxu1 %v9737_v41 }
 0x462   :  { %v4219_v47 = vpop.f32.mrf.mxu1  ;;  %4510 = vmatpush1.msra.mxu1 %v4453_v13 }
 0x463   :  { %v4220_v56 = vadd.f32 %v9194_v25, %v4219_v47  ;;  %4511 = vmatprep.subr.mxu1 %v9737_v41  ;;  %v4452_v47 = vld [vmem:[%s9462_s5 + $0x10] sm:$0xff] }
 0x464   :  { %v4221_v58 = vpop.f32.mrf.mxu1  ;;  %4512 = vmatpush1.msra.mxu1 %v4452_v47 }
 0x465   :  { %v4278_v36 = vmax.f32 %v4220_v56, 0.0  ;;  %v4303_v56 = vrot.slane %v9198_v52, 1  ;;  %4513 = vmatprep.subr.mxu1 %v9737_v41 }
 0x466   :  { %v4224_v9 = vpop.f32.mrf.mxu1 }
 0x467   :  { %v9202_v53 = vmax.f32 %v4277_v5, %v4278_v36  ;;  %v4225_v55 = vadd.f32 %v9194_v25, %v4224_v9  ;;  %v4451_v9 = vld [vmem:[%s9462_s5 + $0x8] sm:$0xff] }
 0x468   :  { %v4226_v54 = vpop.f32.mrf.mxu1  ;;  %4514 = vmatpush1.msra.mxu1 %v4451_v9 }
 0x469   :  { %v4279_v44 = vmax.f32 %v4225_v55, 0.0  ;;  %v4450_v54 = vld [vmem:[%s9462_s5] sm:$0xff]  ;;  %v4307_v55 = vmax.f32 %v9198_v52, %v4303_v56  ;;  %4515 = vmatprep.subr.mxu1 %v9737_v41  ;;  %v4313_v7 = vrot.slane %v9202_v53, 1 }
 0x46a   :  { %v4229_v18 = vpop.f32.mrf.mxu1  ;;  %4516 = vmatpush1.msra.mxu1 %v4450_v54  ;;  %v4466_v54 = vld [vmem:[%s9462_s5 + $0x80] sm:$0xff] }
 0x46b   :  { %v4230_v27 = vadd.f32 %v9194_v25, %v4229_v18  ;;  %4533 = vmatprep.subr.mxu1 %v9737_v41  ;;  %v4317_v28 = vmax.f32 %v9202_v53, %v4313_v7  ;;  %v4470_v53 = vld [vmem:[%s9462_s5 + $0xa0] sm:$0xff] }
 0x46c   :  { %v4231_v31 = vpop.f32.mrf.mxu1 }
 0x46d   :  { %v4280_v0 = vmax.f32 %v4230_v27, 0.0 }
 0x46f   :  { %v9206_v17 = vmax.f32 %v4279_v44, %v4280_v0 }
 0x471   :  { %v4323_v13 = vrot.slane %v9206_v17, 1 }
 0x473   :  { %v4327_v56 = vmax.f32 %v9206_v17, %v4323_v13  ;;  %v4558_v13 = vld [vmem:[%s9464_s7 + $0x10] sm:$0xff] }
 0x475   :  { %v4410_v17 = vrot.slane %v4327_v56, 2 }
 0x47a   :  { %v4234_v51 = vpop.f32.mrf.mxu1 }
 0x47b   :  { %v4235_v10 = vadd.f32 %v9194_v25, %v4234_v51  ;;  %v4360_v51 = vrot.slane %v4307_v55, 2 }
 0x47c   :  { %v4236_v37 = vpop.f32.mrf.mxu1 }
 0x47d   :  { %v4281_v26 = vmax.f32 %v4235_v10, 0.0  ;;  %v4473_v37 = vld [vmem:[%s9462_s5 + $0xb8] sm:$0xff] }
 0x47e   :  { %4534 = vmatpush2.msra.mxu1 %v4473_v37 }
 0x47f   :  { %4535 = vmatprep.subr.mxu1 %v9737_v41 }
 0x480   :  { %4536 = vmatpush2.msra.mxu1 %v4472_v45 }
 0x481   :  { %4537 = vmatprep.subr.mxu1 %v9737_v41 }
 0x482   :  { %v4239_v8 = vpop.f32.mrf.mxu1 }
 0x483   :  { %v4240_v61 = vadd.f32 %v9194_v25, %v4239_v8 }
 0x484   :  { %v4241_v3 = vpop.f32.mrf.mxu1 }
 0x485   :  { %v4282_v46 = vmax.f32 %v4240_v61, 0.0 }
 0x487   :  { %v4290_v11 = vmax.f32 %v4281_v26, %v4282_v46  ;;  %v4471_v26 = vld [vmem:[%s9462_s5 + $0xa8] sm:$0xff] }
 0x488   :  { %4538 = vmatpush2.msra.mxu1 %v4471_v26 }
 0x489   :  { %v4294_v32 = vrot.slane %v4290_v11, 1  ;;  %4539 = vmatprep.subr.mxu1 %v9737_v41 }
 0x48a   :  { %4540 = vmatpush2.msra.mxu1 %v4470_v53 }
 0x48b   :  { %v4298_v50 = vmax.f32 %v4290_v11, %v4294_v32  ;;  %v4366_v11 = vrot.slane %v4307_v55, 4  ;;  %4541 = vmatprep.subr.mxu1 %v9737_v41 }
 0x48d   :  { %v4342_v2 = vrot.slane %v4298_v50, 3  ;;  %v4336_v29 = vrot.slane %v4298_v50, 1  ;;  %v4331_v34 = vrot.slane %v4298_v50, 7  ;;  %v4348_v22 = vrot.slane %v4298_v50, 5 }
 0x48f   :  { %v4343_v23 = vsel %vm4332_vm3, %v4342_v2, %v4341_v57  ;;  %v4337_v48 = vsel %vm4332_vm3, %v4336_v29, %v4335_v30  ;;  %v9237_v40 = vsel %vm4332_vm3, %v4331_v34, %v4297_v6  ;;  %v4349_v19 = vsel %vm4332_vm3, %v4348_v22, %v4347_v21 }
 0x490   :  { %4344 = vrot.lane.b32.xlu1 %v4343_v23, %s6042_s16  ;;  %4338 = vrot.lane.b32.xlu0 %v4337_v48, %s6040_s14  ;;  %v4372_v2 = vrot.slane %v4307_v55, 6  ;;  %v4397_v23 = vrot.slane %v4317_v28, 6 }
 0x492   :  { %v4244_v1 = vpop.f32.mrf.mxu1 }
 0x493   :  { %v4245_v33 = vadd.f32 %v9194_v25, %v4244_v1  ;;  %v4391_v1 = vrot.slane %v4317_v28, 4 }
 0x494   :  { %v4246_v39 = vpop.f32.mrf.mxu1  ;;  %4350 = vrot.lane.b32.xlu0 %v4349_v19, %s6045_s19  ;;  %v4469_v19 = vld [vmem:[%s9462_s5 + $0x98] sm:$0xff] }
 0x495   :  { %v4283_v58 = vmax.f32 %v4245_v33, 0.0  ;;  %v4468_v39 = vld [vmem:[%s9462_s5 + $0x90] sm:$0xff]  ;;  %4542 = vmatpush2.msra.mxu1 %v4469_v19 }
 0x496   :  { %4543 = vmatprep.subr.mxu1 %v9737_v41  ;;  %v4562_v19 = vld [vmem:[%s9464_s7 + $0x30] sm:$0xff] }
 0x497   :  { %4544 = vmatpush2.msra.mxu1 %v4468_v39  ;;  %v4561_v39 = vld [vmem:[%s9464_s7 + $0x28] sm:$0xff] }
 0x498   :  { %4545 = vmatprep.subr.mxu1 %v9737_v41 }
 0x49f   :  { %v4249_v4 = vpop.f32.mrf.mxu1 }
 0x4a0   :  { %v4250_v12 = vadd.f32 %v9194_v25, %v4249_v4 }
 0x4a1   :  { %v4251_v42 = vpop.f32.mrf.mxu1 }
 0x4a2   :  { %v4284_v5 = vmax.f32 %v4250_v12, 0.0  ;;  %v4467_v12 = vld [vmem:[%s9462_s5 + $0x88] sm:$0xff]  ;;  %s6062_s5 = smov 40  }
 0x4a3   :  { %v4254_v27 = vpop.f32.mrf.mxu1  ;;  %4546 = vmatpush2.msra.mxu1 %v4467_v12  ;;  %v4923_v12 = vld [vmem:[%s9463_s6] ss:$0 sm:$0xff] }
 0x4a4   :  { %v4300_v36 = vmax.f32 %v4283_v58, %v4284_v5  ;;  %v4255_v0 = vadd.f32 %v9194_v25, %v4254_v27  ;;  %4547 = vmatprep.subr.mxu1 %v9737_v41  ;;  %v4385_v5 = vrot.slane %v4317_v28, 2 }
 0x4a5   :  { %v4256_v44 = vpop.f32.mrf.mxu1  ;;  %4548 = vmatpush2.msra.mxu1 %v4466_v54  ;;  %v4656_v54 = vld [vmem:[%s9466_s9 + $0x20] sm:$0xff] }
 0x4a6   :  { %v4304_v18 = vrot.slane %v4300_v36, 1  ;;  %v4285_v20 = vmax.f32 %v4255_v0, 0.0  ;;  %5327 = vmatprep.subr.mxu1 %v9737_v41 }
 0x4a7   :  { %v4259_v43 = vpop.f32.mrf.mxu1 }
 0x4a8   :  { %v4308_v31 = vmax.f32 %v4300_v36, %v4304_v18  ;;  %v4260_v52 = vadd.f32 %v9194_v25, %v4259_v43  ;;  %v4422_v43 = vrot.slane %v4327_v56, 6 }
 0x4a9   :  { %v4261_v24 = vpop.f32.mrf.mxu1 }
 0x4aa   :  { %v4355_v14 = vrot.slane %v4308_v31, 7  ;;  %v4361_v62 = vrot.slane %v4308_v31, 1  ;;  %v4367_v61 = vrot.slane %v4308_v31, 3  ;;  %v4286_v3 = vmax.f32 %v4260_v52, 0.0 }
 0x4ab   :  { %v4264_v46 = vpop.f32.mrf.mxu1  ;;  %v4373_v15 = vrot.slane %v4308_v31, 5  ;;  %v4416_v31 = vrot.slane %v4327_v56, 4 }
 0x4ac   :  { %v4356_v10 = vsel %vm4332_vm3, %v4355_v14, %v4307_v55  ;;  %v4362_v8 = vsel %vm4332_vm3, %v4361_v62, %v4360_v51  ;;  %v4310_v63 = vmax.f32 %v4285_v20, %v4286_v3  ;;  %v4368_v32 = vsel %vm4332_vm3, %v4367_v61, %v4366_v11 }
 0x4ad   :  { %4357 = vrot.lane.b32.xlu1 %v4356_v10, %s6046_s20  ;;  %4363 = vrot.lane.b32.xlu0 %v4362_v8, %s6049_s23  ;;  %v4266_v6 = vpop.f32.mrf.mxu1  ;;  %v4265_v49 = vadd.f32 %v9194_v25, %v4264_v46  ;;  %v4374_v60 = vsel %vm4332_vm3, %v4373_v15, %v4372_v2 }
 0x4ae   :  { %v4314_v50 = vrot.slane %v4310_v63, 1 }
 0x4af   :  { %v4269_v57 = vpop.f32.mrf.mxu1  ;;  %v4287_v48 = vmax.f32 %v4265_v49, 0.0 }
 0x4b0   :  { %v4318_v30 = vmax.f32 %v4310_v63, %v4314_v50  ;;  %v4270_v29 = vadd.f32 %v9194_v25, %v4269_v57 }
 0x4b1   :  { %4369 = vrot.lane.b32.xlu1 %v4368_v32, %s6051_s25  ;;  %v4271_v34 = vpop.f32.mrf.mxu1 }
 0x4b2   :  { %v4288_v22 = vmax.f32 %v4270_v29, 0.0  ;;  %v4398_v16 = vrot.slane %v4318_v30, 5  ;;  %v4392_v21 = vrot.slane %v4318_v30, 3  ;;  %v4380_v38 = vrot.slane %v4318_v30, 7 }
 0x4b3   :  { %v4386_v47 = vrot.slane %v4318_v30, 1 }
 0x4b4   :  { %v4320_v35 = vmax.f32 %v4287_v48, %v4288_v22  ;;  %v4399_v25 = vsel %vm4332_vm3, %v4398_v16, %v4397_v23  ;;  %v4393_v59 = vsel %vm4332_vm3, %v4392_v21, %v4391_v1  ;;  %v4381_v42 = vsel %vm4332_vm3, %v4380_v38, %v4317_v28  ;;  %v4569_v48 = vld [vmem:[%s9464_s7 + $0x68] sm:$0xff]  ;;  %v4568_v22 = vld [vmem:[%s9464_s7 + $0x60] sm:$0xff]  ;;  %v4567_v16 = vld [vmem:[%s9464_s7 + $0x58] sm:$0xff] }
 0x4b5   :  { %4375 = vrot.lane.b32.xlu1 %v4374_v60, %s6053_s27  ;;  %4400 = vrot.lane.b32.xlu0 %v4399_v25, %s6057_s4  ;;  %s6058_s27 = smov 120   ;;  %v4387_v55 = vsel %vm4332_vm3, %v4386_v47, %v4385_v5  ;;  %v4570_v60 = vld [vmem:[%s9464_s7 + $0x70] sm:$0xff]  ;;  %v4565_v1 = vld [vmem:[%s9464_s7 + $0x48] sm:$0xff] }
 0x4b6   :  { %v4324_v33 = vrot.slane %v4320_v35, 1  ;;  %v4566_v21 = vld [vmem:[%s9464_s7 + $0x50] sm:$0xff]  ;;  %v4563_v25 = vld [vmem:[%s9464_s7 + $0x38] sm:$0xff] }
 0x4b7   :  { %v4559_v38 = vld [vmem:[%s9464_s7 + $0x18] sm:$0xff] }
 0x4b8   :  { %v4328_v4 = vmax.f32 %v4320_v35, %v4324_v33  ;;  %v4564_v35 = vld [vmem:[%s9464_s7 + $0x40] sm:$0xff]  ;;  %v4557_v33 = vld [vmem:[%s9464_s7 + $0x8] sm:$0xff]  ;;  %v4659_v5 = vld [vmem:[%s9466_s9 + $0x38] sm:$0xf] }
 0x4b9   :  { %4394 = vrot.lane.b32.xlu1 %v4393_v59, %s6058_s27  ;;  %v4560_v59 = vld [vmem:[%s9464_s7 + $0x20] sm:$0xff] }
 0x4ba   :  { %v4405_v58 = vrot.slane %v4328_v4, 7  ;;  %v4411_v9 = vrot.slane %v4328_v4, 1  ;;  %v4417_v27 = vrot.slane %v4328_v4, 3  ;;  %v4423_v0 = vrot.slane %v4328_v4, 5  ;;  %v4556_v4 = vld [vmem:[%s9464_s7] sm:$0xff] }
 0x4bc   :  { %v4406_v36 = vsel %vm4332_vm3, %v4405_v58, %v4327_v56  ;;  %v4412_v18 = vsel %vm4332_vm3, %v4411_v9, %v4410_v17  ;;  %v4418_v44 = vsel %vm4332_vm3, %v4417_v27, %v4416_v31  ;;  %v4424_v14 = vsel %vm4332_vm3, %v4423_v0, %v4422_v43  ;;  %v4657_v9 = vld [vmem:[%s9466_s9 + $0x28] sm:$0xff]  ;;  %v4654_v17 = vld [vmem:[%s9466_s9 + $0x10] sm:$0xff]  ;;  %v4652_v27 = vld [vmem:[%s9466_s9] sm:$0xff] }
 0x4bd   :  { %4382 = vrot.lane.b32.xlu1 %v4381_v42, %s6056_s3  ;;  %4407 = vrot.lane.b32.xlu0 %v4406_v36, %s6059_s13  ;;  %s6061_s3 = smov 28   ;;  %v4658_v36 = vld [vmem:[%s9466_s9 + $0x30] sm:$0xff]  ;;  %v4925_v31 = vld [vmem:[%s9465_s8] ss:$0 sm:$0xff] }
 0x4c1   :  { %4388 = vrot.lane.b32.xlu1 %v4387_v55, %s6060_s28  ;;  %4413 = vrot.lane.b32.xlu0 %v4412_v18, %s6061_s3  ;;  %v4655_v55 = vld [vmem:[%s9466_s9 + $0x18] sm:$0xff]  ;;  %v4653_v18 = vld [vmem:[%s9466_s9 + $0x8] sm:$0xff]  ;;  %s4751_s9 = sshll.u32 %s6065_s30, 4  ;;  %s4752_s9 = int_to_ptr.vmem [resolvable:$true] %s4751_s9 }
 0x4c2   :  { %s6018_s1 = scalar_lea.vmem %s4752_s9, 32  ;;  %p6023_p1 = scmp.lt.s32.totalorder %s4752_s9, %s4752_s9 }
 0x4c3   :  { %p6019_p0 = scmp.ne.s32.totalorder %s4752_s9, %s6018_s1  ;;  %p6024_p2 = scmp.lt.s32.totalorder %s6018_s1, %s6018_s1 }
 0x4c5   :  { %4419 = vrot.lane.b32.xlu0 %v4418_v44, %s6062_s5  ;;  %p6025_p3 = por %p6024_p2, %p6023_p1 }
 0x4c7   :  { %p6026_p4 = pnand %p6025_p3, %p6019_p0 }
 0x4c9   :  { %4425 = vrot.lane.b32.xlu0 %v4424_v14, %s6063_s29 }
 0x502   :  { %v4345_v51 = vpop.permute.xlu1 %4344  ;;  %v4339_v37 = vpop.permute.xlu0 %4338 }
 0x503   :  { %v4428_v45 = vsel %vm3106_vm5, %v9237_v40, %v4339_v37  ;;  %vm4446_vm5 = vcmask 326656  }
 0x504   :  { %v4429_v3 = vsel %vm3140_vm7, %v4428_v45, %v4345_v51  ;;  %vm4448_vm7 = vcmask 424960   ;;  %v4927_v51 = vld [vmem:[%s9467_s10] ss:$0 sm:$0xff] }
 0x506   :  { %v4351_v7 = vpop.permute.xlu0 %4350 }
 0x507   :  { %v4430_v46 = vsel %vm3174_vm10, %v4429_v3, %v4351_v7  ;;  %vm4438_vm10 = vcmask 982016  }
 0x51f   :  { %v4358_v62 = vpop.permute.xlu1 %4357  ;;  %v4364_v10 = vpop.permute.xlu0 %4363 }
 0x520   :  { %v4431_v11 = vsel %vm3208_vm12, %v4430_v46, %v4358_v62  ;;  %vm4481_vm12 = vcmask 523264  }
 0x521   :  { %v4432_v28 = vsel %vm3242_vm14, %v4431_v11, %v4364_v10 }
 0x523   :  { %v4370_v52 = vpop.permute.xlu1 %4369 }
 0x524   :  { %v4433_v6 = vsel %vm3276_vm0, %v4432_v28, %v4370_v52  ;;  %vm6064_vm0 = vmmov 0  }
 0x527   :  { %v4376_v24 = vpop.permute.xlu1 %4375  ;;  %v4401_v8 = vpop.permute.xlu0 %4400 }
 0x528   :  { %v4434_v40 = vsel %vm3310_vm2, %v4433_v6, %v4376_v24  ;;  %vm4670_vm2 = vcmask 1043456  }
 0x52b   :  { %v4395_v61 = vpop.permute.xlu1 %4394 }
 0x52c   :  { %v4441_v50 = vsel %vm4440_vm11, %v4395_v61, %v4401_v8 }
 0x52f   :  { %v4408_v20 = vpop.permute.xlu0 %4407  ;;  %v4383_v26 = vpop.permute.xlu1 %4382 }
 0x530   :  { %v4435_v49 = vsel %vm4048_vm8, %v4434_v40, %v4383_v26  ;;  %v4443_v57 = vsel %vm4442_vm13, %v4441_v50, %v4408_v20 }
 0x533   :  { %v4414_v63 = vpop.permute.xlu0 %4413  ;;  %v4389_v32 = vpop.permute.xlu1 %4388 }
 0x534   :  { %v4437_v2 = vsel %vm4436_vm4, %v4435_v49, %v4389_v32  ;;  %v4445_v30 = vsel %vm4444_vm6, %v4443_v57, %v4414_v63 }
 0x535   :  { %v4439_v23 = vsel %vm4438_vm10, %v4437_v2, %v4395_v61 }
 0x537   :  { %v4420_v15 = vpop.permute.xlu0 %4419 }
 0x538   :  { %v4447_v29 = vsel %vm4446_vm5, %v4445_v30, %v4420_v15 }
 0x53b   :  { %v4426_v53 = vpop.permute.xlu0 %4425 }
 0x53c   :  { %v4449_v34 = vsel %vm4448_vm7, %v4447_v29, %v4426_v53 }
 0x53d   :  { %4924 = vmatprep.mubr.msk.f32.mxu1 %vm4481_vm12, %v4449_v34 }
 0x53e   :  { %4550 = vmatmul.mubr.f32.vlgmr.msra.gmra.mxu1 %v4439_v23 }
 0x53f   :  { %5328 = vmatpush3.msra.mxu1 %v4570_v60  ;;  %5357 = vmatprep.mubr.msk.f32.mxu1 %vm6064_vm0, %v9737_v41 }
 0x540   :  { %5329 = vmatprep.subr.mxu1 %v9737_v41 }
 0x541   :  { %5330 = vmatpush3.msra.mxu1 %v4569_v48 }
 0x542   :  { %5331 = vmatprep.subr.mxu1 %v9737_v41 }
 0x543   :  { %5332 = vmatpush3.msra.mxu1 %v4568_v22 }
 0x544   :  { %5333 = vmatprep.subr.mxu1 %v9737_v41 }
 0x545   :  { %5334 = vmatpush3.msra.mxu1 %v4567_v16 }
 0x546   :  { %5335 = vmatprep.subr.mxu1 %v9737_v41 }
 0x547   :  { %5336 = vmatpush3.msra.mxu1 %v4566_v21 }
 0x548   :  { %5337 = vmatprep.subr.mxu1 %v9737_v41 }
 0x549   :  { %5338 = vmatpush3.msra.mxu1 %v4565_v1 }
 0x54a   :  { %5339 = vmatprep.subr.mxu1 %v9737_v41 }
 0x54b   :  { %5340 = vmatpush3.msra.mxu1 %v4564_v35 }
 0x54c   :  { %5341 = vmatprep.subr.mxu1 %v9737_v41 }
 0x54d   :  { %5342 = vmatpush3.msra.mxu1 %v4563_v25 }
 0x54e   :  { %5343 = vmatprep.subr.mxu1 %v9737_v41 }
 0x54f   :  { %5344 = vmatpush3.msra.mxu1 %v4562_v19 }
 0x550   :  { %5345 = vmatprep.subr.mxu1 %v9737_v41 }
 0x551   :  { %5346 = vmatpush3.msra.mxu1 %v4561_v39 }
 0x552   :  { %5347 = vmatprep.subr.mxu1 %v9737_v41 }
 0x553   :  { %5348 = vmatpush3.msra.mxu1 %v4560_v59 }
 0x554   :  { %5349 = vmatprep.subr.mxu1 %v9737_v41 }
 0x555   :  { %5350 = vmatpush3.msra.mxu1 %v4559_v38 }
 0x556   :  { %5351 = vmatprep.subr.mxu1 %v9737_v41 }
 0x557   :  { %5352 = vmatpush3.msra.mxu1 %v4558_v13 }
 0x558   :  { %5353 = vmatprep.subr.mxu1 %v9737_v41 }
 0x559   :  { %5354 = vmatpush3.msra.mxu1 %v4557_v33 }
 0x55a   :  { %5355 = vmatprep.subr.mxu1 %v9737_v41 }
 0x55b   :  { %5356 = vmatpush3.msra.mxu1 %v4556_v4 }
 0x55c   :  { %5360 = vmatprep.subr.mxu1 %v9737_v41 }
 0x5fe   :  { %v4551_v42 = vpop.f32.mrf.mxu1 }
 0x5ff   :  { %v4552_v47 = vadd.f32 %v4923_v12, %v4551_v42 }
 0x600   :  { %v4553_v56 = vpop.f32.mrf.mxu1 }
 0x601   :  { %v4555_v58 = vmax.f32 %v4552_v47, 0.0 }
 0x603   :  { %5358 = vmatmul.mubr.msk.f32.vlgmr.msra.gmra.mxu1 %vm4438_vm10, %v4555_v58 }
 0x604   :  { %5361 = vmatpush3.msk.msra.mxu1 %vm4670_vm2, %v4659_v5  ;;  %5376 = vmatprep.mubr.msk.f32.mxu1 %vm6064_vm0, %v9737_v41 }
 0x605   :  { %5362 = vmatprep.subr.mxu1 %v9737_v41 }
 0x606   :  { %5363 = vmatpush3.msra.mxu1 %v4658_v36 }
 0x607   :  { %5364 = vmatprep.subr.mxu1 %v9737_v41 }
 0x608   :  { %5365 = vmatpush3.msra.mxu1 %v4657_v9 }
 0x609   :  { %5366 = vmatprep.subr.mxu1 %v9737_v41 }
 0x60a   :  { %5367 = vmatpush3.msra.mxu1 %v4656_v54 }
 0x60b   :  { %5368 = vmatprep.subr.mxu1 %v9737_v41 }
 0x60c   :  { %5369 = vmatpush3.msra.mxu1 %v4655_v55 }
 0x60d   :  { %5370 = vmatprep.subr.mxu1 %v9737_v41 }
 0x60e   :  { %5371 = vmatpush3.msra.mxu1 %v4654_v17 }
 0x60f   :  { %5372 = vmatprep.subr.mxu1 %v9737_v41 }
 0x610   :  { %5373 = vmatpush3.msra.mxu1 %v4653_v18 }
 0x611   :  { %5374 = vmatprep.subr.mxu1 %v9737_v41 }
 0x612   :  { %5375 = vmatpush3.msra.mxu1 %v4652_v27 }
 0x6c3   :  { %v4647_v44 = vpop.f32.mrf.mxu1 }
 0x6c4   :  { %v4648_v0 = vadd.f32 %v4925_v31, %v4647_v44 }
 0x6c5   :  { %v5359_v43 = vpop.f32.mrf.mxu1 }
 0x6c6   :  { %v4651_v14 = vmax.f32 %v4648_v0, 0.0 }
 0x6c8   :  { %5377 = vmatmul.mubr.msk.f32.vlgmr.msra.gmra.mxu1 %vm3242_vm14, %v4651_v14 }
 0x788   :  { %v4740_v62 = vpop.f32.mrf.mxu1 }
 0x789   :  { %v4741_v37 = vadd.f32 %v4927_v51, %v4740_v62 }
 0x78a   :  { %v5378_v41 = vpop.f32.mrf.mxu1 }
 0x78b   :  { %4744 = vst [vmem:[#allocation3] sm:$0x3] %v4741_v37 }
 0x78c   :  { %6029 = shalt.err (!%p6026_p4)
}
 0x78d   :  { %4754 = dma.vmem_to_hbm [thread:$0]  %s4752_s9, 32, %s9468_s11, [#allocation4]  }
 0x78e   :  { %6038 = dma.done.wait [#allocation4], 32  }
 0x78f   :  { %6039 = vsyncadd [#allocation4], 4294967264 }
 0x790   :  { %4758 = vsyncpa [#allocation4], 1 }

</bundles_post_ra>
